<compile_context>
chip_gen: v5e
topology: v5e:2x2
jax: 0.10.0
libtpu: 0.0.40
codegen_flags: <defaults>
</compile_context>

<pallas_src>
import jax
import jax.numpy as jnp
from jax import lax
from jax.experimental import pallas as pl
from jax.experimental.pallas import tpu as pltpu

ATOM_FEA_LEN = 32          # atom_fea_len (= heads * head_dim)
NBR_FEA_LEN = 16           # nbr_fea_len (edge_dim)
HEADS = 8
HEAD_DIM = ATOM_FEA_LEN // HEADS
NEG = 1e30                 # additive softmax mask magnitude


def _layer_norm(h, gamma, beta, eps=1e-5):
    mu = jnp.mean(h, axis=-1, keepdims=True)
    var = jnp.mean((h - mu) ** 2, axis=-1, keepdims=True)
    return (h - mu) * lax.rsqrt(var + eps) * gamma + beta


def _silu(h):
    return h * jax.nn.sigmoid(h)


def _mm(a, b):
    return jnp.dot(a, b, preferred_element_type=jnp.float32)


def sat_layer_kernel(
    x_ref, bias_ref, edense_ref, subn_ref, subi_ref,
    wall_ref, ball_ref, we_ref, p_ref, w1_ref, w2_ref, vecs_ref,
    out_ref,
):
    f32 = jnp.float32
    x = x_ref[...]                         # [BT, N, F]
    BT, N, F = x.shape
    bias = bias_ref[...]                   # [BT, N, N, 1]  0 on edges, -1e30 off-edges
    edense = edense_ref[...]               # [BT, N, N, nbr] dense edge attributes
    nbr = edense.shape[-1]

    vecs = vecs_ref[...]                   # [8, F] coalesced small parameter vectors
    ln1_g, ln1_b = vecs[0:1, :], vecs[1:2, :]
    b1, b2 = vecs[2:3, :], vecs[3:4, :]
    ln2_g, ln2_b = vecs[4:5, :], vecs[5:6, :]

    # ---------------- TransformerConv (heads, concat, edge_dim, root_weight) ----------------
    # Fused Q/K/V/skip projection: one lane-dense [BT*N, F] x [F, 4F] MXU pass.
    x2 = x.reshape(BT * N, F)
    qkvs = _mm(x2, wall_ref[...]) + ball_ref[...]            # [BT*N, 4F]
    q = qkvs[:, 0 * F:1 * F].reshape(BT, N, F)
    k = qkvs[:, 1 * F:2 * F].reshape(BT, N, F)
    v = qkvs[:, 2 * F:3 * F].reshape(BT, N, F)
    x_skip = qkvs[:, 3 * F:4 * F].reshape(BT, N, F)

    # Edge embedding (lin_edge, no bias).
    e3 = _mm(edense.reshape(BT * N * N, nbr), we_ref[...]).reshape(BT, N, N, F)

    # Dense message tensors via broadcast over dst (axis 1) / src (axis 2).
    kt = k[:, None, :, :] + e3             # [BT, N(dst), N(src), F]
    vt = v[:, None, :, :] + e3
    s = q[:, :, None, :] * kt              # q[dst] * (k[src] + e)

    # Per-head logit sum broadcast back to F lanes (scaled block-diagonal matrix).
    logits = _mm(s.reshape(BT * N * N, F), p_ref[...]).reshape(BT, N, N, F)

    # Masked per-destination softmax over incoming edges via additive bias.
    biased = logits + bias                                        # [BT, N, N, F]
    lmax = jnp.maximum(jnp.max(biased, axis=2, keepdims=True), 0.0)   # [BT, N, 1, F]
    expl = jnp.exp(biased - lmax)          # exact 0 on non-edges / isolated destinations
    denom = jnp.sum(expl, axis=2)                                 # [BT, N, F]
    numer = jnp.sum(expl * vt, axis=2)                            # [BT, N, F]
    attn = numer * pl.reciprocal(jnp.maximum(denom, 1e-30), approx=True)
    x_trans = attn + x_skip                # root/skip term

    # -------- subgraph branch: gather -> LayerNorm -> MLP(SiLU) -> scatter-mean --------------
    subn = subn_ref[...]                   # [BT, M, 1] int32 (sublane-major)
    subi = subi_ref[...]                   # [BT, 1, M] int32 (lane-major)
    M = subn.shape[1]
    col = lax.broadcasted_iota(jnp.int32, (BT, M, N), 2)
    G = (col == subn).astype(f32)          # [BT, M, N] gather one-hot (x[sub_nodes])
    sub_x = jnp.einsum('bmn,bnf->bmf', G, x, preferred_element_type=f32)   # [BT, M, F]

    h = _layer_norm(sub_x.reshape(BT * M, F), ln1_g, ln1_b)
    h = _silu(_mm(h, w1_ref[...]) + b1)
    h = (_mm(h, w2_ref[...]) + b2).reshape(BT, M, F)

    rown = lax.broadcasted_iota(jnp.int32, (BT, N, M), 1)
    ST = (rown == subi).astype(f32)        # [BT, N, M] scatter one-hot (segment ids)
    sums = jnp.einsum('bnm,bmf->bnf', ST, h, preferred_element_type=f32)   # [BT, N, F]
    counts = jnp.sum(ST, axis=2, keepdims=True)                            # [BT, N, 1]
    sub_out = sums / jnp.maximum(counts, 1.0)     # exact scatter-mean (integer counts)

    # ------------------------- residual + out_norm + activation ------------------------------
    # TODO(synk): Dropout(0.1) is identity here (eval-mode semantics, no RNG mask).
    y = x + x_trans + sub_out
    y = _layer_norm(y, ln2_g, ln2_b)
    out_ref[...] = _silu(y)


def init_params(key, F=ATOM_FEA_LEN, nbr=NBR_FEA_LEN):
    ks = jax.random.split(key, 11)

    def w(k, shape, scale=0.2):
        return jax.random.normal(k, shape, jnp.float32) * scale

    return {
        "wq": w(ks[0], (F, F)), "bq": w(ks[1], (1, F), 0.05),
        "wk": w(ks[2], (F, F)), "bk": w(ks[3], (1, F), 0.05),
        "wv": w(ks[4], (F, F)), "bv": w(ks[5], (1, F), 0.05),
        "we": w(ks[6], (nbr, F)),
        "wskip": w(ks[7], (F, F)), "bskip": w(ks[8], (1, F), 0.05),
        "ln1_g": jnp.ones((1, F), jnp.float32), "ln1_b": jnp.zeros((1, F), jnp.float32),
        "w1": w(ks[9], (F, F)), "b1": jnp.zeros((1, F), jnp.float32),
        "w2": w(ks[10], (F, F)), "b2": jnp.zeros((1, F), jnp.float32),
        "ln2_g": jnp.ones((1, F), jnp.float32), "ln2_b": jnp.zeros((1, F), jnp.float32),
    }


def densify_edges(edge_index, edge_attr, num_nodes):
    """Dense [N, N] / [N, N, nbr] layout with adj[dst, src] = 1 for edge src -> dst.
    (Parallel multi-edges between the same (src, dst) pair collapse in this layout.)"""
    src, dst = edge_index[0], edge_index[1]
    adj = jnp.zeros((num_nodes, num_nodes), jnp.float32).at[dst, src].set(1.0)
    edense = jnp.zeros((num_nodes, num_nodes, edge_attr.shape[1]),
                       jnp.float32).at[dst, src].set(edge_attr)
    return adj, edense


def sat_layer(x, adj, edense, sub_nodes, sub_indicator, params, *, block_b=8):
    """Batched SATLayer forward.

    x:             [B, N, F]      float32
    adj:           [B, N, N]      float32 0/1, adj[b, i, j] = 1 iff edge j -> i
    edense:        [B, N, N, nbr] float32 dense edge attributes
    sub_nodes:     [B, M]         int32 subgraph node ids
    sub_indicator: [B, M]         int32 subgraph segment (center) ids
    """
    B, N, F = x.shape
    nbr = edense.shape[-1]
    M = sub_nodes.shape[-1]

    bt = max(1, min(block_b, B))
    Bp = pl.cdiv(B, bt) * bt

    # Host-precomputed additive softmax mask bias: 0 on edges, -1e30 on non-edges.
    mask_bias = ((adj - 1.0) * NEG)[..., None]               # [B, N, N, 1]
    subn = sub_nodes.astype(jnp.int32)[:, :, None]           # [B, M, 1] sublane-major
    subi = sub_indicator.astype(jnp.int32)[:, None, :]       # [B, 1, M] lane-major

    def pad_b(a):
        if Bp == B:
            return a
        return jnp.pad(a, [(0, Bp - B)] + [(0, 0)] * (a.ndim - 1))

    x_p, bias_p, ed_p, subn_p, subi_p = map(pad_b, (x, mask_bias, edense, subn, subi))

    # Fused Q/K/V/skip projection weights (lane-dense 4F = 128 output lanes).
    w_all = jnp.concatenate(
        [params["wq"], params["wk"], params["wv"], params["wskip"]], axis=1)   # [F, 4F]
    b_all = jnp.concatenate(
        [params["bq"], params["bk"], params["bv"], params["bskip"]], axis=1)   # [1, 4F]

    # Scaled block-diagonal "per-head sum & broadcast" matrix (hoisted to host).
    head_id = jnp.arange(F, dtype=jnp.int32) // HEAD_DIM
    p_scaled = (head_id[:, None] == head_id[None, :]).astype(jnp.float32)
    p_scaled = p_scaled * jnp.float32(1.0 / (HEAD_DIM ** 0.5))                 # [F, F]

    # Coalesce the six tiny [1, F] vectors into one resident [8, F] slab.
    vecs = jnp.concatenate(
        [params["ln1_g"], params["ln1_b"], params["b1"], params["b2"],
         params["ln2_g"], params["ln2_b"], jnp.zeros((2, F), jnp.float32)], axis=0)

    weights = [w_all, b_all, params["we"], p_scaled, params["w1"], params["w2"], vecs]

    def batched(shape):
        nd = len(shape)
        return pl.BlockSpec((bt,) + tuple(shape[1:]),
                            lambda g, _nd=nd: (g,) + (0,) * (_nd - 1))

    def resident(arr):   # full-array block, constant index_map -> stays resident in VMEM
        return pl.BlockSpec(arr.shape, lambda g, _nd=arr.ndim: (0,) * _nd)

    in_specs = ([batched(a.shape) for a in (x_p, bias_p, ed_p, subn_p, subi_p)]
                + [resident(w) for w in weights])

    # VMEM budget: double-buffered per-step inputs + ~6 dense [bt,N,N,F] f32 temporaries.
    step_in = 4 * bt * (2 * N * F + N * N * (1 + nbr) + 2 * M)
    temps = 4 * bt * N * N * F * 6
    vmem = int(min(56 * 2**20, max(32 * 2**20, 3 * step_in + 2 * temps)))

    out = pl.pallas_call(
        sat_layer_kernel,
        out_shape=jax.ShapeDtypeStruct((Bp, N, F), jnp.float32),
        grid=(Bp // bt,),
        in_specs=in_specs,
        out_specs=pl.BlockSpec((bt, N, F), lambda g: (g, 0, 0)),
        compiler_params=pltpu.CompilerParams(
            dimension_semantics=("parallel",), vmem_limit_bytes=vmem),
    )(x_p, bias_p, ed_p, subn_p, subi_p, *weights)
    return out[:B]


if __name__ == "__main__":
    key = jax.random.PRNGKey(0)
    kx, ke, kp = jax.random.split(key, 3)

    B, N = 8, 8                                       # graphs per batch, atoms per graph
    x = jax.random.normal(kx, (B, N, ATOM_FEA_LEN), jnp.float32)

    def ring_edges(offsets):
        dst = jnp.repeat(jnp.arange(N, dtype=jnp.int32), len(offsets))
        offs = jnp.tile(jnp.array(offsets, jnp.int32), N)
        src = (dst + offs) % N
        return jnp.stack([src, dst])                  # [2, E]

    offset_sets = [[1, 2], [1, 3], [2, 3], [1, 4], [2, 5], [3, 4], [1, 5], [2, 4]]
    E = 2 * N
    ekeys = jax.random.split(ke, B)
    adjs, edenses = [], []
    for b in range(B):
        ei = ring_edges(offset_sets[b])
        ea = jax.random.normal(ekeys[b], (E, NBR_FEA_LEN), jnp.float32)
        a, ed = densify_edges(ei, ea, N)
        adjs.append(a)
        edenses.append(ed)
    adj = jnp.stack(adjs)                             # [B, N, N]
    edense = jnp.stack(edenses)                       # [B, N, N, nbr]

    # k-hop (=3) subgraph membership, per graph
    centers = jnp.repeat(jnp.arange(N, dtype=jnp.int32), 3)          # M = 24
    sub_nodes = jnp.stack(
        [(centers + jnp.tile(jnp.array([0, 1, (b % 3) + 1], jnp.int32), N)) % N
         for b in range(B)])                                          # [B, M]
    sub_indicator = jnp.stack([centers] * B)                          # [B, M]

    params = init_params(kp)

    out = sat_layer(x, adj, edense, sub_nodes, sub_indicator, params, block_b=4)
    out = jax.block_until_ready(out)
    assert out.shape == (B, N, ATOM_FEA_LEN)
    assert bool(jnp.all(jnp.isfinite(out)))
    print("KERNEL_OK")
</pallas_src>

<mosaic_0001>
module attributes {stable_mosaic.version = 11 : i64} {
  func.func @sat_layer_kernel(%arg0: i32, %arg1: memref<4x8x32xf32, #tpu.memory_space<vmem>>, %arg2: memref<4x8x8x1xf32, #tpu.memory_space<vmem>>, %arg3: memref<4x8x8x16xf32, #tpu.memory_space<vmem>>, %arg4: memref<4x24x1xi32, #tpu.memory_space<vmem>>, %arg5: memref<4x1x24xi32, #tpu.memory_space<vmem>>, %arg6: memref<32x128xf32, #tpu.memory_space<vmem>>, %arg7: memref<1x128xf32, #tpu.memory_space<vmem>>, %arg8: memref<16x32xf32, #tpu.memory_space<vmem>>, %arg9: memref<32x32xf32, #tpu.memory_space<vmem>>, %arg10: memref<32x32xf32, #tpu.memory_space<vmem>>, %arg11: memref<32x32xf32, #tpu.memory_space<vmem>>, %arg12: memref<8x32xf32, #tpu.memory_space<vmem>>, %arg13: memref<4x8x32xf32, #tpu.memory_space<vmem>>) attributes {dimension_semantics = [#tpu.dimension_semantics<parallel>], iteration_bounds = array<i64: 2>, scalar_prefetch = 0 : i64, scratch_operands = 0 : i64, tpu.core_type = #tpu.core_type<tc>, window_params = [{transform_indices = @transform_0, window_bounds = array<i64: 4, 8, 32>}, {transform_indices = @transform_1, window_bounds = array<i64: 4, 8, 8, 1>}, {transform_indices = @transform_2, window_bounds = array<i64: 4, 8, 8, 16>}, {transform_indices = @transform_3, window_bounds = array<i64: 4, 24, 1>}, {transform_indices = @transform_4, window_bounds = array<i64: 4, 1, 24>}, {pipeline_mode = #tpu.pipeline_mode<synchronous>, transform_indices = @transform_5, window_bounds = array<i64: 32, 128>}, {pipeline_mode = #tpu.pipeline_mode<synchronous>, transform_indices = @transform_6, window_bounds = array<i64: 1, 128>}, {pipeline_mode = #tpu.pipeline_mode<synchronous>, transform_indices = @transform_7, window_bounds = array<i64: 16, 32>}, {pipeline_mode = #tpu.pipeline_mode<synchronous>, transform_indices = @transform_8, window_bounds = array<i64: 32, 32>}, {pipeline_mode = #tpu.pipeline_mode<synchronous>, transform_indices = @transform_9, window_bounds = array<i64: 32, 32>}, {pipeline_mode = #tpu.pipeline_mode<synchronous>, transform_indices = @transform_10, window_bounds = array<i64: 32, 32>}, {pipeline_mode = #tpu.pipeline_mode<synchronous>, transform_indices = @transform_11, window_bounds = array<i64: 8, 32>}, {transform_indices = @transform_12, window_bounds = array<i64: 4, 8, 32>}]} {
    %c0 = arith.constant 0 : index
    %c0_0 = arith.constant 0 : index
    %c0_1 = arith.constant 0 : index
    %0 = vector.load %arg1[%c0, %c0_0, %c0_1] : memref<4x8x32xf32, #tpu.memory_space<vmem>>, vector<4x8x32xf32>
    %c0_2 = arith.constant 0 : index
    %c0_3 = arith.constant 0 : index
    %c0_4 = arith.constant 0 : index
    %c0_5 = arith.constant 0 : index
    %1 = vector.load %arg2[%c0_2, %c0_3, %c0_4, %c0_5] : memref<4x8x8x1xf32, #tpu.memory_space<vmem>>, vector<4x8x8x1xf32>
    %c0_6 = arith.constant 0 : index
    %c0_7 = arith.constant 0 : index
    %c0_8 = arith.constant 0 : index
    %c0_9 = arith.constant 0 : index
    %2 = vector.load %arg3[%c0_6, %c0_7, %c0_8, %c0_9] : memref<4x8x8x16xf32, #tpu.memory_space<vmem>>, vector<4x8x8x16xf32>
    %c0_10 = arith.constant 0 : index
    %c0_11 = arith.constant 0 : index
    %3 = vector.load %arg12[%c0_10, %c0_11] : memref<8x32xf32, #tpu.memory_space<vmem>>, vector<8x32xf32>
    %4 = vector.extract_strided_slice %3 {offsets = [0, 0], sizes = [1, 32], strides = [1, 1]} : vector<8x32xf32> to vector<1x32xf32>
    %5 = vector.extract_strided_slice %3 {offsets = [1, 0], sizes = [1, 32], strides = [1, 1]} : vector<8x32xf32> to vector<1x32xf32>
    %6 = vector.extract_strided_slice %3 {offsets = [2, 0], sizes = [1, 32], strides = [1, 1]} : vector<8x32xf32> to vector<1x32xf32>
    %7 = vector.extract_strided_slice %3 {offsets = [3, 0], sizes = [1, 32], strides = [1, 1]} : vector<8x32xf32> to vector<1x32xf32>
    %8 = vector.extract_strided_slice %3 {offsets = [4, 0], sizes = [1, 32], strides = [1, 1]} : vector<8x32xf32> to vector<1x32xf32>
    %9 = vector.extract_strided_slice %3 {offsets = [5, 0], sizes = [1, 32], strides = [1, 1]} : vector<8x32xf32> to vector<1x32xf32>
    %10 = vector.shape_cast %0 : vector<4x8x32xf32> to vector<32x32xf32>
    %c0_12 = arith.constant 0 : index
    %c0_13 = arith.constant 0 : index
    %11 = vector.load %arg6[%c0_12, %c0_13] : memref<32x128xf32, #tpu.memory_space<vmem>>, vector<32x128xf32>
    %cst = arith.constant dense<0.000000e+00> : vector<32x128xf32>
    %12 = tpu.matmul %10, %11, %cst {dimension_numbers = #tpu.dot_dimension_numbers<[1], [0], [0], [1], [0, 0, 1, 1], [], []>} : vector<32x32xf32>, vector<32x128xf32>, vector<32x128xf32> -> vector<32x128xf32>
    %c0_14 = arith.constant 0 : index
    %c0_15 = arith.constant 0 : index
    %13 = vector.load %arg7[%c0_14, %c0_15] : memref<1x128xf32, #tpu.memory_space<vmem>>, vector<1x128xf32>
    %14 = vector.broadcast %13 : vector<1x128xf32> to vector<32x128xf32>
    %15 = arith.addf %12, %14 : vector<32x128xf32>
    %16 = vector.extract_strided_slice %15 {offsets = [0, 0], sizes = [32, 32], strides = [1, 1]} : vector<32x128xf32> to vector<32x32xf32>
    %17 = vector.shape_cast %16 : vector<32x32xf32> to vector<4x8x32xf32>
    %18 = vector.extract_strided_slice %15 {offsets = [0, 32], sizes = [32, 32], strides = [1, 1]} : vector<32x128xf32> to vector<32x32xf32>
    %19 = vector.shape_cast %18 : vector<32x32xf32> to vector<4x8x32xf32>
    %20 = vector.extract_strided_slice %15 {offsets = [0, 64], sizes = [32, 32], strides = [1, 1]} : vector<32x128xf32> to vector<32x32xf32>
    %21 = vector.shape_cast %20 : vector<32x32xf32> to vector<4x8x32xf32>
    %22 = vector.extract_strided_slice %15 {offsets = [0, 96], sizes = [32, 32], strides = [1, 1]} : vector<32x128xf32> to vector<32x32xf32>
    %23 = vector.shape_cast %22 : vector<32x32xf32> to vector<4x8x32xf32>
    %24 = vector.shape_cast %2 : vector<4x8x8x16xf32> to vector<256x16xf32>
    %c0_16 = arith.constant 0 : index
    %c0_17 = arith.constant 0 : index
    %25 = vector.load %arg8[%c0_16, %c0_17] : memref<16x32xf32, #tpu.memory_space<vmem>>, vector<16x32xf32>
    %cst_18 = arith.constant dense<0.000000e+00> : vector<256x32xf32>
    %26 = tpu.matmul %24, %25, %cst_18 {dimension_numbers = #tpu.dot_dimension_numbers<[1], [0], [0], [1], [0, 0, 1, 1], [], []>} : vector<256x16xf32>, vector<16x32xf32>, vector<256x32xf32> -> vector<256x32xf32>
    %27 = vector.shape_cast %26 : vector<256x32xf32> to vector<4x8x8x32xf32>
    %28 = vector.shape_cast %19 : vector<4x8x32xf32> to vector<4x1x8x32xf32>
    %29 = vector.broadcast %28 : vector<4x1x8x32xf32> to vector<4x8x8x32xf32>
    %30 = arith.addf %29, %27 : vector<4x8x8x32xf32>
    %31 = vector.shape_cast %21 : vector<4x8x32xf32> to vector<4x1x8x32xf32>
    %32 = vector.broadcast %31 : vector<4x1x8x32xf32> to vector<4x8x8x32xf32>
    %33 = arith.addf %32, %27 : vector<4x8x8x32xf32>
    %34 = vector.shape_cast %17 : vector<4x8x32xf32> to vector<4x8x1x32xf32>
    %35 = vector.broadcast %34 : vector<4x8x1x32xf32> to vector<4x8x8x32xf32>
    %36 = arith.mulf %35, %30 : vector<4x8x8x32xf32>
    %37 = vector.shape_cast %36 : vector<4x8x8x32xf32> to vector<256x32xf32>
    %c0_19 = arith.constant 0 : index
    %c0_20 = arith.constant 0 : index
    %38 = vector.load %arg9[%c0_19, %c0_20] : memref<32x32xf32, #tpu.memory_space<vmem>>, vector<32x32xf32>
    %cst_21 = arith.constant dense<0.000000e+00> : vector<256x32xf32>
    %39 = tpu.matmul %37, %38, %cst_21 {dimension_numbers = #tpu.dot_dimension_numbers<[1], [0], [0], [1], [0, 0, 1, 1], [], []>} : vector<256x32xf32>, vector<32x32xf32>, vector<256x32xf32> -> vector<256x32xf32>
    %40 = vector.shape_cast %39 : vector<256x32xf32> to vector<4x8x8x32xf32>
    %41 = vector.broadcast %1 : vector<4x8x8x1xf32> to vector<4x8x8x32xf32>
    %42 = arith.addf %40, %41 : vector<4x8x8x32xf32>
    %cst_22 = arith.constant dense<0xFF800000> : vector<4x8x32xf32>
    %43 = vector.multi_reduction <maximumf>, %42, %cst_22 [2] : vector<4x8x8x32xf32> to vector<4x8x32xf32>
    %44 = vector.shape_cast %43 : vector<4x8x32xf32> to vector<4x8x1x32xf32>
    %cst_23 = arith.constant 0.000000e+00 : f32
    %45 = vector.broadcast %cst_23 : f32 to vector<4x8x1x32xf32>
    %46 = arith.maximumf %44, %45 : vector<4x8x1x32xf32>
    %47 = vector.broadcast %46 : vector<4x8x1x32xf32> to vector<4x8x8x32xf32>
    %48 = arith.subf %42, %47 : vector<4x8x8x32xf32>
    %49 = math.exp %48 : vector<4x8x8x32xf32>
    %cst_24 = arith.constant dense<0.000000e+00> : vector<4x8x32xf32>
    %50 = vector.multi_reduction <add>, %49, %cst_24 [2] : vector<4x8x8x32xf32> to vector<4x8x32xf32>
    %51 = arith.mulf %49, %33 : vector<4x8x8x32xf32>
    %cst_25 = arith.constant dense<0.000000e+00> : vector<4x8x32xf32>
    %52 = vector.multi_reduction <add>, %51, %cst_25 [2] : vector<4x8x8x32xf32> to vector<4x8x32xf32>
    %cst_26 = arith.constant 1.000000e-30 : f32
    %53 = vector.broadcast %cst_26 : f32 to vector<4x8x32xf32>
    %54 = arith.maximumf %50, %53 : vector<4x8x32xf32>
    %55 = tpu.reciprocal %54 {approx = true} : vector<4x8x32xf32> -> vector<4x8x32xf32>
    %56 = arith.mulf %52, %55 : vector<4x8x32xf32>
    %57 = arith.addf %56, %23 : vector<4x8x32xf32>
    %c0_27 = arith.constant 0 : index
    %c0_28 = arith.constant 0 : index
    %c0_29 = arith.constant 0 : index
    %58 = vector.load %arg4[%c0_27, %c0_28, %c0_29] : memref<4x24x1xi32, #tpu.memory_space<vmem>>, vector<4x24x1xi32>
    %c0_30 = arith.constant 0 : index
    %c0_31 = arith.constant 0 : index
    %c0_32 = arith.constant 0 : index
    %59 = vector.load %arg5[%c0_30, %c0_31, %c0_32] : memref<4x1x24xi32, #tpu.memory_space<vmem>>, vector<4x1x24xi32>
    %60 = tpu.iota {dimensions = array<i32: 2>} : vector<4x24x8xi32>
    %61 = vector.broadcast %58 : vector<4x24x1xi32> to vector<4x24x8xi32>
    %62 = arith.cmpi eq, %60, %61 : vector<4x24x8xi32>
    %63 = arith.extui %62 : vector<4x24x8xi1> to vector<4x24x8xi32>
    %64 = arith.sitofp %63 : vector<4x24x8xi32> to vector<4x24x8xf32>
    "tpu.trace_start"() <{level = 10 : i32, message = "bmn,bnf->bmf"}> : () -> ()
    %cst_33 = arith.constant dense<0.000000e+00> : vector<4x24x32xf32>
    %65 = tpu.matmul %64, %0, %cst_33 {dimension_numbers = #tpu.dot_dimension_numbers<[2], [1], [1], [2], [0, 0, 0, 1, 1, 2], [0], [0]>} : vector<4x24x8xf32>, vector<4x8x32xf32>, vector<4x24x32xf32> -> vector<4x24x32xf32>
    "tpu.trace_stop"() : () -> ()
    %66 = vector.shape_cast %65 : vector<4x24x32xf32> to vector<96x32xf32>
    %cst_34 = arith.constant dense<0.000000e+00> : vector<96xf32>
    %67 = vector.multi_reduction <add>, %66, %cst_34 [1] : vector<96x32xf32> to vector<96xf32>
    %68 = vector.shape_cast %67 : vector<96xf32> to vector<96x1xf32>
    %cst_35 = arith.constant 3.200000e+01 : f32
    %69 = vector.broadcast %cst_35 : f32 to vector<96x1xf32>
    %70 = arith.divf %68, %69 : vector<96x1xf32>
    %71 = vector.broadcast %70 : vector<96x1xf32> to vector<96x32xf32>
    %72 = arith.subf %66, %71 : vector<96x32xf32>
    %73 = arith.mulf %72, %72 : vector<96x32xf32>
    %cst_36 = arith.constant dense<0.000000e+00> : vector<96xf32>
    %74 = vector.multi_reduction <add>, %73, %cst_36 [1] : vector<96x32xf32> to vector<96xf32>
    %75 = vector.shape_cast %74 : vector<96xf32> to vector<96x1xf32>
    %cst_37 = arith.constant 3.200000e+01 : f32
    %76 = vector.broadcast %cst_37 : f32 to vector<96x1xf32>
    %77 = arith.divf %75, %76 : vector<96x1xf32>
    %78 = vector.broadcast %70 : vector<96x1xf32> to vector<96x32xf32>
    %79 = arith.subf %66, %78 : vector<96x32xf32>
    %cst_38 = arith.constant 9.99999974E-6 : f32
    %80 = vector.broadcast %cst_38 : f32 to vector<96x1xf32>
    %81 = arith.addf %77, %80 : vector<96x1xf32>
    %82 = math.rsqrt %81 : vector<96x1xf32>
    %83 = vector.broadcast %82 : vector<96x1xf32> to vector<96x32xf32>
    %84 = arith.mulf %79, %83 : vector<96x32xf32>
    %85 = vector.broadcast %4 : vector<1x32xf32> to vector<96x32xf32>
    %86 = arith.mulf %84, %85 : vector<96x32xf32>
    %87 = vector.broadcast %5 : vector<1x32xf32> to vector<96x32xf32>
    %88 = arith.addf %86, %87 : vector<96x32xf32>
    %c0_39 = arith.constant 0 : index
    %c0_40 = arith.constant 0 : index
    %89 = vector.load %arg10[%c0_39, %c0_40] : memref<32x32xf32, #tpu.memory_space<vmem>>, vector<32x32xf32>
    %cst_41 = arith.constant dense<0.000000e+00> : vector<96x32xf32>
    %90 = tpu.matmul %88, %89, %cst_41 {dimension_numbers = #tpu.dot_dimension_numbers<[1], [0], [0], [1], [0, 0, 1, 1], [], []>} : vector<96x32xf32>, vector<32x32xf32>, vector<96x32xf32> -> vector<96x32xf32>
    %91 = vector.broadcast %6 : vector<1x32xf32> to vector<96x32xf32>
    %92 = arith.addf %90, %91 : vector<96x32xf32>
    %93 = arith.negf %92 : vector<96x32xf32>
    %94 = math.exp %93 : vector<96x32xf32>
    %cst_42 = arith.constant 1.000000e+00 : f32
    %95 = vector.broadcast %cst_42 : f32 to vector<96x32xf32>
    %96 = arith.addf %95, %94 : vector<96x32xf32>
    %97 = arith.divf %95, %96 : vector<96x32xf32>
    %98 = arith.mulf %92, %97 : vector<96x32xf32>
    %c0_43 = arith.constant 0 : index
    %c0_44 = arith.constant 0 : index
    %99 = vector.load %arg11[%c0_43, %c0_44] : memref<32x32xf32, #tpu.memory_space<vmem>>, vector<32x32xf32>
    %cst_45 = arith.constant dense<0.000000e+00> : vector<96x32xf32>
    %100 = tpu.matmul %98, %99, %cst_45 {dimension_numbers = #tpu.dot_dimension_numbers<[1], [0], [0], [1], [0, 0, 1, 1], [], []>} : vector<96x32xf32>, vector<32x32xf32>, vector<96x32xf32> -> vector<96x32xf32>
    %101 = vector.broadcast %7 : vector<1x32xf32> to vector<96x32xf32>
    %102 = arith.addf %100, %101 : vector<96x32xf32>
    %103 = vector.shape_cast %102 : vector<96x32xf32> to vector<4x24x32xf32>
    %104 = tpu.iota {dimensions = array<i32: 1>} : vector<4x8x24xi32>
    %105 = vector.broadcast %59 : vector<4x1x24xi32> to vector<4x8x24xi32>
    %106 = arith.cmpi eq, %104, %105 : vector<4x8x24xi32>
    %107 = arith.extui %106 : vector<4x8x24xi1> to vector<4x8x24xi32>
    %108 = arith.sitofp %107 : vector<4x8x24xi32> to vector<4x8x24xf32>
    "tpu.trace_start"() <{level = 10 : i32, message = "bnm,bmf->bnf"}> : () -> ()
    %cst_46 = arith.constant dense<0.000000e+00> : vector<4x8x32xf32>
    %109 = tpu.matmul %108, %103, %cst_46 {dimension_numbers = #tpu.dot_dimension_numbers<[2], [1], [1], [2], [0, 0, 0, 1, 1, 2], [0], [0]>} : vector<4x8x24xf32>, vector<4x24x32xf32>, vector<4x8x32xf32> -> vector<4x8x32xf32>
    "tpu.trace_stop"() : () -> ()
    %cst_47 = arith.constant dense<0.000000e+00> : vector<4x8xf32>
    %110 = vector.multi_reduction <add>, %108, %cst_47 [2] : vector<4x8x24xf32> to vector<4x8xf32>
    %111 = vector.shape_cast %110 : vector<4x8xf32> to vector<4x8x1xf32>
    %cst_48 = arith.constant 1.000000e+00 : f32
    %112 = vector.broadcast %cst_48 : f32 to vector<4x8x1xf32>
    %113 = arith.maximumf %111, %112 : vector<4x8x1xf32>
    %114 = vector.broadcast %113 : vector<4x8x1xf32> to vector<4x8x32xf32>
    %115 = arith.divf %109, %114 : vector<4x8x32xf32>
    %116 = arith.addf %0, %57 : vector<4x8x32xf32>
    %117 = arith.addf %116, %115 : vector<4x8x32xf32>
    %cst_49 = arith.constant dense<0.000000e+00> : vector<4x8xf32>
    %118 = vector.multi_reduction <add>, %117, %cst_49 [2] : vector<4x8x32xf32> to vector<4x8xf32>
    %119 = vector.shape_cast %118 : vector<4x8xf32> to vector<4x8x1xf32>
    %cst_50 = arith.constant 3.200000e+01 : f32
    %120 = vector.broadcast %cst_50 : f32 to vector<4x8x1xf32>
    %121 = arith.divf %119, %120 : vector<4x8x1xf32>
    %122 = vector.broadcast %121 : vector<4x8x1xf32> to vector<4x8x32xf32>
    %123 = arith.subf %117, %122 : vector<4x8x32xf32>
    %124 = arith.mulf %123, %123 : vector<4x8x32xf32>
    %cst_51 = arith.constant dense<0.000000e+00> : vector<4x8xf32>
    %125 = vector.multi_reduction <add>, %124, %cst_51 [2] : vector<4x8x32xf32> to vector<4x8xf32>
    %126 = vector.shape_cast %125 : vector<4x8xf32> to vector<4x8x1xf32>
    %cst_52 = arith.constant 3.200000e+01 : f32
    %127 = vector.broadcast %cst_52 : f32 to vector<4x8x1xf32>
    %128 = arith.divf %126, %127 : vector<4x8x1xf32>
    %129 = vector.broadcast %121 : vector<4x8x1xf32> to vector<4x8x32xf32>
    %130 = arith.subf %117, %129 : vector<4x8x32xf32>
    %cst_53 = arith.constant 9.99999974E-6 : f32
    %131 = vector.broadcast %cst_53 : f32 to vector<4x8x1xf32>
    %132 = arith.addf %128, %131 : vector<4x8x1xf32>
    %133 = math.rsqrt %132 : vector<4x8x1xf32>
    %134 = vector.broadcast %133 : vector<4x8x1xf32> to vector<4x8x32xf32>
    %135 = arith.mulf %130, %134 : vector<4x8x32xf32>
    %136 = vector.shape_cast %8 : vector<1x32xf32> to vector<1x1x32xf32>
    %137 = vector.broadcast %136 : vector<1x1x32xf32> to vector<4x8x32xf32>
    %138 = arith.mulf %135, %137 : vector<4x8x32xf32>
    %139 = vector.shape_cast %9 : vector<1x32xf32> to vector<1x1x32xf32>
    %140 = vector.broadcast %139 : vector<1x1x32xf32> to vector<4x8x32xf32>
    %141 = arith.addf %138, %140 : vector<4x8x32xf32>
    %142 = arith.negf %141 : vector<4x8x32xf32>
    %143 = math.exp %142 : vector<4x8x32xf32>
    %cst_54 = arith.constant 1.000000e+00 : f32
    %144 = vector.broadcast %cst_54 : f32 to vector<4x8x32xf32>
    %145 = arith.addf %144, %143 : vector<4x8x32xf32>
    %146 = arith.divf %144, %145 : vector<4x8x32xf32>
    %147 = arith.mulf %141, %146 : vector<4x8x32xf32>
    %c0_55 = arith.constant 0 : index
    %c0_56 = arith.constant 0 : index
    %c0_57 = arith.constant 0 : index
    %148 = vector.load %arg13[%c0_55, %c0_56, %c0_57] : memref<4x8x32xf32, #tpu.memory_space<vmem>>, vector<4x8x32xf32>
    tpu.vector_store %arg13[%c0_55, %c0_56, %c0_57], %147 {strides = array<i32>} : memref<4x8x32xf32, #tpu.memory_space<vmem>>, vector<4x8x32xf32>,
    return
  }
  func.func @transform_0(%arg0: i32) -> (i32, i32, i32) {
    %c0_i32 = arith.constant 0 : i32
    %c0_i32_0 = arith.constant 0 : i32
    %c0_i32_1 = arith.constant 0 : i32
    return %arg0, %c0_i32, %c0_i32_0 : i32, i32, i32
  }
  func.func @transform_1(%arg0: i32) -> (i32, i32, i32, i32) {
    %c0_i32 = arith.constant 0 : i32
    %c0_i32_0 = arith.constant 0 : i32
    %c0_i32_1 = arith.constant 0 : i32
    %c0_i32_2 = arith.constant 0 : i32
    return %arg0, %c0_i32, %c0_i32_0, %c0_i32_1 : i32, i32, i32, i32
  }
  func.func @transform_2(%arg0: i32) -> (i32, i32, i32, i32) {
    %c0_i32 = arith.constant 0 : i32
    %c0_i32_0 = arith.constant 0 : i32
    %c0_i32_1 = arith.constant 0 : i32
    %c0_i32_2 = arith.constant 0 : i32
    return %arg0, %c0_i32, %c0_i32_0, %c0_i32_1 : i32, i32, i32, i32
  }
  func.func @transform_3(%arg0: i32) -> (i32, i32, i32) {
    %c0_i32 = arith.constant 0 : i32
    %c0_i32_0 = arith.constant 0 : i32
    %c0_i32_1 = arith.constant 0 : i32
    return %arg0, %c0_i32, %c0_i32_0 : i32, i32, i32
  }
  func.func @transform_4(%arg0: i32) -> (i32, i32, i32) {
    %c0_i32 = arith.constant 0 : i32
    %c0_i32_0 = arith.constant 0 : i32
    %c0_i32_1 = arith.constant 0 : i32
    return %arg0, %c0_i32, %c0_i32_0 : i32, i32, i32
  }
  func.func @transform_5(%arg0: i32) -> (i32, i32) {
    %c0_i32 = arith.constant 0 : i32
    %c0_i32_0 = arith.constant 0 : i32
    %c0_i32_1 = arith.constant 0 : i32
    return %c0_i32, %c0_i32_0 : i32, i32
  }
  func.func @transform_6(%arg0: i32) -> (i32, i32) {
    %c0_i32 = arith.constant 0 : i32
    %c0_i32_0 = arith.constant 0 : i32
    %c0_i32_1 = arith.constant 0 : i32
    return %c0_i32, %c0_i32_0 : i32, i32
  }
  func.func @transform_7(%arg0: i32) -> (i32, i32) {
    %c0_i32 = arith.constant 0 : i32
    %c0_i32_0 = arith.constant 0 : i32
    %c0_i32_1 = arith.constant 0 : i32
    return %c0_i32, %c0_i32_0 : i32, i32
  }
  func.func @transform_8(%arg0: i32) -> (i32, i32) {
    %c0_i32 = arith.constant 0 : i32
    %c0_i32_0 = arith.constant 0 : i32
    %c0_i32_1 = arith.constant 0 : i32
    return %c0_i32, %c0_i32_0 : i32, i32
  }
  func.func @transform_9(%arg0: i32) -> (i32, i32) {
    %c0_i32 = arith.constant 0 : i32
    %c0_i32_0 = arith.constant 0 : i32
    %c0_i32_1 = arith.constant 0 : i32
    return %c0_i32, %c0_i32_0 : i32, i32
  }
  func.func @transform_10(%arg0: i32) -> (i32, i32) {
    %c0_i32 = arith.constant 0 : i32
    %c0_i32_0 = arith.constant 0 : i32
    %c0_i32_1 = arith.constant 0 : i32
    return %c0_i32, %c0_i32_0 : i32, i32
  }
  func.func @transform_11(%arg0: i32) -> (i32, i32) {
    %c0_i32 = arith.constant 0 : i32
    %c0_i32_0 = arith.constant 0 : i32
    %c0_i32_1 = arith.constant 0 : i32
    return %c0_i32, %c0_i32_0 : i32, i32
  }
  func.func @transform_12(%arg0: i32) -> (i32, i32, i32) {
    %c0_i32 = arith.constant 0 : i32
    %c0_i32_0 = arith.constant 0 : i32
    %c0_i32_1 = arith.constant 0 : i32
    return %arg0, %c0_i32, %c0_i32_0 : i32, i32, i32
  }
}

</mosaic_0001>

<bundles_post_ra>
// kernel: tpu_custom_call.1
= control target key start
LH: loop header
LB: loop body
LE: loop exit
PB: predicated region body
PF: predicated region fallthrough
CT: control target
= control target key end

     0   :  { %s8118_s0 = inlined_call_operand.vmem [shape: f32[8,8,32], index: 0, kind: input, shape index: {}]   ;;  %s8119_s1 = inlined_call_operand.vmem [shape: f32[8,8,8,1], index: 1, kind: input, shape index: {}]   ;;  %s8120_s2 = inlined_call_operand.vmem [shape: f32[8,8,8,16], index: 2, kind: input, shape index: {}]   ;;  %s8121_s3 = inlined_call_operand.vmem [shape: s32[8,24,1], index: 3, kind: input, shape index: {}]   ;;  %s8122_s4 = inlined_call_operand.vmem [shape: s32[8,1,24], index: 4, kind: input, shape index: {}]   ;;  %s8123_s5 = inlined_call_operand.vmem [shape: f32[32,128], index: 5, kind: input, shape index: {}]   ;;  %s8124_s6 = inlined_call_operand.hbm [shape: f32[1,128], index: 6, kind: input, shape index: {}]   ;;  %s8125_s7 = inlined_call_operand.hbm [shape: f32[16,32], index: 7, kind: input, shape index: {}]   ;;  %s8126_s8 = inlined_call_operand.vmem [shape: f32[32,32], index: 8, kind: input, shape index: {}]   ;;  %s8127_s9 = inlined_call_operand.vmem [shape: f32[32,32], index: 9, kind: input, shape index: {}]   ;;  %s8128_s10 = inlined_call_operand.vmem [shape: f32[32,32], index: 10, kind: input, shape index: {}]   ;;  %s8129_s11 = inlined_call_operand.vmem [shape: f32[8,32], index: 11, kind: input, shape index: {}]   ;;  %s8130_s12 = inlined_call_operand.hbm [shape: f32[8,8,32], index: 12, kind: output, shape index: {}]  }
   0x1   :  { %8235 = sst [smem:[#allocation48_spill]] %s8118_s0 }
   0x2   :  { %17 = vsyncpa [#allocation3], 0 }
   0x3   :  { %18 = vsyncpa [#allocation6], 0 }
   0x4   :  { %19 = vsyncpa [#allocation4], 0 }
   0x5   :  { %21 = vsyncpa [#allocation4 + $0x1], 0  ;;  %s5284_s21 = smov 0   ;;  %s5286_s22 = smov 0  }
   0x6   :  { %s5288_s23 = smov 0   ;;  %s5290_s24 = smov 0  }
   0x7 LB: > { %8236 = sst [smem:[#allocation11_spill]] %s5201_s23  ;;  %s5305_s25 = sadd.s32 4294967295, %s5205_s24   ;;  %s5205_s24 = sphi %s5290_s24, %s8506_s24   ;;  %s5201_s23 = sphi %s5288_s23, %s8503_s23   ;;  %s5197_s22 = sphi %s5286_s22, %s8505_s22   ;;  %s5193_s21 = sphi %s5284_s21, %s8504_s21  }
   0x8   : > { %s4582_s26 = sadd.s32 4294967294, %s5205_s24   ;;  %s5309_s27 = sadd.s32 1, %s5205_s24  }
   0x9   : > { %s311_s28 = sadd.s32 1, %s5201_s23  ;;  %s308_s29 = ssub.s32 %s5205_s24, %s5309_s27 }
   0xa   : > { %p321_p0 = scmp.ne.s32.totalorder %s5201_s23, %s5197_s22  ;;  %p309_p1 = scmp.eq.s32.totalorder %s308_s29, 0 }
   0xb   : > { %p322_p2 = scmp.eq.s32.totalorder %s5305_s25, 1  ;;  %p327_p3 = scmp.ne.s32.totalorder %s5197_s22, %s5193_s21 }
   0xc   : > { %p328_p4 = scmp.eq.s32.totalorder %s4582_s26, 1  ;;  %p4583_p7 = scmp.ge.s32.totalorder %s5205_s24, 1 }
   0xd   : > { %s5320_s30 = scalar_select %p309_p1, %s5201_s23, %s311_s28  }
   0xe   : > { %p5322_p5 = por %p322_p2, %p321_p0  ;;  %p5326_p6 = por %p328_p4, %p327_p3 }
   0xf   : > { %8237 = sst [smem:[#allocation12_spill]] %s5320_s30  ;;  %p335_p8 = scmp.lt.s32.totalorder %s5205_s24, 3 }
  0x10   : > { %p4778_p9 = scmp.eq.s32.totalorder %s5305_s25, 0  ;;  %s350_s18 = sshll.u32 %s8124_s6, 4  ;;  %s351_s18 = int_to_ptr.hbm [resolvable:$true] %s350_s18 }
  0x11   : > { %p5333_p10 = pnand %p4583_p7, %p335_p8  ;;  %s5207_s19 = smov [#allocation2]  }
  0x12   : > { %s352_s20 = sshll.u32 %s5207_s19, 4  ;;  %s361_s29 = sshll.u32 %s8125_s7, 4  ;;  %s353_s20 = int_to_ptr.vmem [resolvable:$true] %s352_s20  ;;  %s362_s29 = int_to_ptr.hbm [resolvable:$true] %s361_s29 }
  0x13   : > { %p4767_p11 = pneg %p5333_p10  ;;  %s5208_s30 = smov [#allocation5]  }
  0x14   : > { %s363_s23 = sshll.u32 %s5208_s30, 4  ;;  %s5209_s16 = smov 128   ;;  %s364_s23 = int_to_ptr.vmem [resolvable:$true] %s363_s23 }
  0x15   : > { %p4768_p12 = pnand %p4778_p9, %p4767_p11  ;;  %s5210_s17 = smov 8  }
  0x16   : > { %438 = sbr.rel (%p5333_p10) target bundleno = 2397 (0x95d), region = 68 }
  0x17   : > { %4770 = dma.hbm_to_vmem [thread:$0]  (!%p4768_p12), %s351_s18, 16, %s353_s20, [#allocation3]  }
  0x18   : > { %4773 = dma.hbm_to_vmem [thread:$0]  (!%p4768_p12), %s362_s29, 256, %s364_s23, [#allocation6], %s5209_s16, %s5209_s16, %s5210_s17  }
  0x1b   : > { %5180 = dma.done.wait (%p4778_p9), [#allocation3], 16  }
  0x1c   : > { %5182 = vsyncadd (%p4778_p9), [#allocation3], 4294967280 }
  0x1d   : > { %5184 = dma.done.wait (%p4778_p9), [#allocation6], 256  }
  0x1e   : > { %5186 = vsyncadd (%p4778_p9), [#allocation6], 4294967040  ;;  %s4591_s30 = sshll.u32 %s5305_s25, 2  ;;  %v5368_v0 = vld [vmem:[#allocation5 + $0x8] sm:$0xff]  ;;  %v5370_v1 = vld [vmem:[#allocation5] sm:$0xff]  ;;  %vm662_vm0 = vcmask 130048  }
  0x1f   : > { %p509_p13 = scmp.lt.s32.totalorder %s4591_s30, 7  ;;  %4750 = vmatpush.msra.mxu1 %v5368_v0  ;;  %v613_v44 = vld [vmem:[%s8123_s5 + $0x18] sm:$0xff]  ;;  %v612_v45 = vld [vmem:[%s8123_s5 + $0x10] sm:$0xff]  ;;  %s8241_s0 = sld [smem:[#allocation48_spill]]  ;;  %v611_v47 = vld [vmem:[%s8123_s5 + $0x8] sm:$0xff]  ;;  %vm618_vm1 = vcmask 261120  }
  0x20   : > { %643 = vmatpush.msra.mxu0 %v613_v44  ;;  %v610_v48 = vld [vmem:[%s8123_s5] sm:$0xff]  ;;  %vm3095_vm2 = vcmask 64512   ;;  %s4749_s17 = sshll.u32 %s5305_s25, 5 }
  0x21   : > { %s8508_s30 = smov (!%p509_p13, %s4591_s30), 7  ;;  %4751 = vmatpush.msra.mxu1 %v5370_v1 }
  0x22   : > { %s8132_s23 = sshll.u32 %s8508_s30, 6  ;;  %644 = vmatpush.msra.mxu0 %v612_v45  ;;  %s4592_s16 = sshll.u32 %s8508_s30, 3 }
  0x23   : > { %s5366_s19 = scalar_lea.vmem %s8120_s2, %s8132_s23  ;;  %s8162_s23 = smov 32  }
  0x24   : > { %v581_v2 = vld [vmem:[%s5366_s19 + $0x20] sm:$0xff]  ;;  %v582_v3 = vld [vmem:[%s5366_s19 + $0x28] sm:$0xff]  ;;  %v583_v4 = vld [vmem:[%s5366_s19 + $0x30] sm:$0xff]  ;;  %645 = vmatpush.msra.mxu0 %v611_v47  ;;  %s4756_s29 = smul.u32 24, %s8508_s30  ;;  %s6479_s28 = scalar_lea.vmem %s8122_s4, %s8508_s30 }
  0x25   : > { %4610 = vmatmul.msk.f32.vlgmr.msra.gmra.mxu1 %vm662_vm0, %v581_v2  ;;  %v584_v5 = vld [vmem:[%s5366_s19 + $0x38] sm:$0xff]  ;;  %v585_v6 = vld [vmem:[%s5366_s19 + $0x40] sm:$0xff]  ;;  %v586_v7 = vld [vmem:[%s5366_s19 + $0x48] sm:$0xff]  ;;  %s5468_s18 = scalar_lea.vmem %s8241_s0, %s4592_s16  ;;  %s8133_s16 = smov 96  }
  0x26   : > { %v587_v8 = vld [vmem:[%s5366_s19 + $0x50] sm:$0xff]  ;;  %v588_v9 = vld [vmem:[%s5366_s19 + $0x58] sm:$0xff]  ;;  %v589_v10 = vld [vmem:[%s5366_s19 + $0x60] sm:$0xff]  ;;  %646 = vmatpush.msra.mxu0 %v610_v48  ;;  %s5557_s20 = scalar_lea.vmem %s8121_s3, %s4756_s29 }
  0x27   : > { %v590_v11 = vld [vmem:[%s5366_s19 + $0x68] sm:$0xff]  ;;  %v591_v12 = vld [vmem:[%s5366_s19 + $0x70] sm:$0xff]  ;;  %v592_v13 = vld [vmem:[%s5366_s19 + $0x78] sm:$0xff] }
  0x28   : > { %v593_v14 = vld [vmem:[%s5366_s19 + $0x80] sm:$0xff]  ;;  %v594_v15 = vld [vmem:[%s5366_s19 + $0x88] sm:$0xff]  ;;  %v595_v16 = vld [vmem:[%s5366_s19 + $0x90] sm:$0xff]  ;;  %773 = vmatpush.msrb.mxu0 %v5368_v0 }
  0x29   : > { %v596_v17 = vld [vmem:[%s5366_s19 + $0x98] sm:$0xff]  ;;  %v597_v19 = vld [vmem:[%s5366_s19 + $0xa0] sm:$0xff]  ;;  %v598_v21 = vld [vmem:[%s5366_s19 + $0xa8] sm:$0xff] }
  0x2a   : > { %v599_v23 = vld [vmem:[%s5366_s19 + $0xb0] sm:$0xff]  ;;  %v600_v25 = vld [vmem:[%s5366_s19 + $0xb8] sm:$0xff]  ;;  %v601_v27 = vld [vmem:[%s5366_s19 + $0xc0] sm:$0xff]  ;;  %774 = vmatpush.msrb.mxu0 %v5370_v1 }
  0x2b   : > { %v602_v29 = vld [vmem:[%s5366_s19 + $0xc8] sm:$0xff]  ;;  %v603_v31 = vld [vmem:[%s5366_s19 + $0xd0] sm:$0xff]  ;;  %v604_v33 = vld [vmem:[%s5366_s19 + $0xd8] sm:$0xff] }
  0x2c   : > { %v605_v35 = vld [vmem:[%s5366_s19 + $0xe0] sm:$0xff]  ;;  %v606_v37 = vld [vmem:[%s5366_s19 + $0xe8] sm:$0xff]  ;;  %v607_v39 = vld [vmem:[%s5366_s19 + $0xf0] sm:$0xff] }
  0x2d   : > { %4611 = vmatmul.msk.f32.gmra.mxu1 %vm662_vm0, %v582_v3  ;;  %v608_v41 = vld [vmem:[%s5366_s19 + $0xf8] sm:$0xff]  ;;  %v5479_v49 = vld [vmem:[%s5468_s18] sm:$0xff]  ;;  %v5488_v51 = vld [vmem:[%s5468_s18 + $0x8] sm:$0xff] }
  0x2e   : > { %4602 = vmatmul.msk.f32.vlgmr.msra.gmra.mxu0 %vm618_vm1, %v5479_v49  ;;  %v543_v53 = vld [vmem:[%s5468_s18 + $0x10] sm:$0xff]  ;;  %v5499_v55 = vld [vmem:[%s5468_s18 + $0x18] sm:$0xff]  ;;  %v577_v61 = vld [vmem:[%s5366_s19] sm:$0xff] }
  0x2f   : > { %3190 = vmatpush.msra.mxu0 %v543_v53  ;;  %v578_v63 = vld [vmem:[%s5366_s19 + $0x8] sm:$0xff]  ;;  %v579_v0 = vld [vmem:[%s5366_s19 + $0x10] sm:$0xff]  ;;  %v3013_v44 = vld [vmem:[%s5557_s20 + $0x40] sm:$0xff] }
  0x30   : > { %v3014_v45 = vld [vmem:[%s5557_s20 + $0x48] sm:$0xff]  ;;  %v1419_v47 = vld [vmem:[%s8126_s8 + $0x18] sm:$0xff]  ;;  %v1418_v48 = vld [vmem:[%s8126_s8 + $0x10] sm:$0xff] }
  0x31   : > { %4752 = vmatpush.msra.mxu3 %v1419_v47  ;;  %1528 = vmatpush.msra.mxu2 %v1419_v47  ;;  %v8140_v47 = vmov 0.0  }
  0x33   : > { %4753 = vmatpush.msra.mxu3 %v1418_v48  ;;  %1529 = vmatpush.msra.mxu2 %v1418_v48 }
  0x35   : > { %4612 = vmatmul.msk.f32.gmra.mxu1 %vm662_vm0, %v583_v4 }
  0x36   : > { %4603 = vmatmul.msk.f32.gmra.mxu0 %vm618_vm1, %v5488_v51 }
  0x3d   : > { %4613 = vmatmul.msk.f32.gmra.mxu1 %vm662_vm0, %v584_v5 }
  0x3e   : > { %4604 = vmatmul.msk.f32.gmra.mxu0 %vm618_vm1, %v543_v53  ;;  %v3016_v53 = vld [vmem:[%s5557_s20 + $0x58] sm:$0xff] }
  0x45   : > { %4614 = vmatmul.msk.f32.gmra.mxu1 %vm662_vm0, %v585_v6 }
  0x46   : > { %4605 = vmatmul.msk.f32.gmra.mxu0 %vm618_vm1, %v5499_v55 }
  0x4d   : > { %4615 = vmatmul.msk.f32.gmra.mxu1 %vm662_vm0, %v586_v7  ;;  %v5543_v7 = vld [vmem:[#allocation2] ss:$0 sm:$0xff] }
  0x4e   : > { %4606 = vmatmul.msk.f32.vlgmr.msrb.gmra.mxu0 %vm662_vm0, %v577_v61 }
  0x55   : > { %4616 = vmatmul.msk.f32.gmra.mxu1 %vm662_vm0, %v587_v8 }
  0x56   : > { %4607 = vmatmul.msk.f32.gmra.mxu0 %vm662_vm0, %v578_v63  ;;  %v1417_v63 = vld [vmem:[%s8126_s8 + $0x8] sm:$0xff] }
  0x57   : > { %4754 = vmatpush.msra.mxu3 %v1417_v63  ;;  %1530 = vmatpush.msra.mxu2 %v1417_v63 }
  0x5d   : > { %4617 = vmatmul.msk.f32.gmra.mxu1 %vm662_vm0, %v588_v9 }
  0x5e   : > { %4608 = vmatmul.msk.f32.gmra.mxu0 %vm662_vm0, %v579_v0  ;;  %v1416_v0 = vld [vmem:[%s8126_s8] sm:$0xff] }
  0x5f   : > { %4755 = vmatpush.msra.mxu3 %v1416_v0  ;;  %1531 = vmatpush.msra.mxu2 %v1416_v0 }
  0x61   : > { %3120 = vmatpush.msrb.mxu3 %v5479_v49 }
  0x65   : > { %4618 = vmatmul.msk.f32.gmra.mxu1 %vm662_vm0, %v589_v10  ;;  %v5212_v10 = vmov 0  }
  0x66   : > { %4829 = vset.pattern.permute.xlu0 %v5212_v10  ;;  %4828 = vset.pattern.permute.xlu2 %v5212_v10 }
  0x67   : > { %4827 = vset.pattern.permute.xlu1 %v5212_v10 }
  0x6d   : > { %4619 = vmatmul.msk.f32.gmra.mxu1 %vm662_vm0, %v590_v11 }
  0x75   : > { %4620 = vmatmul.msk.f32.gmra.mxu1 %vm662_vm0, %v591_v12 }
  0x7d   : > { %4621 = vmatmul.msk.f32.gmra.mxu1 %vm662_vm0, %v592_v13 }
  0x85   : > { %4622 = vmatmul.msk.f32.gmra.mxu1 %vm662_vm0, %v593_v14 }
  0x8d   : > { %4623 = vmatmul.msk.f32.gmra.mxu1 %vm662_vm0, %v594_v15 }
  0x95   : > { %4624 = vmatmul.msk.f32.gmra.mxu1 %vm662_vm0, %v595_v16  ;;  %v3006_v16 = vld [vmem:[%s5557_s20 + $0x8] sm:$0xff] }
  0x9d   : > { %4625 = vmatmul.msk.f32.gmra.mxu1 %vm662_vm0, %v596_v17 }
  0xa2   : > { %v5406_v18 = vpop.f32.mrf.mxu1 }
  0xa5   : > { %4626 = vmatmul.msk.f32.gmra.mxu1 %vm662_vm0, %v597_v19 }
  0xaa   : > { %v5410_v20 = vpop.f32.mrf.mxu1 }
  0xab   : > { %v5539_v5 = vpop.f32.mrf.mxu0 }
  0xad   : > { %4627 = vmatmul.msk.f32.gmra.mxu1 %vm662_vm0, %v598_v21  ;;  %v3007_v21 = vld [vmem:[%s5557_s20 + $0x10] sm:$0xff] }
  0xb2   : > { %v5414_v22 = vpop.f32.mrf.mxu1 }
  0xb3   : > { %v5541_v6 = vpop.f32.mrf.mxu0 }
  0xb5   : > { %4628 = vmatmul.msk.f32.gmra.mxu1 %vm662_vm0, %v599_v23 }
  0xba   : > { %v5418_v24 = vpop.f32.mrf.mxu1 }
  0xbb   : > { %v654_v8 = vpop.f32.mrf.mxu0 }
  0xbc   : > { %v5546_v9 = vadd.f32 %v5543_v7, %v654_v8 }
  0xbd   : > { %4629 = vmatmul.msk.f32.gmra.mxu1 %vm662_vm0, %v600_v25 }
  0xbe   : > { %8247 = vst [vmem:[#allocation18_spill] sm:$0xff] %v5546_v9 }
  0xc2   : > { %v5422_v26 = vpop.f32.mrf.mxu1 }
  0xc3   : > { %v657_v11 = vpop.f32.mrf.mxu0 }
  0xc4   : > { %v5549_v12 = vadd.f32 %v5543_v7, %v657_v11 }
  0xc5   : > { %4630 = vmatmul.msk.f32.gmra.mxu1 %vm662_vm0, %v601_v27  ;;  %v3005_v27 = vld [vmem:[%s5557_s20] sm:$0xff] }
  0xc6   : > { %8248 = vst [vmem:[#allocation19_spill] sm:$0xff] %v5549_v12  ;;  %v8137_v11 = vrot.slane %v5549_v12, 3 }
  0xc8   : > { %v1219_v49 = vperm.slane %v8137_v11, 0 }
  0xca   : > { %v5426_v28 = vpop.f32.mrf.mxu1 }
  0xcd   : > { %4631 = vmatmul.msk.f32.gmra.mxu1 %vm662_vm0, %v602_v29  ;;  %v3012_v29 = vld [vmem:[%s5557_s20 + $0x38] sm:$0xff] }
  0xd2   : > { %v5430_v30 = vpop.f32.mrf.mxu1 }
  0xd5   : > { %4632 = vmatmul.msk.f32.gmra.mxu1 %vm662_vm0, %v603_v31 }
  0xda   : > { %v5434_v32 = vpop.f32.mrf.mxu1 }
  0xdd   : > { %4633 = vmatmul.msk.f32.gmra.mxu1 %vm662_vm0, %v604_v33  ;;  %v3008_v33 = vld [vmem:[%s5557_s20 + $0x18] sm:$0xff] }
  0xe2   : > { %v5438_v34 = vpop.f32.mrf.mxu1 }
  0xe5   : > { %4634 = vmatmul.msk.f32.gmra.mxu1 %vm662_vm0, %v605_v35  ;;  %v3009_v35 = vld [vmem:[%s5557_s20 + $0x20] sm:$0xff] }
  0xea   : > { %v5442_v36 = vpop.f32.mrf.mxu1 }
  0xed   : > { %4635 = vmatmul.msk.f32.gmra.mxu1 %vm662_vm0, %v606_v37  ;;  %v3010_v37 = vld [vmem:[%s5557_s20 + $0x28] sm:$0xff] }
  0xf2   : > { %v5446_v38 = vpop.f32.mrf.mxu1 }
  0xf5   : > { %4636 = vmatmul.msk.f32.gmra.mxu1 %vm662_vm0, %v607_v39  ;;  %v3011_v39 = vld [vmem:[%s5557_s20 + $0x30] sm:$0xff] }
  0xfa   : > { %v5450_v40 = vpop.f32.mrf.mxu1 }
  0xfd   : > { %4637 = vmatmul.msk.f32.gmra.mxu1 %vm662_vm0, %v608_v41  ;;  %v5573_v41 = vpop.f32.mrf.mxu0 }
 0x102   : > { %v5454_v42 = vpop.f32.mrf.mxu1 }
 0x105   : > { %v5584_v61 = vpop.f32.mrf.mxu0 }
 0x10a   : > { %v5456_v43 = vpop.f32.mrf.mxu1 }
 0x10d   : > { %v5599_v8 = vpop.f32.mrf.mxu0 }
 0x112   : > { %v5470_v46 = vpop.f32.mrf.mxu1 }
 0x11a   : > { %v5485_v50 = vpop.f32.mrf.mxu1 }
 0x122   : > { %v5492_v52 = vpop.f32.mrf.mxu1 }
 0x12a   : > { %v5496_v54 = vpop.f32.mrf.mxu1 }
 0x132   : > { %v5503_v56 = vpop.f32.mrf.mxu1 }
 0x13a   : > { %v5505_v57 = vpop.f32.mrf.mxu1 }
 0x142   : > { %v5507_v58 = vpop.f32.mrf.mxu1 }
 0x143   : > { %8242 = vst [vmem:[#allocation13_spill] sm:$0xff] %v5507_v58 }
 0x14a   : > { %v5509_v59 = vpop.f32.mrf.mxu1 }
 0x152   : > { %v5511_v60 = vpop.f32.mrf.mxu1 }
 0x153   : > { %8243 = vst [vmem:[#allocation14_spill] sm:$0xff] %v5511_v60 }
 0x15a   : > { %v5515_v62 = vpop.f32.mrf.mxu1 }
 0x15b   : > { %958 = vrot.lane.b32.xlu0 %v5515_v62, %s8162_s23 }
 0x162   : > { %v5522_v1 = vpop.f32.mrf.mxu1 }
 0x163   : > { %8244 = vst [vmem:[#allocation15_spill] sm:$0xff] %v5522_v1  ;;  %960 = vrot.lane.b32.xlu0 %v5522_v1, %s8162_s23 }
 0x16a   : > { %v5527_v2 = vpop.f32.mrf.mxu1 }
 0x16b   : > { %962 = vrot.lane.b32.xlu1 %v5527_v2, %s8162_s23 }
 0x172   : > { %v5531_v3 = vpop.f32.mrf.mxu1 }
 0x173   : > { %8245 = vst [vmem:[#allocation16_spill] sm:$0xff] %v5531_v3  ;;  %964 = vrot.lane.b32.xlu1 %v5531_v3, %s8162_s23 }
 0x17a   : > { %v5535_v4 = vpop.f32.mrf.mxu1 }
 0x17b   : > { %8246 = vst [vmem:[#allocation17_spill] sm:$0xff] %v5535_v4  ;;  %966 = vrot.lane.b32.xlu2 %v5535_v4, %s8162_s23 }
 0x1cd   : > { %v959_v13 = vpop.permute.xlu0 %958 }
 0x1ce   : > { %v1027_v14 = vadd.f32 %v959_v13, %v5549_v12 }
 0x1d0   : > { %1342 = vrot.lane.b32.xlu2 %v1027_v14, %s8133_s16 }
 0x1d5   : > { %v961_v15 = vpop.permute.xlu0 %960  ;;  %v5605_v10 = vpop.permute.xlu2 %966 }
 0x1d6   : > { %v1028_v17 = vadd.f32 %v961_v15, %v5549_v12  ;;  %v580_v15 = vld [vmem:[%s5366_s19 + $0x18] sm:$0xff]  ;;  %s8250_s19 = smov 96  }
 0x1d7   : > { %4609 = vmatmul.msk.f32.gmra.mxu0 %vm662_vm0, %v580_v15 }
 0x1d8   : > { %1344 = vrot.lane.b32.xlu0 %v1028_v17, %s8133_s16  ;;  %3027 = vperm.xlu2 %4828, %v3006_v16  }
 0x1dd   : > { %v963_v19 = vpop.permute.xlu1 %962 }
 0x1de   : > { %v1029_v23 = vadd.f32 %v963_v19, %v5549_v12  ;;  %v8138_v19 = vrot.slane %v5549_v12, 4 }
 0x1e0   : > { %1346 = vrot.lane.b32.xlu1 %v1029_v23, %s8133_s16  ;;  %3030 = vperm.xlu0 %4829, %v3007_v21   ;;  %v1220_v21 = vperm.slane %v8138_v19, 0 }
 0x1e5   : > { %v965_v25 = vpop.permute.xlu1 %964 }
 0x1e6   : > { %v1030_v31 = vadd.f32 %v965_v25, %v5549_v12 }
 0x1e8   : > { %3024 = vperm.xlu1 %4827, %v3005_v27   ;;  %3045 = vperm.xlu0 %4829, %v3012_v29   ;;  %v8136_v29 = vrot.slane %v5549_v12, 5 }
 0x1e9   : > { %1348 = vrot.lane.b32.xlu2 %v1030_v31, %s8133_s16  ;;  %s5216_s16 = smov 64  }
 0x1ea   : > { %v1221_v31 = vperm.slane %v8136_v29, 0 }
 0x1f0   : > { %3033 = vperm.xlu1 %4827, %v3008_v33  }
 0x1f1   : > { %3036 = vperm.xlu2 %4828, %v3009_v35  }
 0x1f8   : > { %3039 = vperm.xlu1 %4827, %v3010_v37  }
 0x1f9   : > { %3042 = vperm.xlu2 %4828, %v3011_v39  }
 0x200   : > { %3048 = vperm.xlu1 %4827, %v3013_v44  }
 0x201   : > { %3051 = vperm.xlu2 %4828, %v3014_v45   ;;  %v8135_v45 = vrot.slane %v5549_v12, 6 }
 0x208   : > { %3057 = vperm.xlu1 %4827, %v3016_v53   ;;  %v1222_v53 = vperm.slane %v8135_v45, 0  ;;  %v5215_v45 = vmov 32.0  }
 0x209   : > { %906 = vrot.lane.b32.xlu2 %v5584_v61, %s8162_s23  ;;  %4835 = vrcp.f32 %v5215_v45 }
 0x210   : > { %904 = vrot.lane.b32.xlu1 %v5573_v41, %s8162_s23 }
 0x211   : > { %924 = vrot.lane.b32.xlu2 %v5430_v30, %s8162_s23 }
 0x218   : > { %908 = vrot.lane.b32.xlu1 %v5599_v8, %s8162_s23 }
 0x220   : > { %914 = vrot.lane.b32.xlu1 %v5410_v20, %s8162_s23 }
 0x228   : > { %918 = vrot.lane.b32.xlu1 %v5418_v24, %s8162_s23 }
 0x22a   : > { %v1343_v13 = vpop.permute.xlu2 %1342 }
 0x22b   : > { %v1411_v14 = vmul.f32 %v1343_v13, %v1219_v49 }
 0x22d   : > { %4665 = vmatmul.msk.f32.vlgmr.msra.gmra.mxu3 %vm618_vm1, %v1411_v14 }
 0x22e   : > { %3155 = vmatpush.msra.mxu3 %v5488_v51  ;;  %v8139_v51 = vlaneseq }
 0x230   : > { %922 = vrot.lane.b32.xlu1 %v5426_v28, %s8162_s23  ;;  %v5630_v33 = vand.u32 127, %v8139_v51 }
 0x232   : > { %v5618_v16 = vpop.permute.xlu2 %3027 }
 0x233   : > { %vm3060_vm8 = vcmp.eq.s32.totalorder %v5630_v33, %v5618_v16 }
 0x243   : > { %v1349_v17 = vpop.permute.xlu2 %1348 }
 0x244   : > { %v1414_v49 = vmul.f32 %v1349_v17, %v1222_v53 }
 0x24a   : > { %v1345_v23 = vpop.permute.xlu0 %1344 }
 0x24b   : > { %v1412_v25 = vmul.f32 %v1345_v23, %v1220_v21  ;;  %v5623_v27 = vpop.permute.xlu2 %3036 }
 0x24c   : > { %vm3063_vm11 = vcmp.eq.s32.totalorder %v5630_v33, %v5623_v27 }
 0x24d   : > { %4666 = vmatmul.msk.f32.gmra.mxu3 %vm618_vm1, %v1412_v25  ;;  %v5658_v25 = vadd.f32 %v5543_v7, %v5539_v5 }
 0x24f   : > { %8249 = vst [vmem:[#allocation20_spill] sm:$0xff] %v5658_v25 }
 0x252   : > { %v1347_v35 = vpop.permute.xlu1 %1346  ;;  %v5632_v37 = vpop.permute.xlu0 %3030 }
 0x253   : > { %v1413_v39 = vmul.f32 %v1347_v35, %v1221_v31  ;;  %v3043_v44 = vpop.permute.xlu2 %3042  ;;  %vm3061_vm9 = vcmp.eq.s32.totalorder %v5630_v33, %v5632_v37 }
 0x254   : > { %vm3065_vm3 = vcmp.eq.s32.totalorder %v5630_v33, %v3043_v44  ;;  %v5674_v53 = vpop.f32.mrf.mxu0 }
 0x255   : > { %v4676_v48 = vsel %vm3065_vm3, 1.0, %v8140_v47  ;;  %4667 = vmatmul.msk.f32.gmra.mxu3 %vm618_vm1, %v1413_v39 }
 0x256   : > { %4688 = vmatmul.msk.f32.vlgmr.msra.gmra.mxu0 %vm3095_vm2, %v4676_v48 }
 0x25a   : > { %v5641_v63 = vpop.permute.xlu1 %3024  ;;  %v3046_v0 = vpop.permute.xlu0 %3045 }
 0x25b   : > { %vm3066_vm4 = vcmp.eq.s32.totalorder %v5630_v33, %v3046_v0  ;;  %vm3059_vm7 = vcmp.eq.s32.totalorder %v5630_v33, %v5641_v63 }
 0x25c   : > { %v4677_v13 = vsel %vm3066_vm4, 1.0, %v8140_v47 }
 0x25d   : > { %4668 = vmatmul.msk.f32.gmra.mxu3 %vm618_vm1, %v1414_v49 }
 0x25e   : > { %4689 = vmatmul.msk.f32.gmra.mxu0 %vm3095_vm2, %v4677_v13 }
 0x262   : > { %v5647_v14 = vpop.permute.xlu1 %3033 }
 0x263   : > { %vm3062_vm10 = vcmp.eq.s32.totalorder %v5630_v33, %v5647_v14 }
 0x26a   : > { %v5649_v15 = vpop.permute.xlu1 %3039 }
 0x26b   : > { %vm3064_vm12 = vcmp.eq.s32.totalorder %v5630_v33, %v5649_v15 }
 0x272   : > { %v3049_v21 = vpop.permute.xlu1 %3048 }
 0x273   : > { %vm3067_vm5 = vcmp.eq.s32.totalorder %v5630_v33, %v3049_v21 }
 0x274   : > { %v4678_v23 = vsel %vm3067_vm5, 1.0, %v8140_v47 }
 0x275   : > { %4690 = vmatmul.msk.f32.gmra.mxu0 %vm3095_vm2, %v4678_v23 }
 0x27a   : > { %v5654_v17 = vpop.permute.xlu1 %3057 }
 0x27b   : > { %vm3070_vm15 = vcmp.eq.s32.totalorder %v5630_v33, %v5654_v17 }
 0x282   : > { %v905_v31 = vpop.permute.xlu1 %904 }
 0x283   : > { %v1000_v35 = vadd.f32 %v905_v31, %v5658_v25 }
 0x285   : > { %1288 = vrot.lane.b32.xlu1 %v1000_v35, %s8250_s19 }
 0x28a   : > { %v909_v39 = vpop.permute.xlu1 %908 }
 0x28b   : > { %v1002_v44 = vadd.f32 %v909_v39, %v5658_v25 }
 0x28d   : > { %1292 = vrot.lane.b32.xlu2 %v1002_v44, %s8250_s19  ;;  %930 = vrot.lane.b32.xlu1 %v5442_v36, %s8162_s23  ;;  %v1192_v44 = vperm.slane %v5658_v25, 0 }
 0x292   : > { %v915_v5 = vpop.permute.xlu1 %914 }
 0x293   : > { %v1005_v48 = vadd.f32 %v915_v5, %v5658_v25 }
 0x295   : > { %932 = vrot.lane.b32.xlu1 %v5446_v38, %s8162_s23 }
 0x29a   : > { %v5678_v23 = vpop.permute.xlu1 %918 }
 0x29d   : > { %936 = vrot.lane.b32.xlu1 %v5454_v42, %s8162_s23 }
 0x2a2   : > { %v5680_v31 = vpop.permute.xlu1 %922 }
 0x2a5   : > { %940 = vrot.lane.b32.xlu1 %v5470_v46, %s8162_s23 }
 0x2ad   : > { %1298 = vrot.lane.b32.xlu1 %v1005_v48, %s8250_s19 }
 0x2d3   : > { %v3192_v0 = vpop.f32.mrf.mxu0 }
 0x2d4   : > { %v3254_v49 = vsel %vm618_vm1, %v3192_v0, 0.0 }
 0x2d5   : > { %3255 = vadd.xlane.f32.xlu0 %v3254_v49  ;;  %v4836_v49 = vpop.eup %4835 }
 0x2d6   : > { %v3273_v29 = vmul.f32 32.0, %v4836_v49  ;;  %vm3277_vm6 = vweird.f32 %v4836_v49 }
 0x2d8   : > { %v3274_v11 = vsub.f32 1.0, %v3273_v29 }
 0x2db   : > { %v3195_v13 = vpop.f32.mrf.mxu0 }
 0x2dc   : > { %v3257_v21 = vsel %vm618_vm1, %v3195_v13, 0.0 }
 0x2dd   : > { %3258 = vadd.xlane.f32.xlu0 %v3257_v21  ;;  %v3275_v21 = vmul.f32 %v4836_v49, %v3274_v11 }
 0x2df   : > { %v3276_v19 = vadd.f32 %v4836_v49, %v3275_v21 }
 0x2e1   : > { %v5685_v51 = vsel %vm3277_vm6, %v4836_v49, %v3276_v19 }
 0x2e2   : > { %8251 = vst [vmem:[#allocation21_spill] sm:$0xff] %v5685_v51 }
 0x2f2   : > { %v3198_v35 = vpop.f32.mrf.mxu0 }
 0x2f3   : > { %v3260_v39 = vsel %vm618_vm1, %v3198_v35, 0.0 }
 0x2f4   : > { %3261 = vadd.xlane.f32.xlu0 %v3260_v39 }
 0x2f7   : > { %v1289_v5 = vpop.permute.xlu1 %1288 }
 0x2f8   : > { %v1384_v48 = vmul.f32 %v1289_v5, %v1192_v44 }
 0x2fa   : > { %4638 = vmatmul.msk.f32.vlgmr.msra.gmra.mxu2 %vm618_vm1, %v1384_v48 }
 0x348   : > { %v3256_v47 = vpop.xlane.xlu0 %3255 }
 0x349   : > { %v3285_v4 = vmul.f32 %v5685_v51, %v3256_v47 }
 0x34b   : > { %v5688_v39 = vsub.f32 %v3192_v0, %v3285_v4 }
 0x34d   : > { %v3309_v44 = vmul.f32 %v5688_v39, %v5688_v39 }
 0x34f   : > { %v3333_v5 = vsel %vm618_vm1, %v3309_v44, 0.0  ;;  %v3015_v44 = vld [vmem:[%s5557_s20 + $0x50] sm:$0xff]  ;;  %s8264_s20 = sshll.u32 %s8508_s30, 6 }
 0x350   : > { %v3259_v45 = vpop.xlane.xlu0 %3258  ;;  %3334 = vadd.xlane.f32.xlu0 %v3333_v5  ;;  %s6148_s15 = scalar_lea.vmem %s8119_s1, %s8264_s20 }
 0x351   : > { %v3286_v29 = vmul.f32 %v5685_v51, %v3259_v45 }
 0x353   : > { %v5694_v11 = vsub.f32 %v3195_v13, %v3286_v29  ;;  %v1031_v13 = vadd.f32 %v5605_v10, %v5549_v12 }
 0x355   : > { %v3310_v19 = vmul.f32 %v5694_v11, %v5694_v11 }
 0x357   : > { %v3336_v48 = vsel %vm618_vm1, %v3310_v19, 0.0 }
 0x358   : > { %3337 = vadd.xlane.f32.xlu0 %v3336_v48 }
 0x367   : > { %v3262_v4 = vpop.xlane.xlu0 %3261 }
 0x368   : > { %v3287_v47 = vmul.f32 %v5685_v51, %v3262_v4 }
 0x36a   : > { %v5700_v0 = vsub.f32 %v3198_v35, %v3287_v47  ;;  %v5719_v35 = vpop.permute.xlu2 %3051 }
 0x36b   : > { %vm3068_vm13 = vcmp.eq.s32.totalorder %v5630_v33, %v5719_v35  ;;  %v8144_v35 = vrot.slane %v5658_v25, 3 }
 0x36c   : > { %8252 = vst [vmem:[#allocation22_spill] sm:$0xff] %v5700_v0  ;;  %v3311_v49 = vmul.f32 %v5700_v0, %v5700_v0 }
 0x36e   : > { %v3339_v21 = vsel %vm618_vm1, %v3311_v49, 0.0 }
 0x36f   : > { %3340 = vadd.xlane.f32.xlu0 %v3339_v21 }
 0x372   : > { %v907_v5 = vpop.permute.xlu2 %906 }
 0x373   : > { %v1001_v45 = vadd.f32 %v907_v5, %v5658_v25 }
 0x383   : > { %3054 = vperm.xlu0 %4829, %v3015_v44   ;;  %v8143_v44 = vrot.slane %v5549_v12, 7 }
 0x38b   : > { %910 = vrot.lane.b32.xlu0 %v5674_v53, %s8162_s23 }
 0x393   : > { %912 = vrot.lane.b32.xlu0 %v5406_v18, %s8162_s23 }
 0x39b   : > { %1350 = vrot.lane.b32.xlu0 %v1031_v13, %s8250_s19  ;;  %v1223_v13 = vperm.slane %v8143_v44, 0 }
 0x3a3   : > { %916 = vrot.lane.b32.xlu0 %v5414_v22, %s8162_s23 }
 0x3ab   : > { %920 = vrot.lane.b32.xlu0 %v5422_v26, %s8162_s23 }
 0x3b3   : > { %926 = vrot.lane.b32.xlu0 %v5434_v32, %s8162_s23 }
 0x3bb   : > { %928 = vrot.lane.b32.xlu0 %v5438_v34, %s8162_s23 }
 0x3c3   : > { %1290 = vrot.lane.b32.xlu0 %v1001_v45, %s8250_s19  ;;  %v5729_v10 = vpop.xlane.xlu0 %3334 }
 0x3cb   : > { %934 = vrot.lane.b32.xlu0 %v5450_v40, %s8162_s23  ;;  %v5735_v29 = vpop.xlane.xlu0 %3337 }
 0x3d3   : > { %938 = vrot.lane.b32.xlu0 %v5456_v43, %s8162_s23 }
 0x3db   : > { %942 = vrot.lane.b32.xlu0 %v5485_v50, %s8162_s23 }
 0x3e2   : > { %v5739_v19 = vpop.xlane.xlu0 %3340 }
 0x3e3   : > { %946 = vrot.lane.b32.xlu0 %v5496_v54, %s8162_s23 }
 0x3eb   : > { %950 = vrot.lane.b32.xlu0 %v5505_v57, %s8162_s23 }
 0x3f5   : > { %v5741_v48 = vpop.permute.xlu0 %3054 }
 0x3f6   : > { %vm3069_vm14 = vcmp.eq.s32.totalorder %v5630_v33, %v5741_v48 }
 0x3fd   : > { %v911_v4 = vpop.permute.xlu0 %910 }
 0x3fe   : > { %v1003_v47 = vadd.f32 %v911_v4, %v5658_v25 }
 0x400   : > { %1294 = vrot.lane.b32.xlu2 %v1003_v47, %s8250_s19 }
 0x405   : > { %v913_v49 = vpop.permute.xlu0 %912 }
 0x406   : > { %v1004_v21 = vadd.f32 %v913_v49, %v5658_v25  ;;  %v8253_v49 = vmov 0.0  }
 0x407   : > { %v4673_v37 = vsel %vm3062_vm10, 1.0, %v8253_v49  ;;  %v4674_v14 = vsel %vm3063_vm11, 1.0, %v8253_v49 }
 0x408   : > { %1296 = vrot.lane.b32.xlu2 %v1004_v21, %s8250_s19  ;;  %v4670_v21 = vsel %vm3059_vm7, 1.0, %v8253_v49 }
 0x40d   : > { %v1351_v5 = vpop.permute.xlu0 %1350 }
 0x40e   : > { %v1415_v45 = vmul.f32 %v1351_v5, %v1223_v13  ;;  %v5764_v13 = vadd.f32 %v5543_v7, %v5541_v6  ;;  %v4672_v7 = vsel %vm3061_vm9, 1.0, %v8253_v49 }
 0x410   : > { %4669 = vmatmul.msk.f32.gmra.mxu3 %vm618_vm1, %v1415_v45  ;;  %944 = vrot.lane.b32.xlu2 %v5492_v52, %s8162_s23  ;;  %v1007_v45 = vadd.f32 %v5678_v23, %v5658_v25  ;;  %v1009_v6 = vadd.f32 %v5680_v31, %v5764_v13  ;;  %v8147_v23 = vrot.slane %v5658_v25, 1  ;;  %v5797_v31 = vpop.permute.xlu2 %924  ;;  %v1200_v1 = vperm.slane %v5764_v13, 0 }
 0x415   : > { %v917_v4 = vpop.permute.xlu0 %916 }
 0x416   : > { %v1006_v47 = vadd.f32 %v917_v4, %v5658_v25  ;;  %v4671_v4 = vsel %vm3060_vm8, 1.0, %v8253_v49 }
 0x418   : > { %4682 = vmatmul.msk.f32.vlgmr.msrb.gmra.mxu3 %vm3095_vm2, %v4670_v21  ;;  %948 = vrot.lane.b32.xlu2 %v5503_v56, %s8162_s23 }
 0x419   : > { %1300 = vrot.lane.b32.xlu1 %v1006_v47, %s8250_s19  ;;  %3225 = vmatpush.msrb.mxu3 %v5499_v55  ;;  %v1193_v47 = vperm.slane %v8147_v23, 0  ;;  %v8154_v23 = vrot.slane %v5658_v25, 7 }
 0x41d   : > { %v921_v63 = vpop.permute.xlu0 %920 }
 0x41e   : > { %v1008_v5 = vadd.f32 %v921_v63, %v5764_v13 }
 0x420   : > { %4683 = vmatmul.msk.f32.gmra.mxu3 %vm3095_vm2, %v4671_v4  ;;  %952 = vrot.lane.b32.xlu2 %v5507_v58, %s8162_s23 }
 0x421   : > { %1304 = vrot.lane.b32.xlu0 %v1008_v5, %s8250_s19  ;;  %1302 = vrot.lane.b32.xlu1 %v1007_v45, %s8250_s19  ;;  %v8148_v5 = vrot.slane %v5658_v25, 2  ;;  %v1293_v45 = vpop.permute.xlu2 %1292 }
 0x423   : > { %v1194_v27 = vperm.slane %v8148_v5, 0 }
 0x425   : > { %v5779_v55 = vpop.permute.xlu0 %926  ;;  %v1386_v4 = vmul.f32 %v1293_v45, %v1194_v27  ;;  %v8145_v27 = vrot.slane %v5658_v25, 4 }
 0x427   : > { %v1196_v33 = vperm.slane %v8145_v27, 0  ;;  %v8150_v27 = vrot.slane %v5658_v25, 6 }
 0x428   : > { %4684 = vmatmul.msk.f32.gmra.mxu3 %vm3095_vm2, %v4672_v7  ;;  %956 = vrot.lane.b32.xlu2 %v5511_v60, %s8162_s23  ;;  %v5812_v7 = vpop.permute.xlu1 %930 }
 0x429   : > { %1306 = vrot.lane.b32.xlu0 %v1009_v6, %s8250_s19  ;;  %954 = vrot.lane.b32.xlu1 %v5509_v59, %s8162_s23  ;;  %v4675_v6 = vsel %vm3064_vm12, 1.0, %v8253_v49  ;;  %s505_s23 = sand.u32 1, %s5197_s22  }
 0x42a   : > { %s4590_s20 = sshll.u32 %s505_s23, 5  ;;  %s4438_s25 = scalar_lea.sflag [#allocation4], %s505_s23 }
 0x42b   : > { %s8067_s29 = scalar_lea.vmem [#allocation7], %s4590_s20 }
 0x42c   : > { %s4450_s30 = sshll.u32 %s8067_s29, 4  ;;  %s4451_s30 = int_to_ptr.vmem [resolvable:$true] %s4450_s30 }
 0x42d   : > { %v5792_v16 = vpop.permute.xlu0 %928 }
 0x430   : > { %4685 = vmatmul.msk.f32.vlgmr.msra.gmra.mxu3 %vm3095_vm2, %v4673_v37  ;;  %v4679_v37 = vsel %vm3068_vm13, 1.0, %v8253_v49  ;;  %v5820_v15 = vpop.permute.xlu1 %932 }
 0x435   : > { %v1291_v21 = vpop.permute.xlu0 %1290 }
 0x436   : > { %v1385_v63 = vmul.f32 %v1291_v21, %v1193_v47  ;;  %v4680_v47 = vsel %vm3069_vm14, 1.0, %v8253_v49 }
 0x438   : > { %4639 = vmatmul.msk.f32.gmra.mxu2 %vm618_vm1, %v1385_v63  ;;  %4686 = vmatmul.msk.f32.gmra.mxu3 %vm3095_vm2, %v4674_v14  ;;  %v5828_v21 = vpop.permute.xlu1 %936  ;;  %v4681_v63 = vsel %vm3070_vm15, 1.0, %v8253_v49  ;;  %v1195_v14 = vperm.slane %v8144_v35, 0 }
 0x440   : > { %4640 = vmatmul.msk.f32.gmra.mxu2 %vm618_vm1, %v1386_v4  ;;  %4687 = vmatmul.msk.f32.gmra.mxu3 %vm3095_vm2, %v4675_v6  ;;  %v5837_v4 = vpop.permute.xlu1 %940 }
 0x448   : > { %4691 = vmatmul.msk.f32.vlgmr.msrb.gmra.mxu3 %vm3095_vm2, %v4679_v37  ;;  %v8146_v37 = vrot.slane %v5658_v25, 5 }
 0x450   : > { %4692 = vmatmul.msk.f32.gmra.mxu3 %vm3095_vm2, %v4680_v47  ;;  %v5843_v47 = vpop.permute.xlu0 %934 }
 0x458   : > { %4693 = vmatmul.msk.f32.gmra.mxu3 %vm3095_vm2, %v4681_v63  ;;  %v1299_v63 = vpop.permute.xlu1 %1298  ;;  %v5850_v44 = vpop.permute.xlu0 %938 }
 0x45a   : > { %v1295_v45 = vpop.permute.xlu2 %1294 }
 0x45b   : > { %v1387_v48 = vmul.f32 %v1295_v45, %v1195_v14  ;;  %v1197_v14 = vperm.slane %v8146_v37, 0  ;;  %v1198_v37 = vperm.slane %v8150_v27, 0 }
 0x45d   : > { %4641 = vmatmul.msk.f32.gmra.mxu2 %vm618_vm1, %v1387_v48  ;;  %v1389_v45 = vmul.f32 %v1299_v63, %v1197_v14  ;;  %v5848_v48 = vpop.f32.mrf.mxu3 }
 0x45e   : > { %8254 = vst [vmem:[#allocation23_spill] sm:$0xff] %v5848_v48  ;;  %v1199_v48 = vperm.slane %v8154_v23, 0 }
 0x462   : > { %v1297_v17 = vpop.permute.xlu2 %1296 }
 0x463   : > { %v1388_v6 = vmul.f32 %v1297_v17, %v1196_v33  ;;  %v5854_v33 = vpop.permute.xlu0 %942 }
 0x465   : > { %4642 = vmatmul.msk.f32.gmra.mxu2 %vm618_vm1, %v1388_v6  ;;  %v5852_v35 = vpop.f32.mrf.mxu3 }
 0x466   : > { %8255 = vst [vmem:[#allocation24_spill] sm:$0xff] %v5852_v35 }
 0x46b   : > { %v5858_v6 = vpop.permute.xlu0 %946 }
 0x46d   : > { %4643 = vmatmul.msk.f32.gmra.mxu2 %vm618_vm1, %v1389_v45  ;;  %v5856_v17 = vpop.f32.mrf.mxu3 }
 0x46e   : > { %8256 = vst [vmem:[#allocation25_spill] sm:$0xff] %v5856_v17 }
 0x473   : > { %v5867_v5 = vpop.permute.xlu0 %950 }
 0x474   : > { %8258 = vst [vmem:[#allocation27_spill] sm:$0xff] %v5867_v5 }
 0x475   : > { %v5863_v14 = vpop.f32.mrf.mxu3 }
 0x476   : > { %8257 = vst [vmem:[#allocation26_spill] sm:$0xff] %v5863_v14 }
 0x48b   : > { %v1301_v63 = vpop.permute.xlu1 %1300 }
 0x48c   : > { %v1390_v45 = vmul.f32 %v1301_v63, %v1198_v37 }
 0x48e   : > { %4644 = vmatmul.msk.f32.gmra.mxu2 %vm618_vm1, %v1390_v45  ;;  %v8155_v45 = vrot.slane %v5764_v13, 1 }
 0x493   : > { %v1303_v49 = vpop.permute.xlu1 %1302  ;;  %v5871_v35 = vpop.f32.mrf.mxu3 }
 0x494   : > { %v1391_v17 = vmul.f32 %v1303_v49, %v1199_v48  ;;  %8259 = vst [vmem:[#allocation28_spill] sm:$0xff] %v5871_v35  ;;  %v1305_v27 = vpop.permute.xlu0 %1304  ;;  %v1201_v49 = vperm.slane %v8155_v45, 0 }
 0x495   : > { %v1392_v14 = vmul.f32 %v1305_v27, %v1200_v1 }
 0x496   : > { %4645 = vmatmul.msk.f32.gmra.mxu2 %vm618_vm1, %v1391_v17 }
 0x49b   : > { %v3122_v37 = vpop.f32.mrf.mxu3  ;;  %v5924_v58 = vpop.permute.xlu1 %954 }
 0x49c   : > { %v3236_v63 = vsel %vm618_vm1, %v3122_v37, 0.0  ;;  %v1307_v25 = vpop.permute.xlu0 %1306  ;;  %8262 = vst [vmem:[#allocation31_spill] sm:$0xff] %v5924_v58 }
 0x49d   : > { %3237 = vadd.xlane.f32.xlu2 %v3236_v63  ;;  %v1393_v48 = vmul.f32 %v1307_v25, %v1201_v49 }
 0x49e   : > { %4646 = vmatmul.msk.f32.gmra.mxu2 %vm618_vm1, %v1392_v14  ;;  %v1010_v14 = vadd.f32 %v5797_v31, %v5764_v13 }
 0x4a3   : > { %v3125_v23 = vpop.f32.mrf.mxu3 }
 0x4a4   : > { %v3239_v17 = vsel %vm618_vm1, %v3125_v23, 0.0 }
 0x4a5   : > { %3240 = vadd.xlane.f32.xlu0 %v3239_v17 }
 0x4a6   : > { %4647 = vmatmul.msk.f32.gmra.mxu2 %vm618_vm1, %v1393_v48 }
 0x4ab   : > { %v3128_v1 = vpop.f32.mrf.mxu3 }
 0x4ac   : > { %v3242_v27 = vsel %vm618_vm1, %v3128_v1, 0.0 }
 0x4ad   : > { %3243 = vadd.xlane.f32.xlu1 %v3242_v27  ;;  %v5901_v27 = vpop.permute.xlu2 %944 }
 0x4b3   : > { %v3157_v25 = vpop.f32.mrf.mxu3 }
 0x4b4   : > { %v3245_v48 = vsel %vm618_vm1, %v3157_v25, 0.0 }
 0x4b5   : > { %1034 = vrot.lane.b32.xlu2 %v5584_v61, %s5216_s16  ;;  %v5907_v45 = vpop.permute.xlu2 %948 }
 0x4b9   : > { %1308 = vrot.lane.b32.xlu0 %v1010_v14, %s8250_s19 }
 0x4bb   : > { %v5890_v63 = vpop.f32.mrf.mxu3 }
 0x4bc   : > { %v3248_v61 = vsel %vm618_vm1, %v5890_v63, 0.0 }
 0x4bd   : > { %v5914_v35 = vpop.permute.xlu2 %952 }
 0x4be   : > { %8260 = vst [vmem:[#allocation29_spill] sm:$0xff] %v5914_v35 }
 0x4c3   : > { %v5892_v49 = vpop.f32.mrf.mxu3 }
 0x4c4   : > { %v3251_v17 = vsel %vm618_vm1, %v5892_v49, 0.0 }
 0x4c5   : > { %v5916_v3 = vpop.permute.xlu2 %956 }
 0x4c6   : > { %1032 = vrot.lane.b32.xlu1 %v5573_v41, %s5216_s16  ;;  %8261 = vst [vmem:[#allocation30_spill] sm:$0xff] %v5916_v3 }
 0x4cb   : > { %v5899_v31 = vpop.f32.mrf.mxu3 }
 0x4cc   : > { %v3263_v41 = vsel %vm618_vm1, %v5899_v31, 0.0 }
 0x4d3   : > { %v5905_v14 = vpop.f32.mrf.mxu3 }
 0x4de   : > { %3246 = vadd.xlane.f32.xlu2 %v3245_v48  ;;  %v3266_v48 = vsel %vm618_vm1, %v5905_v14, 0.0 }
 0x4e3   : > { %3252 = vadd.xlane.f32.xlu0 %v3251_v17  ;;  %v3233_v17 = vpop.f32.mrf.mxu3 }
 0x4e6   : > { %3249 = vadd.xlane.f32.xlu2 %v3248_v61  ;;  %v3269_v61 = vsel %vm618_vm1, %v3233_v17, 0.0 }
 0x4ee   : > { %3264 = vadd.xlane.f32.xlu2 %v3263_v41 }
 0x4f6   : > { %3267 = vadd.xlane.f32.xlu2 %v3266_v48 }
 0x4f7   : > { %1038 = vrot.lane.b32.xlu0 %v5674_v53, %s5216_s16 }
 0x4fe   : > { %3270 = vadd.xlane.f32.xlu2 %v3269_v61 }
 0x510   : > { %v3238_v41 = vpop.xlane.xlu2 %3237 }
 0x511   : > { %v3279_v60 = vmul.f32 %v5685_v51, %v3238_v41 }
 0x513   : > { %v5919_v12 = vsub.f32 %v3122_v37, %v3279_v60 }
 0x515   : > { %v3303_v0 = vmul.f32 %v5919_v12, %v5919_v12 }
 0x517   : > { %v3315_v48 = vsel %vm618_vm1, %v3303_v0, 0.0 }
 0x518   : > { %3316 = vadd.xlane.f32.xlu2 %v3315_v48  ;;  %v3241_v53 = vpop.xlane.xlu0 %3240  ;;  %v8164_v48 = vrot.slane %v5764_v13, 2 }
 0x519   : > { %v3280_v5 = vmul.f32 %v5685_v51, %v3241_v53 }
 0x51b   : > { %v5927_v35 = vsub.f32 %v3125_v23, %v3280_v5  ;;  %v1202_v23 = vperm.slane %v8164_v48, 0 }
 0x51d   : > { %v3304_v61 = vmul.f32 %v5927_v35, %v5927_v35 }
 0x51f   : > { %v3318_v41 = vsel %vm618_vm1, %v3304_v61, 0.0  ;;  %v1011_v61 = vadd.f32 %v5779_v55, %v5764_v13 }
 0x520   : > { %3319 = vadd.xlane.f32.xlu2 %v3318_v41  ;;  %v3244_v60 = vpop.xlane.xlu1 %3243  ;;  %v5948_v41 = vpop.permute.xlu2 %1034 }
 0x521   : > { %v3281_v37 = vmul.f32 %v5685_v51, %v3244_v60  ;;  %8263 = vst [vmem:[#allocation32_spill] sm:$0xff] %v5948_v41  ;;  %v1013_v60 = vadd.f32 %v5812_v7, %v5764_v13 }
 0x523   : > { %v5933_v3 = vsub.f32 %v3128_v1, %v3281_v37  ;;  %v1012_v1 = vadd.f32 %v5792_v16, %v5764_v13 }
 0x525   : > { %v3305_v0 = vmul.f32 %v5933_v3, %v5933_v3 }
 0x527   : > { %v3321_v53 = vsel %vm618_vm1, %v3305_v0, 0.0 }
 0x528   : > { %3322 = vadd.xlane.f32.xlu2 %v3321_v53 }
 0x52b   : > { %v1309_v5 = vpop.permute.xlu0 %1308 }
 0x52c   : > { %v1394_v58 = vmul.f32 %v1309_v5, %v1202_v23 }
 0x52e   : > { %4648 = vmatmul.msk.f32.gmra.mxu2 %vm618_vm1, %v1394_v58 }
 0x540   : > { %1310 = vrot.lane.b32.xlu2 %v1011_v61, %s8250_s19 }
 0x548   : > { %1312 = vrot.lane.b32.xlu2 %v1012_v1, %s8250_s19 }
 0x550   : > { %1314 = vrot.lane.b32.xlu2 %v1013_v60, %s8250_s19 }
 0x551   : > { %v3247_v37 = vpop.xlane.xlu2 %3246 }
 0x552   : > { %v3282_v58 = vmul.f32 %v5685_v51, %v3247_v37 }
 0x554   : > { %v5954_v0 = vsub.f32 %v3157_v25, %v3282_v58 }
 0x556   : > { %v3306_v55 = vmul.f32 %v5954_v0, %v5954_v0  ;;  %v3253_v16 = vpop.xlane.xlu0 %3252 }
 0x557   : > { %v3284_v61 = vmul.f32 %v5685_v51, %v3253_v16 }
 0x558   : > { %v3324_v53 = vsel %vm618_vm1, %v3306_v55, 0.0 }
 0x559   : > { %v3250_v23 = vpop.xlane.xlu2 %3249  ;;  %3325 = vadd.xlane.f32.xlu1 %v3324_v53  ;;  %v5967_v25 = vsub.f32 %v5892_v49, %v3284_v61  ;;  %v3536_v61 = vld [vmem:[%s8127_s9 + $0x18] sm:$0xff] }
 0x55a   : > { %v3283_v5 = vmul.f32 %v5685_v51, %v3250_v23  ;;  %3586 = vmatpush.msrb.mxu0 %v3536_v61 }
 0x55b   : > { %v3308_v58 = vmul.f32 %v5967_v25, %v5967_v25 }
 0x55c   : > { %v5962_v7 = vsub.f32 %v5890_v63, %v3283_v5 }
 0x55d   : > { %v3330_v55 = vsel %vm618_vm1, %v3308_v58, 0.0 }
 0x55e   : > { %v3307_v1 = vmul.f32 %v5962_v7, %v5962_v7 }
 0x560   : > { %v3327_v60 = vsel %vm618_vm1, %v3307_v1, 0.0  ;;  %v3533_v1 = vld [vmem:[%s8127_s9] sm:$0xff] }
 0x561   : > { %v3265_v37 = vpop.xlane.xlu2 %3264  ;;  %3328 = vadd.xlane.f32.xlu0 %v3327_v60 }
 0x569   : > { %v3268_v53 = vpop.xlane.xlu2 %3267  ;;  %3331 = vadd.xlane.f32.xlu0 %v3330_v55  ;;  %v3288_v55 = vmul.f32 %v5685_v51, %v3265_v37 }
 0x56a   : > { %v3289_v37 = vmul.f32 %v5685_v51, %v3268_v53 }
 0x571   : > { %v3271_v16 = vpop.xlane.xlu2 %3270 }
 0x572   : > { %v3290_v63 = vmul.f32 %v5685_v51, %v3271_v16  ;;  %1036 = vrot.lane.b32.xlu1 %v5599_v8, %s5216_s16  ;;  %v3535_v8 = vld [vmem:[%s8127_s9 + $0x10] sm:$0xff]  ;;  %v6000_v16 = vsub.f32 %v5899_v31, %v3288_v55 }
 0x573   : > { %3587 = vmatpush.msrb.mxu0 %v3535_v8 }
 0x574   : > { %v5976_v23 = vsub.f32 %v3233_v17, %v3290_v63  ;;  %v3534_v17 = vld [vmem:[%s8127_s9 + $0x8] sm:$0xff] }
 0x575   : > { %3588 = vmatpush.msrb.mxu0 %v3534_v17  ;;  %v3312_v17 = vmul.f32 %v6000_v16, %v6000_v16 }
 0x576   : > { %v3314_v49 = vmul.f32 %v5976_v23, %v5976_v23 }
 0x577   : > { %3589 = vmatpush.msrb.mxu0 %v3533_v1  ;;  %v3342_v31 = vsel %vm618_vm1, %v3312_v17, 0.0 }
 0x578   : > { %v3348_v5 = vsel %vm618_vm1, %v3314_v49, 0.0 }
 0x579   : > { %3349 = vadd.xlane.f32.xlu2 %v3348_v5 }
 0x57d   : > { %1042 = vrot.lane.b32.xlu0 %v5410_v20, %s5216_s16 }
 0x58b   : > { %v3317_v20 = vpop.xlane.xlu2 %3316 }
 0x58c   : > { %v3351_v60 = vmul.f32 %v3317_v20, %v5685_v51 }
 0x58e   : > { %v3363_v58 = vadd.f32 1e-05, %v3351_v60 }
 0x590   : > { %4837 = vrsqrt.f32 %v3363_v58  ;;  %vm3381_vm2 = vweird.f32 %v3363_v58 }
 0x591   : > { %1048 = vrot.lane.b32.xlu2 %v5422_v26, %s5216_s16 }
 0x593   : > { %v3320_v63 = vpop.xlane.xlu2 %3319 }
 0x594   : > { %v3352_v49 = vmul.f32 %v3320_v63, %v5685_v51 }
 0x596   : > { %v4838_v5 = vpop.eup %4837  ;;  %v3364_v61 = vadd.f32 1e-05, %v3352_v49  ;;  %v6011_v49 = vsub.f32 %v5905_v14, %v3289_v37 }
 0x597   : > { %v3376_v8 = vmul.f32 %v4838_v5, %v3363_v58  ;;  %vm3382_vm0 = vweird.f32 %v4838_v5 }
 0x598   : > { %4839 = vrsqrt.f32 %v3364_v61  ;;  %vm3383_vm3 = vmor %vm3381_vm2, %vm3382_vm0  ;;  %vm3391_vm5 = vweird.f32 %v3364_v61 }
 0x599   : > { %v3377_v1 = vmul.f32 %v4838_v5, %v3376_v8  ;;  %1052 = vrot.lane.b32.xlu2 %v5430_v30, %s5216_s16  ;;  %v8165_v8 = vrot.slane %v5764_v13, 3  ;;  %v6017_v30 = vld [vmem:[%s8129_s11] sm:$0xff] }
 0x59a   : > { %v6022_v14 = vperm.slane %v6017_v30, 0 }
 0x59b   : > { %v3378_v26 = vmul.f32 0.5, %v3377_v1  ;;  %v3323_v20 = vpop.xlane.xlu2 %3322 }
 0x59c   : > { %v3353_v60 = vmul.f32 %v3323_v20, %v5685_v51  ;;  %3343 = vadd.xlane.f32.xlu1 %v3342_v31  ;;  %v1203_v20 = vperm.slane %v8165_v8, 0  ;;  %v3313_v31 = vmul.f32 %v6011_v49, %v6011_v49  ;;  %v8171_v8 = vrot.slane %v5764_v13, 4 }
 0x59d   : > { %v3379_v55 = vsub.f32 1.5, %v3378_v26 }
 0x59e   : > { %v4840_v63 = vpop.eup %4839  ;;  %v3365_v48 = vadd.f32 1e-05, %v3353_v60 }
 0x59f   : > { %v3380_v53 = vmul.f32 %v4838_v5, %v3379_v55  ;;  %v3386_v17 = vmul.f32 %v4840_v63, %v3364_v61  ;;  %vm3392_vm4 = vweird.f32 %v4840_v63 }
 0x5a0   : > { %4841 = vrsqrt.f32 %v3365_v48  ;;  %vm3393_vm6 = vmor %vm3391_vm5, %vm3392_vm4  ;;  %vm3401_vm8 = vweird.f32 %v3365_v48 }
 0x5a1   : > { %v3384_v1 = vsel %vm3383_vm3, %v4838_v5, %v3380_v53  ;;  %v3387_v26 = vmul.f32 %v4840_v63, %v3386_v17  ;;  %1056 = vrot.lane.b32.xlu2 %v5438_v34, %s5216_s16  ;;  %v6031_v53 = vperm.slane %v6017_v30, 1 }
 0x5a2   : > { %v3495_v37 = vmul.f32 %v3384_v1, %v5919_v12  ;;  %v3345_v12 = vsel %vm618_vm1, %v3313_v31, 0.0 }
 0x5a3   : > { %v3388_v58 = vmul.f32 0.5, %v3387_v26  ;;  %v1311_v60 = vpop.permute.xlu2 %1310 }
 0x5a4   : > { %v3508_v55 = vmul.f32 %v6022_v14, %v3495_v37  ;;  %v1395_v5 = vmul.f32 %v1311_v60, %v1203_v20 }
 0x5a5   : > { %v3389_v34 = vsub.f32 1.5, %v3388_v58  ;;  %v1204_v58 = vperm.slane %v8171_v8, 0 }
 0x5a6   : > { %v4842_v17 = vpop.eup %4841  ;;  %4649 = vmatmul.msk.f32.gmra.mxu2 %vm618_vm1, %v1395_v5  ;;  %v3521_v1 = vadd.f32 %v6031_v53, %v3508_v55 }
 0x5a7   : > { %v3390_v41 = vmul.f32 %v4840_v63, %v3389_v34  ;;  %v3396_v26 = vmul.f32 %v4842_v17, %v3365_v48  ;;  %3346 = vadd.xlane.f32.xlu0 %v3345_v12  ;;  %vm3402_vm7 = vweird.f32 %v4842_v17 }
 0x5a8   : > { %4694 = vmatmul.msk.f32.vlgmr.msrb.gmra.mxu0 %vm618_vm1, %v3521_v1  ;;  %v8167_v1 = vrot.slane %v5764_v13, 5  ;;  %vm3403_vm9 = vmor %vm3401_vm8, %vm3402_vm7 }
 0x5a9   : > { %v3397_v37 = vmul.f32 %v4842_v17, %v3396_v26  ;;  %1060 = vrot.lane.b32.xlu2 %v5446_v38, %s5216_s16  ;;  %v3394_v20 = vsel %vm3393_vm6, %v4840_v63, %v3390_v41 }
 0x5aa   : > { %v3496_v31 = vmul.f32 %v3394_v20, %v5927_v35  ;;  %v1205_v41 = vperm.slane %v8167_v1, 0 }
 0x5ab   : > { %v3398_v60 = vmul.f32 0.5, %v3397_v37  ;;  %v1313_v55 = vpop.permute.xlu2 %1312 }
 0x5ac   : > { %v1396_v5 = vmul.f32 %v1313_v55, %v1204_v58  ;;  %v3509_v61 = vmul.f32 %v6022_v14, %v3496_v31 }
 0x5ad   : > { %v3399_v34 = vsub.f32 1.5, %v3398_v60 }
 0x5ae   : > { %4650 = vmatmul.msk.f32.gmra.mxu2 %vm618_vm1, %v1396_v5  ;;  %v3522_v12 = vadd.f32 %v6031_v53, %v3509_v61  ;;  %v1018_v5 = vadd.f32 %v5837_v4, %v5546_v9 }
 0x5af   : > { %v3400_v38 = vmul.f32 %v4842_v17, %v3399_v34 }
 0x5b0   : > { %4695 = vmatmul.msk.f32.gmra.mxu0 %vm618_vm1, %v3522_v12 }
 0x5b1   : > { %1064 = vrot.lane.b32.xlu2 %v5454_v42, %s5216_s16  ;;  %v3404_v35 = vsel %vm3403_vm9, %v4842_v17, %v3400_v38  ;;  %v1020_v42 = vadd.f32 %v5901_v27, %v5546_v9  ;;  %v6073_v27 = vpop.permute.xlu1 %1032  ;;  %v3357_v17 = vmul.f32 %v5729_v10, %v5685_v51 }
 0x5b2   : > { %v3497_v63 = vmul.f32 %v3404_v35, %v5933_v3  ;;  %v1014_v3 = vadd.f32 %v5820_v15, %v5764_v13 }
 0x5b3   : > { %v1315_v26 = vpop.permute.xlu2 %1314 }
 0x5b4   : > { %v1397_v37 = vmul.f32 %v1315_v26, %v1205_v41  ;;  %v3510_v20 = vmul.f32 %v6022_v14, %v3497_v63  ;;  %v3359_v41 = vmul.f32 %v5739_v19, %v5685_v51 }
 0x5b5   : > { %1040 = vrot.lane.b32.xlu1 %v5406_v18, %s5216_s16  ;;  %v1021_v18 = vadd.f32 %v5858_v6, %v5546_v9  ;;  %v6083_v6 = vpop.permute.xlu0 %1038 }
 0x5b6   : > { %4651 = vmatmul.msk.f32.gmra.mxu2 %vm618_vm1, %v1397_v37  ;;  %v3523_v48 = vadd.f32 %v6031_v53, %v3510_v20  ;;  %v1019_v20 = vadd.f32 %v5854_v33, %v5546_v9 }
 0x5b8   : > { %4696 = vmatmul.msk.f32.gmra.mxu0 %vm618_vm1, %v3523_v48 }
 0x5b9   : > { %1328 = vrot.lane.b32.xlu2 %v1020_v42, %s8250_s19 }
 0x5bb   : > { %1046 = vrot.lane.b32.xlu0 %v5418_v24, %s5216_s16  ;;  %v1022_v24 = vadd.f32 %v5907_v45, %v5546_v9  ;;  %v1017_v45 = vadd.f32 %v5850_v44, %v5546_v9  ;;  %v3358_v44 = vmul.f32 %v5735_v29, %v5685_v51 }
 0x5bd   : > { %1044 = vrot.lane.b32.xlu1 %v5414_v22, %s5216_s16  ;;  %v1015_v22 = vadd.f32 %v5843_v47, %v5764_v13  ;;  %v6093_v47 = vadd.f32 1e-05, %v3357_v17  ;;  %v6107_v61 = vadd.f32 1e-05, %v3358_v44 }
 0x5bf   : > { %vm3441_vm5 = vweird.f32 %v6093_v47  ;;  %vm3451_vm8 = vweird.f32 %v6107_v61 }
 0x5c1   : > { %1330 = vrot.lane.b32.xlu2 %v1021_v18, %s8250_s19  ;;  %v6125_v18 = vadd.f32 1e-05, %v3359_v41 }
 0x5c3   : > { %1050 = vrot.lane.b32.xlu0 %v5426_v28, %s5216_s16 }
 0x5c5   : > { %1316 = vrot.lane.b32.xlu1 %v1014_v3, %s8250_s19 }
 0x5c9   : > { %1332 = vrot.lane.b32.xlu2 %v1022_v24, %s8250_s19 }
 0x5cb   : > { %1054 = vrot.lane.b32.xlu0 %v5434_v32, %s5216_s16  ;;  %v1016_v32 = vadd.f32 %v5828_v21, %v5546_v9 }
 0x5cc   : > { %v3326_v15 = vpop.xlane.xlu1 %3325 }
 0x5cd   : > { %v3354_v28 = vmul.f32 %v3326_v15, %v5685_v51  ;;  %1318 = vrot.lane.b32.xlu1 %v1015_v22, %s8250_s19 }
 0x5cf   : > { %v3366_v58 = vadd.f32 1e-05, %v3354_v28 }
 0x5d1   : > { %4843 = vrsqrt.f32 %v3366_v58  ;;  %1078 = vrot.lane.b32.xlu2 %v5505_v57, %s5216_s16  ;;  %vm3411_vm11 = vweird.f32 %v3366_v58 }
 0x5d2   : > { %4845 = vrsqrt.f32 %v6093_v47 }
 0x5d3   : > { %1322 = vrot.lane.b32.xlu0 %v1017_v45, %s8250_s19 }
 0x5d4   : > { %v3329_v31 = vpop.xlane.xlu0 %3328 }
 0x5d5   : > { %v3355_v60 = vmul.f32 %v3329_v31, %v5685_v51  ;;  %1320 = vrot.lane.b32.xlu1 %v1016_v32, %s8250_s19 }
 0x5d7   : > { %v4844_v10 = vpop.eup %4843  ;;  %v3367_v55 = vadd.f32 1e-05, %v3355_v60 }
 0x5d8   : > { %v3406_v57 = vmul.f32 %v4844_v10, %v3366_v58  ;;  %v6110_v34 = vpop.eup %4845  ;;  %vm3412_vm10 = vweird.f32 %v4844_v10 }
 0x5d9   : > { %4847 = vrsqrt.f32 %v3367_v55  ;;  %1082 = vrot.lane.b32.xlu2 %v5509_v59, %s5216_s16  ;;  %v3436_v59 = vmul.f32 %v6110_v34, %v6093_v47  ;;  %vm3413_vm12 = vmor %vm3411_vm11, %vm3412_vm10  ;;  %vm3421_vm14 = vweird.f32 %v3367_v55  ;;  %vm3442_vm2 = vweird.f32 %v6110_v34  ;;  %v548_v47 = vld [vmem:[%s6148_s15 + $0x18] sm:$0xff] }
 0x5da   : > { %v3407_v21 = vmul.f32 %v4844_v10, %v3406_v57  ;;  %4849 = vrsqrt.f32 %v6107_v61  ;;  %v545_v57 = vld [vmem:[%s6148_s15] sm:$0xff]  ;;  %vm3443_vm6 = vmor %vm3441_vm5, %vm3442_vm2  ;;  %vm3461_vm11 = vweird.f32 %v6125_v18 }
 0x5db   : > { %1324 = vrot.lane.b32.xlu0 %v1018_v5, %s8250_s19  ;;  %v3437_v42 = vmul.f32 %v6110_v34, %v3436_v59 }
 0x5dc   : > { %v3408_v12 = vmul.f32 0.5, %v3407_v21  ;;  %v3332_v38 = vpop.xlane.xlu0 %3331 }
 0x5dd   : > { %v3356_v29 = vmul.f32 %v3332_v38, %v5685_v51  ;;  %1058 = vrot.lane.b32.xlu1 %v5442_v36, %s5216_s16  ;;  %v3438_v15 = vmul.f32 0.5, %v3437_v42 }
 0x5de   : > { %v3409_v35 = vsub.f32 1.5, %v3408_v12 }
 0x5df   : > { %v4848_v4 = vpop.eup %4847  ;;  %v3368_v63 = vadd.f32 1e-05, %v3356_v29  ;;  %v3439_v32 = vsub.f32 1.5, %v3438_v15  ;;  %v8267_v15 = vld [vmem:[#allocation22_spill] sm:$0xff] }
 0x5e0   : > { %v3410_v26 = vmul.f32 %v4844_v10, %v3409_v35  ;;  %v3416_v37 = vmul.f32 %v4848_v4, %v3367_v55  ;;  %v6129_v24 = vpop.eup %4849  ;;  %vm3422_vm13 = vweird.f32 %v4848_v4 }
 0x5e1   : > { %4851 = vrsqrt.f32 %v3368_v63  ;;  %1086 = vrot.lane.b32.xlu2 %v5515_v62, %s5216_s16  ;;  %vm3423_vm15 = vmor %vm3421_vm14, %vm3422_vm13  ;;  %v3440_v5 = vmul.f32 %v6110_v34, %v3439_v32  ;;  %vm3431_vm3 = vweird.f32 %v3368_v63  ;;  %vm3452_vm7 = vweird.f32 %v6129_v24 }
 0x5e2   : > { %v3417_v36 = vmul.f32 %v4848_v4, %v3416_v37  ;;  %v3414_v48 = vsel %vm3413_vm12, %v4844_v10, %v3410_v26  ;;  %4853 = vrsqrt.f32 %v6125_v18  ;;  %vm3453_vm9 = vmor %vm3451_vm8, %vm3452_vm7 }
 0x5e3   : > { %1326 = vrot.lane.b32.xlu0 %v1019_v20, %s8250_s19  ;;  %v3498_v19 = vmul.f32 %v3414_v48, %v5954_v0  ;;  %v3446_v0 = vmul.f32 %v6129_v24, %v6107_v61  ;;  %v3444_v41 = vsel %vm3443_vm6, %v6110_v34, %v3440_v5 }
 0x5e4   : > { %v3418_v3 = vmul.f32 0.5, %v3417_v36  ;;  %v551_v36 = vld [vmem:[%s6148_s15 + $0x30] sm:$0xff] }
 0x5e5   : > { %1062 = vrot.lane.b32.xlu1 %v5450_v40, %s5216_s16  ;;  %v3511_v33 = vmul.f32 %v6022_v14, %v3498_v19  ;;  %v3447_v60 = vmul.f32 %v6129_v24, %v3446_v0  ;;  %v8268_v0 = vld [vmem:[#allocation19_spill] sm:$0xff] }
 0x5e6   : > { %v3419_v22 = vsub.f32 1.5, %v3418_v3 }
 0x5e7   : > { %v4852_v62 = vpop.eup %4851  ;;  %v3524_v28 = vadd.f32 %v6031_v53, %v3511_v33  ;;  %v3448_v21 = vmul.f32 0.5, %v3447_v60  ;;  %v6208_v33 = vpop.f32.mrf.mxu2 }
 0x5e8   : > { %v3420_v17 = vmul.f32 %v4848_v4, %v3419_v22  ;;  %v3426_v58 = vmul.f32 %v4852_v62, %v3368_v63  ;;  %v6154_v44 = vpop.eup %4853  ;;  %vm3432_vm0 = vweird.f32 %v4852_v62  ;;  %v554_v22 = vld [vmem:[%s6148_s15 + $0x48] sm:$0xff] }
 0x5e9   : > { %1090 = vrot.lane.b32.xlu2 %v5527_v2, %s5216_s16  ;;  %4697 = vmatmul.msk.f32.gmra.mxu0 %vm618_vm1, %v3524_v28  ;;  %v3456_v12 = vmul.f32 %v6154_v44, %v6125_v18  ;;  %vm3433_vm4 = vmor %vm3431_vm3, %vm3432_vm0  ;;  %v3449_v35 = vsub.f32 1.5, %v3448_v21  ;;  %vm3462_vm10 = vweird.f32 %v6154_v44  ;;  %v6211_v18 = vpop.permute.xlu1 %1036 }
 0x5ea   : > { %v3427_v40 = vmul.f32 %v4852_v62, %v3426_v58  ;;  %v3424_v45 = vsel %vm3423_vm15, %v4848_v4, %v3420_v17  ;;  %vm3463_vm12 = vmor %vm3461_vm11, %vm3462_vm10  ;;  %v8269_v17 = vld [vmem:[#allocation29_spill] sm:$0xff] }
 0x5eb   : > { %1068 = vrot.lane.b32.xlu0 %v5470_v46, %s5216_s16  ;;  %v3499_v31 = vmul.f32 %v3424_v45, %v5962_v7  ;;  %v3457_v4 = vmul.f32 %v6154_v44, %v3456_v12  ;;  %v1024_v58 = vadd.f32 %v8269_v17, %v8268_v0 }
 0x5ec   : > { %v3428_v2 = vmul.f32 0.5, %v3427_v40  ;;  %v6152_v10 = vpop.xlane.xlu2 %3349  ;;  %v8270_v40 = vld [vmem:[#allocation14_spill] sm:$0xff] }
 0x5ed   : > { %1066 = vrot.lane.b32.xlu1 %v5456_v43, %s5216_s16  ;;  %v3512_v46 = vmul.f32 %v6022_v14, %v3499_v31  ;;  %v3458_v37 = vmul.f32 0.5, %v3457_v4  ;;  %v3362_v60 = vmul.f32 %v6152_v10, %v5685_v51  ;;  %v8272_v10 = vld [vmem:[#allocation31_spill] sm:$0xff] }
 0x5ee   : > { %v3429_v55 = vsub.f32 1.5, %v3428_v2  ;;  %v557_v2 = vld [vmem:[%s6148_s15 + $0x60] sm:$0xff] }
 0x5ef   : > { %v3525_v7 = vadd.f32 %v6031_v53, %v3512_v46  ;;  %v3459_v34 = vsub.f32 1.5, %v3458_v37  ;;  %v6224_v31 = vpop.f32.mrf.mxu2  ;;  %v6236_v21 = vpop.permute.xlu0 %1042 }
 0x5f0   : > { %v3430_v38 = vmul.f32 %v4852_v62, %v3429_v55 }
 0x5f1   : > { %1631 = vperm.xlu2 %4828, %v545_v57   ;;  %4698 = vmatmul.msk.f32.gmra.mxu0 %vm618_vm1, %v3525_v7  ;;  %v3460_v42 = vmul.f32 %v6154_v44, %v3459_v34  ;;  %v8271_v57 = vld [vmem:[#allocation30_spill] sm:$0xff]  ;;  %v6234_v7 = vadd.f32 1e-05, %v3362_v60  ;;  %v8274_v34 = vld [vmem:[#allocation15_spill] sm:$0xff] }
 0x5f2   : > { %v3434_v43 = vsel %vm3433_vm4, %v4852_v62, %v3430_v38  ;;  %v1026_v5 = vadd.f32 %v8271_v57, %v8268_v0  ;;  %v1025_v38 = vadd.f32 %v8272_v10, %v8268_v0 }
 0x5f3   : > { %1072 = vrot.lane.b32.xlu0 %v5492_v52, %s5216_s16  ;;  %v3500_v29 = vmul.f32 %v3434_v43, %v5967_v25  ;;  %v3501_v52 = vmul.f32 %v3444_v41, %v5688_v39  ;;  %v3450_v25 = vmul.f32 %v6129_v24, %v3449_v35  ;;  %vm3491_vm5 = vweird.f32 %v6234_v7 }
 0x5f4   : > { %v6171_v59 = vpop.permute.xlu2 %1048 }
 0x5f5   : > { %1070 = vrot.lane.b32.xlu1 %v5485_v50, %s5216_s16  ;;  %v3513_v63 = vmul.f32 %v6022_v14, %v3500_v29  ;;  %v3514_v50 = vmul.f32 %v6022_v14, %v3501_v52  ;;  %v3454_v39 = vsel %vm3453_vm9, %v6129_v24, %v3450_v25  ;;  %v560_v29 = vld [vmem:[%s6148_s15 + $0x78] sm:$0xff] }
 0x5f6   : > { %v3502_v61 = vmul.f32 %v3454_v39, %v5694_v11  ;;  %v3464_v11 = vsel %vm3463_vm12, %v6154_v44, %v3460_v42  ;;  %v563_v39 = vld [vmem:[%s6148_s15 + $0x90] sm:$0xff] }
 0x5f7   : > { %v3526_v26 = vadd.f32 %v6031_v53, %v3513_v63  ;;  %v3527_v48 = vadd.f32 %v6031_v53, %v3514_v50  ;;  %v3503_v28 = vmul.f32 %v3464_v11, %v8267_v15  ;;  %v6246_v35 = vpop.f32.mrf.mxu2 }
 0x5f8   : > { %v3515_v3 = vmul.f32 %v6022_v14, %v3502_v61  ;;  %v3870_v61 = vld [vmem:[%s8128_s10 + $0x18] sm:$0xff] }
 0x5f9   : > { %1646 = vperm.xlu2 %4828, %v548_v47   ;;  %4699 = vmatmul.msk.f32.gmra.mxu0 %vm618_vm1, %v3526_v26  ;;  %v3516_v45 = vmul.f32 %v6022_v14, %v3503_v28  ;;  %v8273_v26 = vld [vmem:[#allocation16_spill] sm:$0xff] }
 0x5fa   : > { %v3528_v62 = vadd.f32 %v6031_v53, %v3515_v3  ;;  %3920 = vmatpush.msra.mxu3 %v3870_v61  ;;  %v6270_v3 = vperm.slane %v6017_v30, 2  ;;  %v8275_v30 = vld [vmem:[#allocation17_spill] sm:$0xff] }
 0x5fb   : > { %1076 = vrot.lane.b32.xlu0 %v5503_v56, %s5216_s16  ;;  %v8265_v56 = vld [vmem:[#allocation27_spill] sm:$0xff]  ;;  %v3529_v46 = vadd.f32 %v6031_v53, %v3516_v45 }
 0x5fc   : > { %v6187_v20 = vpop.permute.xlu2 %1052  ;;  %v1023_v19 = vadd.f32 %v8265_v56, %v5546_v9  ;;  %v546_v56 = vld [vmem:[%s6148_s15 + $0x8] sm:$0xff] }
 0x5fd   : > { %1074 = vrot.lane.b32.xlu1 %v5496_v54, %s5216_s16  ;;  %v8266_v54 = vld [vmem:[#allocation13_spill] sm:$0xff] }
 0x5ff   : > { %v6263_v42 = vpop.f32.mrf.mxu2 }
 0x601   : > { %1661 = vperm.xlu2 %4828, %v551_v36   ;;  %4700 = vmatmul.msk.f32.gmra.mxu0 %vm618_vm1, %v3527_v48 }
 0x603   : > { %1080 = vrot.lane.b32.xlu0 %v8266_v54, %s5216_s16  ;;  %v3869_v54 = vld [vmem:[%s8128_s10 + $0x10] sm:$0xff] }
 0x604   : > { %v6204_v24 = vpop.permute.xlu2 %1056  ;;  %3921 = vmatpush.msra.mxu3 %v3869_v54  ;;  %v552_v54 = vld [vmem:[%s6148_s15 + $0x38] sm:$0xff] }
 0x605   : > { %1334 = vrot.lane.b32.xlu1 %v1023_v19, %s8250_s19 }
 0x609   : > { %1676 = vperm.xlu2 %4828, %v554_v22   ;;  %4701 = vmatmul.msk.f32.gmra.mxu0 %vm618_vm1, %v3528_v62  ;;  %v3868_v62 = vld [vmem:[%s8128_s10 + $0x8] sm:$0xff] }
 0x60a   : > { %3922 = vmatpush.msra.mxu3 %v3868_v62 }
 0x60b   : > { %1084 = vrot.lane.b32.xlu0 %v8270_v40, %s5216_s16  ;;  %v3867_v40 = vld [vmem:[%s8128_s10] sm:$0xff] }
 0x60c   : > { %v6221_v32 = vpop.permute.xlu2 %1060  ;;  %3923 = vmatpush.msra.mxu3 %v3867_v40 }
 0x60d   : > { %1336 = vrot.lane.b32.xlu1 %v1024_v58, %s8250_s19 }
 0x60f   : > { %v3344_v44 = vpop.xlane.xlu1 %3343 }
 0x610   : > { %v3360_v55 = vmul.f32 %v3344_v44, %v5685_v51 }
 0x611   : > { %1691 = vperm.xlu2 %4828, %v557_v2   ;;  %4702 = vmatmul.msk.f32.gmra.mxu0 %vm618_vm1, %v3529_v46  ;;  %v571_v2 = vld [vmem:[%s6148_s15 + $0xd0] sm:$0xff] }
 0x612   : > { %v3372_v12 = vadd.f32 1e-05, %v3360_v55 }
 0x613   : > { %1340 = vrot.lane.b32.xlu0 %v1026_v5, %s8250_s19 }
 0x614   : > { %4855 = vrsqrt.f32 %v3372_v12  ;;  %v6241_v43 = vpop.permute.xlu2 %1064  ;;  %vm3471_vm14 = vweird.f32 %v3372_v12 }
 0x615   : > { %1338 = vrot.lane.b32.xlu1 %v1025_v38, %s8250_s19  ;;  %4857 = vrsqrt.f32 %v6234_v7  ;;  %v6293_v38 = vpop.f32.mrf.mxu2 }
 0x616   : > { %8276 = vst [vmem:[#allocation27_spill] sm:$0xff] %v6293_v38 }
 0x619   : > { %1706 = vperm.xlu2 %4828, %v560_v29  }
 0x61a   : > { %v4856_v4 = vpop.eup %4855  ;;  %v3347_v41 = vpop.xlane.xlu0 %3346 }
 0x61b   : > { %v3466_v63 = vmul.f32 %v4856_v4, %v3372_v12  ;;  %v3361_v47 = vmul.f32 %v3347_v41, %v5685_v51  ;;  %1092 = vrot.lane.b32.xlu0 %v8273_v26, %s5216_s16  ;;  %v6251_v52 = vpop.eup %4857  ;;  %vm3472_vm13 = vweird.f32 %v4856_v4  ;;  %v549_v12 = vld [vmem:[%s6148_s15 + $0x20] sm:$0xff]  ;;  %v547_v41 = vld [vmem:[%s6148_s15 + $0x10] sm:$0xff] }
 0x61c   : > { %v6253_v25 = vpop.permute.xlu2 %1328  ;;  %v3486_v36 = vmul.f32 %v6251_v52, %v6234_v7  ;;  %vm3473_vm15 = vmor %vm3471_vm14, %vm3472_vm13  ;;  %vm3492_vm3 = vweird.f32 %v6251_v52 }
 0x61d   : > { %v3467_v37 = vmul.f32 %v4856_v4, %v3466_v63  ;;  %v3373_v50 = vadd.f32 1e-05, %v3361_v47  ;;  %1088 = vrot.lane.b32.xlu1 %v8274_v34, %s5216_s16  ;;  %vm6316_vm6 = vmor %vm3491_vm5, %vm3492_vm3  ;;  %v6326_v7 = vpop.f32.mrf.mxu2 }
 0x61e   : > { %v3487_v11 = vmul.f32 %v6251_v52, %v3486_v36  ;;  %v565_v36 = vld [vmem:[%s6148_s15 + $0xa0] sm:$0xff]  ;;  %8279 = vst [vmem:[#allocation13_spill] sm:$0xff] %v6326_v7 }
 0x61f   : > { %v3468_v48 = vmul.f32 0.5, %v3467_v37  ;;  %4859 = vrsqrt.f32 %v3373_v50  ;;  %vm3481_vm2 = vweird.f32 %v3373_v50 }
 0x620   : > { %v3488_v46 = vmul.f32 0.5, %v3487_v11 }
 0x621   : > { %v3469_v19 = vsub.f32 1.5, %v3468_v48  ;;  %1721 = vperm.xlu2 %4828, %v563_v39  }
 0x623   : > { %v3470_v22 = vmul.f32 %v4856_v4, %v3469_v19  ;;  %1636 = vperm.xlu0 %4829, %v546_v56  }
 0x624   : > { %v6276_v15 = vpop.permute.xlu2 %1330 }
 0x625   : > { %v4860_v28 = vpop.eup %4859  ;;  %v3591_v17 = vpop.f32.mrf.mxu0  ;;  %1094 = vrot.lane.b32.xlu1 %v8275_v30, %s5216_s16  ;;  %v3474_v58 = vsel %vm3473_vm15, %v4856_v4, %v3470_v22  ;;  %v8169_v30 = vrot.slane %v5764_v13, 6 }
 0x626   : > { %v3476_v45 = vmul.f32 %v4860_v28, %v3373_v50  ;;  %v6284_v60 = vadd.f32 %v3591_v17, %v6270_v3  ;;  %v3504_v44 = vmul.f32 %v3474_v58, %v6000_v16  ;;  %v3489_v16 = vsub.f32 1.5, %v3488_v46  ;;  %v550_v17 = vld [vmem:[%s6148_s15 + $0x28] sm:$0xff] }
 0x627   : > { %v6288_v55 = vpop.permute.xlu1 %1040  ;;  %vm3482_vm0 = vweird.f32 %v4860_v28  ;;  %v574_v46 = vld [vmem:[%s6148_s15 + $0xe8] sm:$0xff] }
 0x628   : > { %v3477_v57 = vmul.f32 %v4860_v28, %v3476_v45  ;;  %v4706_v5 = vmul.f32 -1.442695, %v6284_v60  ;;  %v3517_v10 = vmul.f32 %v6022_v14, %v3504_v44  ;;  %v3490_v48 = vmul.f32 %v6251_v52, %v3489_v16  ;;  %vm3483_vm4 = vmor %vm3481_vm2, %vm3482_vm0 }
 0x629   : > { %1761 = vperm.xlu2 %4828, %v571_v2  }
 0x62a   : > { %v3478_v29 = vmul.f32 0.5, %v3477_v57  ;;  %4861 = vpow2.f32 %v4706_v5  ;;  %v3530_v4 = vadd.f32 %v6031_v53, %v3517_v10 }
 0x62b   : > { %1651 = vperm.xlu0 %4829, %v549_v12  }
 0x62c   : > { %v3479_v63 = vsub.f32 1.5, %v3478_v29  ;;  %v6297_v47 = vpop.permute.xlu2 %1332  ;;  %4703 = vmatmul.msk.f32.gmra.mxu0 %vm618_vm1, %v3530_v4  ;;  %v555_v4 = vld [vmem:[%s6148_s15 + $0x50] sm:$0xff] }
 0x62d   : > { %v3594_v26 = vpop.f32.mrf.mxu0  ;;  %v6300_v37 = vpop.permute.xlu0 %1046  ;;  %1641 = vperm.xlu1 %4827, %v547_v41  }
 0x62e   : > { %v3480_v34 = vmul.f32 %v4860_v28, %v3479_v63  ;;  %v6303_v39 = vadd.f32 %v3594_v26, %v6270_v3  ;;  %v8166_v63 = vrot.slane %v5764_v13, 7 }
 0x62f   : > { %v6308_v61 = vpop.permute.xlu1 %1044 }
 0x630   : > { %v4862_v56 = vpop.eup %4861  ;;  %v4707_v19 = vmul.f32 -1.442695, %v6303_v39  ;;  %v3484_v11 = vsel %vm3483_vm4, %v4860_v28, %v3480_v34  ;;  %v3494_v28 = vsel %vm6316_vm6, %v6251_v52, %v3490_v48  ;;  %v1206_v52 = vperm.slane %v8169_v30, 0 }
 0x631   : > { %v6313_v50 = vadd.f32 1.0, %v4862_v56  ;;  %1731 = vperm.xlu2 %4828, %v565_v36   ;;  %v3505_v22 = vmul.f32 %v3484_v11, %v6011_v49  ;;  %v3506_v57 = vmul.f32 %v3494_v28, %v5976_v23  ;;  %v553_v23 = vld [vmem:[%s6148_s15 + $0x40] sm:$0xff]  ;;  %v6352_v36 = vpop.f32.mrf.mxu2  ;;  %v1207_v11 = vperm.slane %v8166_v63, 0 }
 0x632   : > { %4863 = vpow2.f32 %v4707_v19 }
 0x633   : > { %4865 = vrcp.f32 %v6313_v50  ;;  %1666 = vperm.xlu0 %4829, %v552_v54   ;;  %v3518_v58 = vmul.f32 %v6022_v14, %v3505_v22  ;;  %v3519_v34 = vmul.f32 %v6022_v14, %v3506_v57  ;;  %v3686_v19 = vand.u32 2147483648, %v6313_v50 }
 0x634   : > { %v6328_v49 = vpop.permute.xlu2 %1078  ;;  %v3684_v14 = vand.u32 2147483647, %v6313_v50  ;;  %vm3680_vm8 = vweird.f32 %v6313_v50 }
 0x635   : > { %v6331_v40 = vpop.permute.xlu0 %1050  ;;  %1656 = vperm.xlu1 %4827, %v550_v17   ;;  %v3597_v45 = vpop.f32.mrf.mxu0  ;;  %v3531_v44 = vadd.f32 %v6031_v53, %v3518_v58  ;;  %v3532_v62 = vadd.f32 %v6031_v53, %v3519_v34  ;;  %v568_v17 = vld [vmem:[%s6148_s15 + $0xb8] sm:$0xff]  ;;  %v3687_v57 = vor.u32 1.1754944e-38, %v3686_v19 }
 0x636   : > { %v6334_v2 = vadd.f32 %v3597_v45, %v6270_v3  ;;  %vm3685_vm10 = vcmp.eq.f32.partialorder %v3684_v14, 8.507059e+37 }
 0x637   : > { %v1317_v5 = vpop.permute.xlu1 %1316  ;;  %4704 = vmatmul.msk.f32.gmra.mxu0 %vm618_vm1, %v3531_v44 }
 0x638   : > { %v4864_v12 = vpop.eup %4863  ;;  %v4708_v10 = vmul.f32 -1.442695, %v6334_v2  ;;  %v1398_v29 = vmul.f32 %v1317_v5, %v1206_v52  ;;  %v558_v52 = vld [vmem:[%s6148_s15 + $0x68] sm:$0xff] }
 0x639   : > { %v4866_v41 = vpop.eup %4865  ;;  %v6344_v16 = vadd.f32 1.0, %v4864_v12  ;;  %1776 = vperm.xlu2 %4828, %v574_v46  }
 0x63a   : > { %v3676_v26 = vmul.f32 %v4866_v41, %v6313_v50  ;;  %4867 = vpow2.f32 %v4708_v10  ;;  %4652 = vmatmul.msk.f32.gmra.mxu2 %vm618_vm1, %v1398_v29  ;;  %vm3681_vm7 = vweird.f32 %v4866_v41  ;;  %v556_v10 = vld [vmem:[%s6148_s15 + $0x58] sm:$0xff] }
 0x63b   : > { %4869 = vrcp.f32 %v6344_v16  ;;  %1681 = vperm.xlu0 %4829, %v555_v4   ;;  %vm3682_vm9 = vmor %vm3680_vm8, %vm3681_vm7  ;;  %v3699_v19 = vand.u32 2147483647, %v6344_v16  ;;  %vm3695_vm12 = vweird.f32 %v6344_v16 }
 0x63c   : > { %v3677_v48 = vsub.f32 1.0, %v3676_v26  ;;  %v6354_v56 = vpop.permute.xlu2 %1082 }
 0x63d   : > { %v6357_v54 = vpop.permute.xlu0 %1054  ;;  %1671 = vperm.xlu1 %4827, %v553_v23   ;;  %v3701_v23 = vand.u32 2147483648, %v6344_v16  ;;  %vm3700_vm14 = vcmp.eq.f32.partialorder %v3699_v19, 8.507059e+37 }
 0x63e   : > { %v3678_v22 = vmul.f32 %v4866_v41, %v3677_v48 }
 0x63f   : > { %v1319_v28 = vpop.permute.xlu1 %1318  ;;  %4705 = vmatmul.msk.f32.gmra.mxu0 %vm618_vm1, %v3532_v62 }
 0x640   : > { %v4868_v58 = vpop.eup %4867  ;;  %v3679_v45 = vadd.f32 %v4866_v41, %v3678_v22  ;;  %v1399_v44 = vmul.f32 %v1319_v28, %v1207_v11  ;;  %v1208_v11 = vperm.slane %v5546_v9, 0 }
 0x641   : > { %v4870_v46 = vpop.eup %4869  ;;  %v6367_v5 = vadd.f32 1.0, %v4868_v58  ;;  %1746 = vperm.xlu2 %4828, %v568_v17   ;;  %v561_v17 = vld [vmem:[%s6148_s15 + $0x80] sm:$0xff]  ;;  %v3702_v58 = vor.u32 1.1754944e-38, %v3701_v23  ;;  %v8281_v23 = vld [vmem:[#allocation20_spill] sm:$0xff] }
 0x642   : > { %v3683_v12 = vsel %vm3682_vm9, %v4866_v41, %v3679_v45  ;;  %v3691_v53 = vmul.f32 %v4870_v46, %v6344_v16  ;;  %4653 = vmatmul.msk.f32.gmra.mxu2 %vm618_vm1, %v1399_v44  ;;  %v6377_v41 = vpop.f32.mrf.mxu2  ;;  %vm3696_vm11 = vweird.f32 %v4870_v46 }
 0x643   : > { %v3688_v29 = vsel %vm3685_vm10, %v3687_v57, %v3683_v12  ;;  %4871 = vrcp.f32 %v6367_v5  ;;  %1696 = vperm.xlu0 %4829, %v558_v52   ;;  %8280 = vst [vmem:[#allocation22_spill] sm:$0xff] %v6377_v41  ;;  %vm3697_vm13 = vmor %vm3695_vm12, %vm3696_vm11  ;;  %v8174_v52 = vrot.slane %v5546_v9, 1  ;;  %vm3710_vm0 = vweird.f32 %v6367_v5 }
 0x644   : > { %v3855_v50 = vmul.f32 %v3688_v29, %v6284_v60  ;;  %v3692_v4 = vsub.f32 1.0, %v3691_v53  ;;  %v6374_v26 = vpop.permute.xlu2 %1086  ;;  %v1137_v60 = vadd.f32 %v6331_v40, %v5764_v13  ;;  %v559_v40 = vld [vmem:[%s6148_s15 + $0x70] sm:$0xff] }
 0x645   : > { %v1323_v34 = vpop.permute.xlu0 %1322  ;;  %1686 = vperm.xlu1 %4827, %v556_v10   ;;  %v3716_v10 = vand.u32 2147483648, %v6367_v5 }
 0x646   : > { %v3693_v48 = vmul.f32 %v4870_v46, %v3692_v4  ;;  %4718 = vmatmul.msk.f32.vlgmr.msra.gmra.mxu3 %vm618_vm1, %v3855_v50  ;;  %v3714_v50 = vand.u32 2147483647, %v6367_v5  ;;  %v1209_v4 = vperm.slane %v8174_v52, 0 }
 0x647   : > { %v1321_v22 = vpop.permute.xlu1 %1320 }
 0x648   : > { %v3694_v14 = vadd.f32 %v4870_v46, %v3693_v48  ;;  %v1400_v62 = vmul.f32 %v1321_v22, %v1208_v11  ;;  %v564_v22 = vld [vmem:[%s6148_s15 + $0x98] sm:$0xff]  ;;  %vm3715_vm3 = vcmp.eq.f32.partialorder %v3714_v50, 8.507059e+37 }
 0x649   : > { %v4872_v28 = vpop.eup %4871  ;;  %2447 = vrot.lane.b32.xlu2 %v1137_v60, %s5216_s16  ;;  %v1401_v60 = vmul.f32 %v1323_v34, %v1209_v4 }
 0x64a   : > { %v3698_v45 = vsel %vm3697_vm13, %v4870_v46, %v3694_v14  ;;  %v3706_v44 = vmul.f32 %v4872_v28, %v6367_v5  ;;  %4654 = vmatmul.msk.f32.gmra.mxu2 %vm618_vm1, %v1400_v62  ;;  %vm3711_vm15 = vweird.f32 %v4872_v28  ;;  %v6403_v19 = vpop.f32.mrf.mxu2  ;;  %v3717_v14 = vor.u32 1.1754944e-38, %v3716_v10 }
 0x64b   : > { %v3703_v57 = vsel %vm3700_vm14, %v3702_v58, %v3698_v45  ;;  %1711 = vperm.xlu0 %4829, %v561_v17   ;;  %vm3712_vm2 = vmor %vm3710_vm0, %vm3711_vm15  ;;  %v8172_v17 = vrot.slane %v5546_v9, 2 }
 0x64c   : > { %v3856_v16 = vmul.f32 %v3703_v57, %v6303_v39  ;;  %v3707_v12 = vsub.f32 1.0, %v3706_v44  ;;  %v6392_v53 = vpop.permute.xlu2 %1090  ;;  %v1130_v39 = vadd.f32 %v6211_v18, %v8281_v23  ;;  %v562_v18 = vld [vmem:[%s6148_s15 + $0x88] sm:$0xff]  ;;  %v569_v57 = vld [vmem:[%s6148_s15 + $0xc0] sm:$0xff] }
 0x64d   : > { %v1325_v29 = vpop.permute.xlu0 %1324  ;;  %1701 = vperm.xlu1 %4827, %v559_v40   ;;  %v1210_v44 = vperm.slane %v8172_v17, 0 }
 0x64e   : > { %v3708_v46 = vmul.f32 %v4872_v28, %v3707_v12  ;;  %4719 = vmatmul.msk.f32.gmra.mxu3 %vm618_vm1, %v3856_v16  ;;  %v8173_v12 = vrot.slane %v5546_v9, 3 }
 0x64f   : > { %v6401_v48 = vpop.permute.xlu1 %1058  ;;  %v1402_v40 = vmul.f32 %v1325_v29, %v1210_v44 }
 0x650   : > { %v3709_v11 = vadd.f32 %v4872_v28, %v3708_v46  ;;  %v1211_v50 = vperm.slane %v8173_v12, 0 }
 0x651   : > { %2433 = vrot.lane.b32.xlu2 %v1130_v39, %s5216_s16  ;;  %v573_v39 = vld [vmem:[%s6148_s15 + $0xe0] sm:$0xff] }
 0x652   : > { %v3713_v62 = vsel %vm3712_vm2, %v4872_v28, %v3709_v11  ;;  %4655 = vmatmul.msk.f32.gmra.mxu2 %vm618_vm1, %v1401_v60  ;;  %v6420_v16 = vpop.f32.mrf.mxu2  ;;  %v8168_v60 = vrot.slane %v5546_v9, 4 }
 0x653   : > { %v3718_v58 = vsel %vm3715_vm3, %v3717_v14, %v3713_v62  ;;  %1726 = vperm.xlu0 %4829, %v564_v22   ;;  %v572_v22 = vld [vmem:[%s6148_s15 + $0xd8] sm:$0xff] }
 0x654   : > { %v3857_v45 = vmul.f32 %v3718_v58, %v6334_v2  ;;  %v6412_v5 = vpop.permute.xlu2 %1631  ;;  %v570_v2 = vld [vmem:[%s6148_s15 + $0xc8] sm:$0xff] }
 0x655   : > { %v1327_v34 = vpop.permute.xlu0 %1326  ;;  %1716 = vperm.xlu1 %4827, %v562_v18   ;;  %v1212_v18 = vperm.slane %v8168_v60, 0  ;;  %v8175_v60 = vrot.slane %v5546_v9, 6 }
 0x656   : > { %4720 = vmatmul.msk.f32.gmra.mxu3 %vm618_vm1, %v3857_v45  ;;  %v1403_v29 = vmul.f32 %v1327_v34, %v1211_v50 }
 0x657   : > { %v6417_v28 = vpop.permute.xlu1 %1062  ;;  %v1404_v44 = vmul.f32 %v6253_v25, %v1212_v18 }
 0x65a   : > { %4656 = vmatmul.msk.f32.gmra.mxu2 %vm618_vm1, %v1402_v40  ;;  %v6432_v11 = vpop.f32.mrf.mxu2  ;;  %v567_v40 = vld [vmem:[%s6148_s15 + $0xb0] sm:$0xff] }
 0x65b   : > { %1751 = vperm.xlu0 %4829, %v569_v57   ;;  %8282 = vst [vmem:[#allocation29_spill] sm:$0xff] %v6432_v11 }
 0x65c   : > { %v6425_v10 = vpop.permute.xlu2 %1646 }
 0x65d   : > { %v6427_v46 = vpop.permute.xlu0 %1068  ;;  %1756 = vperm.xlu1 %4827, %v570_v2   ;;  %v8170_v2 = vrot.slane %v5546_v9, 5 }
 0x65f   : > { %v1067_v4 = vpop.permute.xlu1 %1066  ;;  %v1213_v25 = vperm.slane %v8170_v2, 0 }
 0x661   : > { %v1405_v1 = vmul.f32 %v6276_v15, %v1213_v25  ;;  %v1214_v15 = vperm.slane %v8175_v60, 0  ;;  %v8285_v60 = vld [vmem:[#allocation32_spill] sm:$0xff] }
 0x662   : > { %4657 = vmatmul.msk.f32.gmra.mxu2 %vm618_vm1, %v1403_v29  ;;  %v6452_v50 = vpop.f32.mrf.mxu2  ;;  %v566_v29 = vld [vmem:[%s6148_s15 + $0xa8] sm:$0xff]  ;;  %v1129_v51 = vadd.f32 %v8285_v60, %v8281_v23 }
 0x663   : > { %1771 = vperm.xlu0 %4829, %v573_v39   ;;  %8283 = vst [vmem:[#allocation14_spill] sm:$0xff] %v6452_v50 }
 0x664   : > { %v6437_v14 = vpop.permute.xlu2 %1661 }
 0x665   : > { %v6439_v62 = vpop.permute.xlu0 %1072  ;;  %1766 = vperm.xlu1 %4827, %v572_v22  }
 0x666   : > { %v3600_v58 = vpop.f32.mrf.mxu0 }
 0x667   : > { %v6444_v45 = vadd.f32 %v3600_v58, %v6270_v3  ;;  %v6446_v34 = vpop.permute.xlu1 %1070 }
 0x669   : > { %v4709_v57 = vmul.f32 -1.442695, %v6444_v45 }
 0x66a   : > { %4658 = vmatmul.msk.f32.gmra.mxu2 %vm618_vm1, %v1404_v44  ;;  %v576_v44 = vld [vmem:[%s6148_s15 + $0xf8] sm:$0xff]  ;;  %v1569_v2 = vpop.f32.mrf.mxu2 }
 0x66b   : > { %4873 = vpow2.f32 %v4709_v57  ;;  %1741 = vperm.xlu0 %4829, %v567_v40  }
 0x66c   : > { %v1677_v39 = vpop.permute.xlu2 %1676 }
 0x66d   : > { %v6456_v22 = vpop.permute.xlu0 %1076  ;;  %1736 = vperm.xlu1 %4827, %v566_v29   ;;  %v575_v29 = vld [vmem:[%s6148_s15 + $0xf0] sm:$0xff]  ;;  %v6490_v12 = vadd.f32 %v1677_v39, %v6420_v16  ;;  %s8324_s15 = smov 32  }
 0x66e   : > { %v3603_v18 = vpop.f32.mrf.mxu0 }
 0x66f   : > { %v6461_v58 = vadd.f32 %v3603_v18, %v6270_v3  ;;  %v6463_v63 = vpop.permute.xlu1 %1074  ;;  %v1884_v60 = vsel %vm618_vm1, %v6490_v12, -inf }
 0x670   : > { %v1885_v11 = vrot.slane %v1884_v60, 4 }
 0x671   : > { %v4874_v57 = vpop.eup %4873  ;;  %v4710_v40 = vmul.f32 -1.442695, %v6461_v58 }
 0x672   : > { %v3666_v30 = vadd.f32 1.0, %v4874_v57  ;;  %4659 = vmatmul.msk.f32.gmra.mxu2 %vm618_vm1, %v1405_v1 }
 0x673   : > { %4875 = vpow2.f32 %v4710_v40  ;;  %1786 = vperm.xlu0 %4829, %v576_v44   ;;  %v1406_v44 = vmul.f32 %v6297_v47, %v1214_v15  ;;  %v1145_v40 = vadd.f32 %v1067_v4, %v5546_v9 }
 0x674   : > { %4877 = vrcp.f32 %v3666_v30  ;;  %v1692_v18 = vpop.permute.xlu2 %1691  ;;  %v3729_v41 = vand.u32 2147483647, %v3666_v30  ;;  %vm3725_vm5 = vweird.f32 %v3666_v30 }
 0x675   : > { %v6471_v8 = vadd.f32 %v1692_v18, %v1569_v2  ;;  %v6473_v17 = vpop.permute.xlu0 %1080  ;;  %1781 = vperm.xlu1 %4827, %v575_v29   ;;  %v8178_v29 = vrot.slane %v5546_v9, 7 }
 0x676   : > { %v3606_v1 = vpop.f32.mrf.mxu0  ;;  %vm3730_vm7 = vcmp.eq.f32.partialorder %v3729_v41, 8.507059e+37 }
 0x677   : > { %8284 = vst [vmem:[#allocation30_spill] sm:$0xff] %v6471_v8  ;;  %v1335_v25 = vpop.permute.xlu1 %1334  ;;  %v6485_v57 = vadd.f32 %v3606_v1, %v6270_v3  ;;  %v1215_v16 = vperm.slane %v8178_v29, 0 }
 0x679   : > { %v4876_v2 = vpop.eup %4875  ;;  %v4711_v15 = vmul.f32 -1.442695, %v6485_v57 }
 0x67a   : > { %v4878_v18 = vpop.eup %4877  ;;  %v6492_v52 = vadd.f32 1.0, %v4876_v2  ;;  %4660 = vmatmul.msk.f32.gmra.mxu2 %vm618_vm1, %v1406_v44  ;;  %v3731_v44 = vand.u32 2147483648, %v3666_v30 }
 0x67b   : > { %v3721_v47 = vmul.f32 %v4878_v18, %v3666_v30  ;;  %2463 = vrot.lane.b32.xlu0 %v1145_v40, %s5216_s16  ;;  %vm3726_vm4 = vweird.f32 %v4878_v18 }
 0x67c   : > { %4879 = vrcp.f32 %v6492_v52  ;;  %v6500_v4 = vpop.permute.xlu2 %1706  ;;  %vm3727_vm6 = vmor %vm3725_vm5, %vm3726_vm4  ;;  %v3746_v41 = vand.u32 2147483648, %v6492_v52  ;;  %vm3740_vm9 = vweird.f32 %v6492_v52 }
 0x67d   : > { %8286 = vst [vmem:[#allocation31_spill] sm:$0xff] %v6500_v4  ;;  %v3722_v1 = vsub.f32 1.0, %v3721_v47  ;;  %v1085_v39 = vpop.permute.xlu0 %1084  ;;  %2431 = vrot.lane.b32.xlu1 %v1129_v51, %s5216_s16  ;;  %4881 = vpow2.f32 %v4711_v15  ;;  %v1407_v4 = vmul.f32 %v1335_v25, %v1215_v16  ;;  %v1138_v51 = vadd.f32 %v6187_v20, %v5764_v13 }
 0x67e   : > { %v1154_v2 = vadd.f32 %v1085_v39, %v8268_v0  ;;  %v3609_v7 = vpop.f32.mrf.mxu0  ;;  %v3732_v39 = vor.u32 1.1754944e-38, %v3731_v44  ;;  %v1153_v25 = vadd.f32 %v6354_v56, %v8268_v0  ;;  %v1136_v56 = vadd.f32 %v6171_v59, %v5764_v13 }
 0x67f   : > { %v3723_v40 = vmul.f32 %v4878_v18, %v3722_v1  ;;  %v1337_v50 = vpop.permute.xlu1 %1336  ;;  %v6509_v47 = vadd.f32 %v3609_v7, %v6270_v3  ;;  %v1128_v59 = vadd.f32 %v6073_v27, %v8281_v23 }
 0x680   : > { %2481 = vrot.lane.b32.xlu2 %v1154_v2, %s5216_s16 }
 0x681   : > { %v3724_v29 = vadd.f32 %v4878_v18, %v3723_v40  ;;  %v4712_v1 = vmul.f32 -1.442695, %v6509_v47  ;;  %v1886_v40 = vmax.f32 %v1884_v60, %v1885_v11 }
 0x682   : > { %v4880_v15 = vpop.eup %4879  ;;  %4661 = vmatmul.msk.f32.gmra.mxu2 %vm618_vm1, %v1407_v4 }
 0x683   : > { %v3728_v7 = vsel %vm3727_vm6, %v4878_v18, %v3724_v29  ;;  %v3736_v16 = vmul.f32 %v4880_v15, %v6492_v52  ;;  %2449 = vrot.lane.b32.xlu0 %v1138_v51, %s5216_s16  ;;  %v4882_v20 = vpop.eup %4881  ;;  %4883 = vpow2.f32 %v4712_v1  ;;  %v1216_v29 = vperm.slane %v8268_v0, 0 }
 0x684   : > { %v3733_v2 = vsel %vm3730_vm7, %v3732_v39, %v3728_v7  ;;  %v6520_v30 = vpop.permute.xlu2 %1721  ;;  %v6523_v8 = vadd.f32 1.0, %v4882_v20  ;;  %vm3741_vm8 = vweird.f32 %v4880_v15  ;;  %v1887_v1 = vrot.slane %v1886_v40, 2 }
 0x685   : > { %v3858_v44 = vmul.f32 %v3733_v2, %v6444_v45  ;;  %v3737_v38 = vsub.f32 1.0, %v3736_v16  ;;  %v6525_v4 = vpop.permute.xlu0 %1340  ;;  %2479 = vrot.lane.b32.xlu1 %v1153_v25, %s5216_s16  ;;  %v3744_v45 = vand.u32 2147483647, %v6492_v52  ;;  %v1408_v60 = vmul.f32 %v1337_v50, %v1216_v29  ;;  %vm3742_vm10 = vmor %vm3740_vm9, %vm3741_vm8 }
 0x686   : > { %v3612_v18 = vpop.f32.mrf.mxu0  ;;  %4885 = vrcp.f32 %v6523_v8  ;;  %v1146_v7 = vadd.f32 %v6427_v46, %v5546_v9  ;;  %v3747_v16 = vor.u32 1.1754944e-38, %v3746_v41  ;;  %v8180_v50 = vrot.slane %v8268_v0, 1 }
 0x687   : > { %v3738_v51 = vmul.f32 %v4880_v15, %v3737_v38  ;;  %4721 = vmatmul.msk.f32.gmra.mxu3 %vm618_vm1, %v3858_v44  ;;  %v1339_v11 = vpop.permute.xlu1 %1338  ;;  %v6536_v39 = vadd.f32 %v3612_v18, %v6270_v3  ;;  %vm3745_vm11 = vcmp.eq.f32.partialorder %v3744_v45, 8.507059e+37  ;;  %v1888_v29 = vmax.f32 %v1886_v40, %v1887_v1 }
 0x688   : > { %2445 = vrot.lane.b32.xlu2 %v1136_v56, %s5216_s16  ;;  %vm3755_vm13 = vweird.f32 %v6523_v8 }
 0x689   : > { %v3739_v25 = vadd.f32 %v4880_v15, %v3738_v51  ;;  %v4884_v38 = vpop.eup %4883  ;;  %v4713_v27 = vmul.f32 -1.442695, %v6536_v39  ;;  %v1217_v51 = vperm.slane %v8180_v50, 0 }
 0x68a   : > { %4662 = vmatmul.msk.f32.gmra.mxu2 %vm618_vm1, %v1408_v60  ;;  %v6546_v2 = vadd.f32 1.0, %v4884_v38  ;;  %v3761_v38 = vand.u32 2147483648, %v6523_v8 }
 0x68b   : > { %v3743_v20 = vsel %vm3742_vm10, %v4880_v15, %v3739_v25  ;;  %2429 = vrot.lane.b32.xlu0 %v1128_v59, %s5216_s16  ;;  %v1147_v15 = vadd.f32 %v6446_v34, %v5546_v9  ;;  %v8181_v59 = vrot.slane %v8268_v0, 2  ;;  %v1409_v1 = vmul.f32 %v1339_v11, %v1217_v51 }
 0x68c   : > { %v3748_v44 = vsel %vm3745_vm11, %v3747_v16, %v3743_v20  ;;  %v6550_v52 = vpop.permute.xlu2 %1761  ;;  %v4886_v56 = vpop.eup %4885  ;;  %4887 = vrcp.f32 %v6546_v2  ;;  %v1139_v34 = vadd.f32 %v6357_v54, %v5764_v13  ;;  %v1889_v25 = vrot.slane %v1888_v29, 1 }
 0x68d   : > { %8287 = vst [vmem:[#allocation16_spill] sm:$0xff] %v6550_v52  ;;  %v3859_v46 = vmul.f32 %v3748_v44, %v6461_v58  ;;  %v6554_v41 = vpop.permute.xlu0 %1092  ;;  %2465 = vrot.lane.b32.xlu1 %v1146_v7, %s5216_s16  ;;  %v3751_v18 = vmul.f32 %v4886_v56, %v6523_v8  ;;  %4889 = vpow2.f32 %v4713_v27  ;;  %vm3756_vm12 = vweird.f32 %v4886_v56 }
 0x68e   : > { %v3615_v45 = vpop.f32.mrf.mxu0  ;;  %v3759_v20 = vand.u32 2147483647, %v6523_v8  ;;  %v1131_v11 = vadd.f32 %v6083_v6, %v8281_v23  ;;  %v1890_v51 = vmax.f32 %v1888_v29, %v1889_v25  ;;  %vm3757_vm14 = vmor %vm3755_vm13, %vm3756_vm12  ;;  %v1218_v6 = vperm.slane %v8181_v59, 0 }
 0x68f   : > { %v6563_v40 = vadd.f32 %v3615_v45, %v6270_v3  ;;  %4722 = vmatmul.msk.f32.gmra.mxu3 %vm618_vm1, %v3859_v46  ;;  %v6566_v58 = vpop.permute.xlu1 %1088  ;;  %v3752_v60 = vsub.f32 1.0, %v3751_v18  ;;  %v1132_v18 = vadd.f32 %v6288_v55, %v8281_v23  ;;  %v3762_v45 = vor.u32 1.1754944e-38, %v3761_v38 }
 0x690   : > { %2467 = vrot.lane.b32.xlu2 %v1147_v15, %s5216_s16  ;;  %vm3760_vm15 = vcmp.eq.f32.partialorder %v3759_v20, 8.507059e+37  ;;  %v3776_v50 = vand.u32 2147483648, %v6546_v2  ;;  %v1410_v55 = vmul.f32 %v6525_v4, %v1218_v6  ;;  %v1152_v20 = vadd.f32 %v6473_v17, %v8268_v0 }
 0x691   : > { %v4714_v7 = vmul.f32 -1.442695, %v6563_v40  ;;  %v3753_v16 = vmul.f32 %v4886_v56, %v3752_v60  ;;  %vm3770_vm2 = vweird.f32 %v6546_v2 }
 0x692   : > { %4663 = vmatmul.msk.f32.gmra.mxu2 %vm618_vm1, %v1409_v1  ;;  %v4888_v27 = vpop.eup %4887  ;;  %v3777_v4 = vor.u32 1.1754944e-38, %v3776_v50 }
 0x693   : > { %4891 = vpow2.f32 %v4714_v7  ;;  %2451 = vrot.lane.b32.xlu0 %v1139_v34, %s5216_s16  ;;  %v3754_v44 = vadd.f32 %v4886_v56, %v3753_v16  ;;  %v3766_v54 = vmul.f32 %v4888_v27, %v6546_v2  ;;  %v4890_v15 = vpop.eup %4889  ;;  %v3774_v16 = vand.u32 2147483647, %v6546_v2 }
 0x694   : > { %v6581_v46 = vpop.permute.xlu2 %1731  ;;  %v3670_v34 = vadd.f32 1.0, %v4890_v15  ;;  %vm3771_vm0 = vweird.f32 %v4888_v27 }
 0x695   : > { %v6587_v60 = vpop.permute.xlu0 %1636  ;;  %2435 = vrot.lane.b32.xlu1 %v1131_v11, %s5216_s16  ;;  %v3758_v1 = vsel %vm3757_vm14, %v4886_v56, %v3754_v44  ;;  %v3767_v8 = vsub.f32 1.0, %v3766_v54  ;;  %vm3772_vm3 = vmor %vm3770_vm2, %vm3771_vm0  ;;  %v2054_v54 = vmax.f32 %v1890_v51, 0.0  ;;  %vm3775_vm4 = vcmp.eq.f32.partialorder %v3774_v16, 8.507059e+37 }
 0x696   : > { %v3763_v7 = vsel %vm3760_vm15, %v3762_v45, %v3758_v1  ;;  %4893 = vrcp.f32 %v3670_v34  ;;  %vm3785_vm6 = vweird.f32 %v3670_v34 }
 0x697   : > { %v6593_v29 = vpop.permute.xlu1 %1094  ;;  %v3860_v25 = vmul.f32 %v3763_v7, %v6485_v57  ;;  %v3768_v38 = vmul.f32 %v4888_v27, %v3767_v8  ;;  %v1144_v57 = vadd.f32 %v6241_v43, %v5546_v9  ;;  %v1156_v43 = vadd.f32 %v6566_v58, %v8268_v0 }
 0x698   : > { %2437 = vrot.lane.b32.xlu2 %v1132_v18, %s5216_s16  ;;  %v1140_v8 = vadd.f32 %v6204_v24, %v5764_v13 }
 0x699   : > { %v4892_v56 = vpop.eup %4891  ;;  %v3769_v11 = vadd.f32 %v4888_v27, %v3768_v38  ;;  %4723 = vmatmul.msk.f32.gmra.mxu3 %vm618_vm1, %v3860_v25  ;;  %v3791_v25 = vand.u32 2147483648, %v3670_v34 }
 0x69a   : > { %v6600_v44 = vadd.f32 1.0, %v4892_v56  ;;  %4664 = vmatmul.msk.f32.gmra.mxu2 %vm618_vm1, %v1410_v55  ;;  %v3789_v55 = vand.u32 2147483647, %v3670_v34 }
 0x69b   : > { %2477 = vrot.lane.b32.xlu0 %v1152_v20, %s5216_s16  ;;  %v3773_v15 = vsel %vm3772_vm3, %v4888_v27, %v3769_v11  ;;  %v2086_v27 = vsub.f32 %v6490_v12, %v2054_v54  ;;  %v1155_v12 = vadd.f32 %v6374_v26, %v8268_v0  ;;  %v1149_v20 = vadd.f32 %v6463_v63, %v5546_v9 }
 0x69c   : > { %4895 = vrcp.f32 %v6600_v44  ;;  %v6608_v17 = vpop.permute.xlu2 %1776  ;;  %v3778_v2 = vsel %vm3775_vm4, %v3777_v4, %v3773_v15  ;;  %v4894_v45 = vpop.eup %4893  ;;  %vm3790_vm8 = vcmp.eq.f32.partialorder %v3789_v55, 8.507059e+37  ;;  %v3792_v26 = vor.u32 1.1754944e-38, %v3791_v25 }
 0x69d   : > { %v6610_v18 = vpop.permute.xlu0 %1651  ;;  %2461 = vrot.lane.b32.xlu1 %v1144_v57, %s5216_s16  ;;  %v3861_v6 = vmul.f32 %v3778_v2, %v6509_v47  ;;  %v3781_v50 = vmul.f32 %v4894_v45, %v3670_v34  ;;  %vm3786_vm5 = vweird.f32 %v4894_v45  ;;  %v2127_v38 = vmul.f32 1.442695, %v2086_v27 }
 0x69e   : > { %vm3787_vm7 = vmor %vm3785_vm6, %vm3786_vm5  ;;  %v3806_v54 = vand.u32 2147483648, %v6600_v44  ;;  %vm3800_vm10 = vweird.f32 %v6600_v44  ;;  %v1148_v25 = vadd.f32 %v6439_v62, %v5546_v9  ;;  %v1142_v62 = vadd.f32 %v6221_v32, %v5764_v13 }
 0x69f   : > { %v1642_v1 = vpop.permute.xlu1 %1641  ;;  %v3782_v7 = vsub.f32 1.0, %v3781_v50  ;;  %4897 = vpow2.f32 %v2127_v38 }
 0x6a0   : > { %v6618_v51 = vadd.f32 %v1642_v1, %v6246_v35  ;;  %2485 = vrot.lane.b32.xlu2 %v1156_v43, %s5216_s16  ;;  %v3804_v43 = vand.u32 2147483647, %v6600_v44  ;;  %v1133_v1 = vadd.f32 %v6236_v21, %v8281_v23 }
 0x6a1   : > { %4724 = vmatmul.msk.f32.gmra.mxu3 %vm618_vm1, %v3861_v6  ;;  %v3783_v58 = vmul.f32 %v4894_v45, %v3782_v7  ;;  %v3807_v7 = vor.u32 1.1754944e-38, %v3806_v54  ;;  %v6670_v54 = vadd.f32 %v6412_v5, %v6208_v33  ;;  %v1135_v33 = vadd.f32 %v6300_v37, %v8281_v23 }
 0x6a2   : > { %v4896_v16 = vpop.eup %4895  ;;  %v1835_v47 = vsel %vm618_vm1, %v6618_v51, -inf  ;;  %vm3805_vm12 = vcmp.eq.f32.partialorder %v3804_v43, 8.507059e+37 }
 0x6a3   : > { %v3796_v35 = vmul.f32 %v4896_v16, %v6600_v44  ;;  %2453 = vrot.lane.b32.xlu0 %v1140_v8, %s5216_s16  ;;  %v1836_v24 = vrot.slane %v1835_v47, 4  ;;  %v3784_v11 = vadd.f32 %v4894_v45, %v3783_v58  ;;  %vm3801_vm9 = vweird.f32 %v4896_v16 }
 0x6a4   : > { %v6630_v56 = vpop.permute.xlu2 %1746  ;;  %vm3802_vm11 = vmor %vm3800_vm10, %vm3801_vm9 }
 0x6a5   : > { %8288 = vst [vmem:[#allocation15_spill] sm:$0xff] %v6630_v56  ;;  %v3797_v57 = vsub.f32 1.0, %v3796_v35  ;;  %v6634_v4 = vpop.permute.xlu0 %1666  ;;  %2483 = vrot.lane.b32.xlu1 %v1155_v12, %s5216_s16  ;;  %v1837_v15 = vmax.f32 %v1835_v47, %v1836_v24  ;;  %v3788_v2 = vsel %vm3787_vm7, %v4894_v45, %v3784_v11  ;;  %v6656_v35 = vpop.eup %4897 }
 0x6a6   : > { %v3793_v63 = vsel %vm3790_vm8, %v3792_v26, %v3788_v2  ;;  %v1157_v26 = vadd.f32 %v6392_v53, %v8268_v0  ;;  %v1821_v2 = vsel %vm618_vm1, %v6670_v54, -inf  ;;  %v1572_v53 = vpop.f32.mrf.mxu2 }
 0x6a7   : > { %v3798_v6 = vmul.f32 %v4896_v16, %v3797_v57  ;;  %v6639_v50 = vpop.permute.xlu1 %1656  ;;  %v1838_v34 = vrot.slane %v1837_v15, 2  ;;  %v3862_v27 = vmul.f32 %v3793_v63, %v6536_v39  ;;  %v1822_v43 = vrot.slane %v1821_v2, 4 }
 0x6a8   : > { %2471 = vrot.lane.b32.xlu2 %v1149_v20, %s5216_s16 }
 0x6a9   : > { %v3799_v8 = vadd.f32 %v4896_v16, %v3798_v6  ;;  %v3618_v45 = vpop.f32.mrf.mxu0  ;;  %v1839_v55 = vmax.f32 %v1837_v15, %v1838_v34  ;;  %4725 = vmatmul.msk.f32.gmra.mxu3 %vm618_vm1, %v3862_v27  ;;  %v1134_v27 = vadd.f32 %v6308_v61, %v8281_v23 }
 0x6aa   : > { %v6650_v12 = vadd.f32 %v3618_v45, %v6270_v3  ;;  %v1823_v45 = vmax.f32 %v1821_v2, %v1822_v43 }
 0x6ab   : > { %v3803_v47 = vsel %vm3802_vm11, %v4896_v16, %v3799_v8  ;;  %2439 = vrot.lane.b32.xlu0 %v1133_v1, %s5216_s16  ;;  %v1840_v39 = vrot.slane %v1839_v55, 1  ;;  %v1150_v1 = vadd.f32 %v6456_v22, %v5546_v9  ;;  %v1159_v22 = vadd.f32 %v6593_v29, %v8268_v0 }
 0x6ac   : > { %v3808_v21 = vsel %vm3805_vm12, %v3807_v7, %v3803_v47  ;;  %v2448_v58 = vpop.permute.xlu2 %2447  ;;  %v4715_v24 = vmul.f32 -1.442695, %v6650_v12  ;;  %vm3979_vm11 = vcmask 195584  }
 0x6ad   : > { %v6653_v44 = vpop.permute.xlu0 %1681  ;;  %2469 = vrot.lane.b32.xlu1 %v1148_v25, %s5216_s16  ;;  %v1841_v16 = vmax.f32 %v1839_v55, %v1840_v39  ;;  %v3863_v38 = vmul.f32 %v3808_v21, %v6563_v40  ;;  %v6663_v20 = vmul.f32 %v6656_v35, %v2448_v58  ;;  %v1141_v40 = vadd.f32 %v6401_v48, %v5764_v13 }
 0x6ae   : > { %4899 = vpow2.f32 %v4715_v24 }
 0x6af   : > { %8289 = vst [vmem:[#allocation17_spill] sm:$0xff] %v6663_v20  ;;  %v1672_v11 = vpop.permute.xlu1 %1671  ;;  %v2047_v57 = vmax.f32 %v1841_v16, 0.0  ;;  %v6711_v16 = vadd.f32 %v6425_v10, %v6263_v42  ;;  %v6725_v10 = vadd.f32 %v6437_v14, %v6352_v36  ;;  %v8309_v20 = vmov 0.0  }
 0x6b0   : > { %2457 = vrot.lane.b32.xlu2 %v1142_v62, %s5216_s16  ;;  %v6683_v5 = vadd.f32 %v1672_v11, %v6403_v19  ;;  %v1824_v62 = vrot.slane %v1823_v45, 2  ;;  %v1158_v11 = vadd.f32 %v6554_v41, %v8268_v0  ;;  %v8312_v0 = vld [vmem:[#allocation28_spill] sm:$0xff] }
 0x6b1   : > { %v2079_v32 = vsub.f32 %v6618_v51, %v2047_v57  ;;  %4726 = vmatmul.msk.f32.gmra.mxu3 %vm618_vm1, %v3863_v38  ;;  %v1143_v38 = vadd.f32 %v6417_v28, %v5764_v13  ;;  %v1842_v42 = vsel %vm618_vm1, %v6711_v16, -inf }
 0x6b2   : > { %v1877_v37 = vsel %vm618_vm1, %v6683_v5, -inf }
 0x6b3   : > { %2487 = vrot.lane.b32.xlu0 %v1157_v26, %s5216_s16  ;;  %v2113_v15 = vmul.f32 1.442695, %v2079_v32  ;;  %v1878_v7 = vrot.slane %v1877_v37, 4 }
 0x6b4   : > { %v4900_v48 = vpop.eup %4899  ;;  %v3621_v34 = vpop.f32.mrf.mxu0 }
 0x6b5   : > { %v1697_v6 = vpop.permute.xlu0 %1696  ;;  %2455 = vrot.lane.b32.xlu1 %v1141_v40, %s5216_s16  ;;  %4901 = vpow2.f32 %v2113_v15  ;;  %v3672_v63 = vadd.f32 1.0, %v4900_v48  ;;  %v6695_v19 = vadd.f32 %v3621_v34, %v6270_v3  ;;  %v2434_v25 = vpop.permute.xlu2 %2433  ;;  %v1879_v24 = vmax.f32 %v1877_v37, %v1878_v7 }
 0x6b6   : > { %v6718_v26 = vadd.f32 %v1697_v6, %v1572_v53  ;;  %v1825_v40 = vmax.f32 %v1823_v45, %v1824_v62  ;;  %v1843_v48 = vrot.slane %v1842_v42, 4 }
 0x6b7   : > { %v6685_v51 = vpop.permute.xlu1 %1686  ;;  %4903 = vrcp.f32 %v3672_v63  ;;  %v4716_v21 = vmul.f32 -1.442695, %v6695_v19  ;;  %v3821_v28 = vand.u32 2147483648, %v3672_v63  ;;  %v3819_v2 = vand.u32 2147483647, %v3672_v63 }
 0x6b8   : > { %2443 = vrot.lane.b32.xlu2 %v1135_v33, %s5216_s16  ;;  %8292 = vst [vmem:[#allocation33_spill] sm:$0xff] %v6718_v26  ;;  %v1880_v33 = vrot.slane %v1879_v24, 2  ;;  %vm3815_vm14 = vweird.f32 %v3672_v63  ;;  %v1826_v14 = vrot.slane %v1825_v40, 1 }
 0x6b9   : > { %4905 = vpow2.f32 %v4716_v21  ;;  %v3822_v37 = vor.u32 1.1754944e-38, %v3821_v28  ;;  %vm3820_vm0 = vcmp.eq.f32.partialorder %v3819_v2, 8.507059e+37 }
 0x6ba   : > { %v1881_v45 = vmax.f32 %v1879_v24, %v1880_v33 }
 0x6bb   : > { %2473 = vrot.lane.b32.xlu0 %v1150_v1, %s5216_s16  ;;  %v6698_v8 = vpop.eup %4901  ;;  %v1863_v1 = vsel %vm618_vm1, %v6725_v10, -inf }
 0x6bc   : > { %8290 = vst [vmem:[#allocation20_spill] sm:$0xff] %v6698_v8  ;;  %v6706_v61 = vmul.f32 %v6698_v8, %v2434_v25  ;;  %v3624_v32 = vpop.f32.mrf.mxu0  ;;  %v1864_v21 = vrot.slane %v1863_v1, 4 }
 0x6bd   : > { %v6700_v55 = vpop.permute.xlu0 %1711  ;;  %2441 = vrot.lane.b32.xlu1 %v1134_v27, %s5216_s16  ;;  %v1575_v47 = vpop.f32.mrf.mxu2  ;;  %v6731_v6 = vadd.f32 %v3624_v32, %v6270_v3  ;;  %v1151_v3 = vadd.f32 %v6328_v49, %v5546_v9 }
 0x6be   : > { %8291 = vst [vmem:[#allocation32_spill] sm:$0xff] %v6706_v61  ;;  %v4904_v58 = vpop.eup %4903  ;;  %v1865_v32 = vmax.f32 %v1863_v1, %v1864_v21 }
 0x6bf   : > { %v1702_v39 = vpop.permute.xlu1 %1701  ;;  %v3811_v29 = vmul.f32 %v4904_v58, %v3672_v63  ;;  %vm3816_vm13 = vweird.f32 %v4904_v58  ;;  %v4906_v36 = vpop.eup %4905  ;;  %v4717_v25 = vmul.f32 -1.442695, %v6731_v6  ;;  %v1844_v63 = vmax.f32 %v1842_v42, %v1843_v48 }
 0x6c0   : > { %2491 = vrot.lane.b32.xlu2 %v1159_v22, %s5216_s16  ;;  %vm3817_vm15 = vmor %vm3815_vm14, %vm3816_vm13  ;;  %v3673_v7 = vadd.f32 1.0, %v4906_v36 }
 0x6c1   : > { %v3812_v57 = vsub.f32 1.0, %v3811_v29  ;;  %v1882_v29 = vrot.slane %v1881_v45, 1 }
 0x6c2   : > { %4907 = vrcp.f32 %v3673_v7  ;;  %vm3830_vm3 = vweird.f32 %v3673_v7 }
 0x6c3   : > { %2459 = vrot.lane.b32.xlu0 %v1143_v38, %s5216_s16  ;;  %v3813_v15 = vmul.f32 %v4904_v58, %v3812_v57  ;;  %v1827_v38 = vmax.f32 %v1825_v40, %v1826_v14  ;;  %4909 = vpow2.f32 %v4717_v25  ;;  %v1845_v57 = vrot.slane %v1844_v63, 2  ;;  %v8297_v25 = vld [vmem:[#allocation29_spill] sm:$0xff] }
 0x6c4   : > { %v6755_v40 = vadd.f32 %v6587_v60, %v6224_v31  ;;  %v1883_v33 = vmax.f32 %v1881_v45, %v1882_v29  ;;  %v1866_v14 = vrot.slane %v1865_v32, 2 }
 0x6c5   : > { %v6727_v41 = vpop.permute.xlu0 %1726  ;;  %2489 = vrot.lane.b32.xlu1 %v1158_v11, %s5216_s16  ;;  %v6733_v53 = vpop.f32.mrf.mxu2  ;;  %v3814_v43 = vadd.f32 %v4904_v58, %v3813_v15  ;;  %v6743_v11 = vadd.f32 %v1702_v39, %v1575_v47  ;;  %v8295_v39 = vld [vmem:[#allocation30_spill] sm:$0xff]  ;;  %v8296_v15 = vld [vmem:[#allocation27_spill] sm:$0xff]  ;;  %v1846_v36 = vmax.f32 %v1844_v63, %v1845_v57  ;;  %v6775_v63 = vadd.f32 %v6653_v44, %v8297_v25 }
 0x6c6   : > { %v1905_v28 = vsel %vm618_vm1, %v8295_v39, -inf  ;;  %v6761_v2 = vadd.f32 %v6610_v18, %v8296_v15  ;;  %v1828_v60 = vsel %vm618_vm1, %v6755_v40, -inf  ;;  %v2053_v18 = vmax.f32 %v1883_v33, 0.0 }
 0x6c7   : > { %v6735_v34 = vpop.permute.xlu1 %1716  ;;  %v3818_v27 = vsel %vm3817_vm15, %v4904_v58, %v3814_v43  ;;  %v1906_v31 = vrot.slane %v1905_v28, 4  ;;  %v1829_v29 = vrot.slane %v1828_v60, 4  ;;  %vm4181_vm15 = vcmask 1041409  }
 0x6c8   : > { %v3823_v22 = vsel %vm3820_vm0, %v3822_v37, %v3818_v27  ;;  %v4908_v47 = vpop.eup %4907  ;;  %vm4184_vm0 = vcmask 1042434  }
 0x6c9   : > { %v3864_v62 = vmul.f32 %v3823_v22, %v6650_v12  ;;  %v6749_v49 = vpop.f32.mrf.mxu3  ;;  %v2045_v12 = vmax.f32 %v1827_v38, 0.0  ;;  %v3826_v43 = vmul.f32 %v4908_v47, %v3673_v7  ;;  %v4910_v1 = vpop.eup %4909  ;;  %v3836_v22 = vand.u32 2147483648, %v3673_v7 }
 0x6ca   : > { %v6771_v45 = vadd.f32 1.0, %v4910_v1  ;;  %vm3831_vm2 = vweird.f32 %v4908_v47  ;;  %v1867_v38 = vmax.f32 %v1865_v32, %v1866_v14  ;;  %v1907_v57 = vmax.f32 %v1905_v28, %v1906_v31 }
 0x6cb   : > { %4727 = vmatmul.msk.f32.gmra.mxu3 %vm618_vm1, %v3864_v62  ;;  %v2077_v37 = vsub.f32 %v6670_v54, %v2045_v12  ;;  %v3827_v27 = vsub.f32 1.0, %v3826_v43  ;;  %v3834_v54 = vand.u32 2147483647, %v3673_v7  ;;  %v1847_v62 = vrot.slane %v1846_v36, 1  ;;  %vm3832_vm4 = vmor %vm3830_vm3, %vm3831_vm2 }
 0x6cc   : > { %4911 = vrcp.f32 %v6771_v45  ;;  %v2085_v43 = vsub.f32 %v6683_v5, %v2053_v18  ;;  %v3837_v44 = vor.u32 1.1754944e-38, %v3836_v22  ;;  %v1868_v59 = vrot.slane %v1867_v38, 1 }
 0x6cd   : > { %v6746_v58 = vpop.permute.xlu0 %1751  ;;  %2475 = vrot.lane.b32.xlu1 %v1151_v3, %s5216_s16  ;;  %v1581_v24 = vpop.f32.mrf.mxu2  ;;  %v1849_v3 = vsel %vm618_vm1, %v6761_v2, -inf  ;;  %v3828_v21 = vmul.f32 %v4908_v47, %v3827_v27  ;;  %v2109_v1 = vmul.f32 1.442695, %v2077_v37  ;;  %v1891_v27 = vsel %vm618_vm1, %v6775_v63, -inf }
 0x6ce   : > { %8293 = vst [vmem:[#allocation34_spill] sm:$0xff] %v6746_v58  ;;  %v6764_v48 = vadd.f32 %v6700_v55, %v1581_v24  ;;  %v1850_v12 = vrot.slane %v1849_v3, 4  ;;  %vm3835_vm5 = vcmp.eq.f32.partialorder %v3834_v54, 8.507059e+37  ;;  %v1848_v25 = vmax.f32 %v1846_v36, %v1847_v62 }
 0x6cf   : > { %v6751_v42 = vpop.permute.xlu1 %1756  ;;  %v3829_v15 = vadd.f32 %v4908_v47, %v3828_v21  ;;  %v1908_v31 = vrot.slane %v1907_v57, 2  ;;  %v1892_v18 = vrot.slane %v1891_v27, 4  ;;  %v2125_v22 = vmul.f32 1.442695, %v2085_v43  ;;  %v8299_v43 = vld [vmem:[#allocation24_spill] sm:$0xff] }
 0x6d0   : > { %8294 = vst [vmem:[#allocation35_spill] sm:$0xff] %v6751_v42  ;;  %v1830_v42 = vmax.f32 %v1828_v60, %v1829_v29  ;;  %v1851_v21 = vmax.f32 %v1849_v3, %v1850_v12  ;;  %4913 = vpow2.f32 %v2109_v1  ;;  %v2048_v36 = vmax.f32 %v1848_v25, 0.0  ;;  %v8300_v25 = vld [vmem:[#allocation14_spill] sm:$0xff] }
 0x6d1   : > { %v6780_v33 = vpop.f32.mrf.mxu3  ;;  %v3833_v32 = vsel %vm3832_vm4, %v4908_v47, %v3829_v15  ;;  %v1869_v60 = vmax.f32 %v1867_v38, %v1868_v59  ;;  %4915 = vpow2.f32 %v2125_v22  ;;  %v3851_v15 = vand.u32 2147483648, %v6771_v45 }
 0x6d2   : > { %v3838_v28 = vsel %vm3835_vm5, %v3837_v44, %v3833_v32  ;;  %v4912_v5 = vpop.eup %4911  ;;  %v1831_v3 = vrot.slane %v1830_v42, 2  ;;  %v1852_v62 = vrot.slane %v1851_v21, 2  ;;  %v3849_v59 = vand.u32 2147483647, %v6771_v45 }
 0x6d3   : > { %v3865_v7 = vmul.f32 %v3838_v28, %v6695_v19  ;;  %v3841_v47 = vmul.f32 %v4912_v5, %v6771_v45  ;;  %v1909_v19 = vmax.f32 %v1907_v57, %v1908_v31  ;;  %vm3846_vm6 = vweird.f32 %v4912_v5 }
 0x6d4   : > { %v2080_v57 = vsub.f32 %v6711_v16, %v2048_v36  ;;  %v6807_v28 = vadd.f32 %v6685_v51, %v8300_v25  ;;  %vm3845_vm7 = vweird.f32 %v6771_v45  ;;  %v3852_v16 = vor.u32 1.1754944e-38, %v3851_v15 }
 0x6d5   : > { %v1772_v55 = vpop.permute.xlu0 %1771  ;;  %v1584_v14 = vpop.f32.mrf.mxu2  ;;  %4728 = vmatmul.msk.f32.gmra.mxu3 %vm618_vm1, %v3865_v7  ;;  %v3842_v29 = vsub.f32 1.0, %v3841_v47  ;;  %v1853_v47 = vmax.f32 %v1851_v21, %v1852_v62  ;;  %vm3847_vm8 = vmor %vm3845_vm7, %vm3846_vm6  ;;  %vm3850_vm9 = vcmp.eq.f32.partialorder %v3849_v59, 8.507059e+37  ;;  %vm4187_vm2 = vcmask 1043459  }
 0x6d6   : > { %v6789_v37 = vadd.f32 %v6735_v34, %v1584_v14  ;;  %v1893_v34 = vmax.f32 %v1891_v27, %v1892_v18  ;;  %v6801_v44 = vadd.f32 %v1772_v55, %v8299_v43  ;;  %v1832_v14 = vmax.f32 %v1830_v42, %v1831_v3  ;;  %v5069_v27 = vld [vmem:[%s8129_s11] sm:$0xff]  ;;  %v6815_v22 = vpop.eup %4913 }
 0x6d7   : > { %v6778_v24 = vpop.permute.xlu1 %1766  ;;  %v3843_v32 = vmul.f32 %v4912_v5, %v3842_v29  ;;  %v6812_v31 = vperm.slane %v5069_v27, 3  ;;  %v2051_v55 = vmax.f32 %v1869_v60, 0.0  ;;  %v1910_v29 = vrot.slane %v1909_v19, 1 }
 0x6d8   : > { %v1940_v12 = vsel %vm618_vm1, %v6789_v37, -inf  ;;  %v2017_v51 = vsel %vm618_vm1, %v6801_v44, -inf  ;;  %v1894_v60 = vrot.slane %v1893_v34, 2  ;;  %v1898_v21 = vsel %vm618_vm1, %v6807_v28, -inf }
 0x6d9   : > { %v1941_v38 = vrot.slane %v1940_v12, 4  ;;  %v3931_v1 = vpop.f32.mrf.mxu3  ;;  %8301 = vst [vmem:[#allocation27_spill] sm:$0xff] %v6812_v31  ;;  %v3844_v7 = vadd.f32 %v4912_v5, %v3843_v32  ;;  %v1833_v32 = vrot.slane %v1832_v14, 1  ;;  %v3929_v15 = vadd.f32 %v6780_v33, %v6812_v31 }
 0x6da   : > { %v6786_v52 = vpop.permute.xlu2 %2481  ;;  %v3932_v42 = vadd.f32 %v3931_v1, %v6812_v31  ;;  %v2018_v25 = vrot.slane %v2017_v51, 4  ;;  %v2083_v59 = vsub.f32 %v6725_v10, %v2051_v55  ;;  %v2115_v33 = vmul.f32 1.442695, %v2080_v57 }
 0x6db   : > { %8298 = vst [vmem:[#allocation30_spill] sm:$0xff] %v6786_v52  ;;  %v1942_v18 = vmax.f32 %v1940_v12, %v1941_v38  ;;  %v3848_v43 = vsel %vm3847_vm8, %v4912_v5, %v3844_v7  ;;  %v6823_v12 = vpop.eup %4915  ;;  %v1854_v7 = vrot.slane %v1853_v47, 1  ;;  %v3926_v52 = vadd.f32 %v6749_v49, %v6812_v31 }
 0x6dc   : > { %8302 = vst [vmem:[#allocation29_spill] sm:$0xff] %v6823_v12  ;;  %v3853_v62 = vsel %vm3850_vm9, %v3852_v16, %v3848_v43  ;;  %3996 = vmatpush.msra.mxu0 %v3932_v42  ;;  %v1895_v42 = vmax.f32 %v1893_v34, %v1894_v60  ;;  %v1899_v55 = vrot.slane %v1898_v21, 4  ;;  %v2019_v49 = vmax.f32 %v2017_v51, %v2018_v25 }
 0x6dd   : > { %v6791_v58 = vpop.permute.xlu0 %1741  ;;  %v1587_v36 = vpop.f32.mrf.mxu2  ;;  %v3866_v1 = vmul.f32 %v3853_v62, %v6731_v6  ;;  %v1943_v27 = vrot.slane %v1942_v18, 2  ;;  %v8304_v62 = vld [vmem:[#allocation25_spill] sm:$0xff]  ;;  %v2121_v56 = vmul.f32 1.442695, %v2083_v59  ;;  %v1855_v57 = vmax.f32 %v1853_v47, %v1854_v7 }
 0x6de   : > { %v6833_v5 = vadd.f32 %v6520_v30, %v1587_v36  ;;  %3997 = vmatpush.msra.mxu0 %v3929_v15  ;;  %v1911_v30 = vmax.f32 %v1909_v19, %v1910_v29  ;;  %v1834_v36 = vmax.f32 %v1832_v14, %v1833_v32  ;;  %v6846_v10 = vadd.f32 %v6608_v17, %v8304_v62  ;;  %v8305_v32 = vld [vmem:[#allocation22_spill] sm:$0xff] }
 0x6df   : > { %v6795_v54 = vpop.permute.xlu1 %1736  ;;  %v1944_v43 = vmax.f32 %v1942_v18, %v1943_v27  ;;  %4729 = vmatmul.msk.f32.gmra.mxu3 %vm618_vm1, %v3866_v1  ;;  %v6852_v18 = vsel %vm618_vm1, %v6815_v22, 0.0  ;;  %4917 = vpow2.f32 %v2115_v33  ;;  %v1896_v19 = vrot.slane %v1895_v42, 1 }
 0x6e0   : > { %v1947_v6 = vsel %vm618_vm1, %v6833_v5, -inf  ;;  %3998 = vmatpush.msra.mxu0 %v3926_v52  ;;  %v2057_v29 = vmax.f32 %v1911_v30, 0.0  ;;  %v2046_v60 = vmax.f32 %v1834_v36, 0.0  ;;  %v2024_v17 = vsel %vm618_vm1, %v6846_v10, -inf }
 0x6e1   : > { %v1945_v15 = vrot.slane %v1944_v43, 1  ;;  %v1900_v52 = vmax.f32 %v1898_v21, %v1899_v55  ;;  %v6860_v47 = vadd.f32 %v6634_v4, %v8305_v32  ;;  %v2020_v1 = vrot.slane %v2019_v49, 2 }
 0x6e2   : > { %v2446_v45 = vpop.permute.xlu2 %2445  ;;  %4919 = vpow2.f32 %v2121_v56  ;;  %v2049_v33 = vmax.f32 %v1855_v57, 0.0  ;;  %v2025_v30 = vrot.slane %v2024_v17, 4  ;;  %v1897_v36 = vmax.f32 %v1895_v42, %v1896_v19 }
 0x6e3   : > { %v6839_v16 = vmul.f32 %v6823_v12, %v2446_v45  ;;  %v1948_v45 = vrot.slane %v1947_v6, 4  ;;  %v1946_v14 = vmax.f32 %v1944_v43, %v1945_v15  ;;  %v1919_v21 = vsel %vm618_vm1, %v6743_v11, -inf }
 0x6e4   : > { %v6869_v4 = vsub.f32 %v8295_v39, %v2057_v29  ;;  %v1901_v55 = vrot.slane %v1900_v52, 2  ;;  %v2021_v42 = vmax.f32 %v2019_v49, %v2020_v1  ;;  %v8306_v19 = vlaneseq }
 0x6e5   : > { %v6821_v3 = vpop.permute.xlu0 %1786  ;;  %8303 = vst [vmem:[#allocation24_spill] sm:$0xff] %v6839_v16  ;;  %v2062_v25 = vmax.f32 %v1946_v14, 0.0  ;;  %v1949_v27 = vmax.f32 %v1947_v6, %v1948_v45  ;;  %v1590_v59 = vpop.f32.mrf.mxu2  ;;  %v2078_v6 = vsub.f32 %v6755_v40, %v2046_v60  ;;  %v1870_v45 = vsel %vm618_vm1, %v6860_v47, -inf }
 0x6e6   : > { %v6873_v15 = vadd.f32 %v6727_v41, %v1590_v59  ;;  %v6875_v56 = vpop.eup %4917  ;;  %v6880_v14 = vshrl.u32 %v8306_v19, 7  ;;  %v6885_v39 = vsel %vm618_vm1, %v6656_v35, 0.0  ;;  %v2081_v40 = vsub.f32 %v6761_v2, %v2049_v33  ;;  %v8307_v35 = vld [vmem:[#allocation13_spill] sm:$0xff] }
 0x6e7   : > { %v6829_v38 = vpop.permute.xlu1 %1781  ;;  %v2094_v62 = vsub.f32 %v6789_v37, %v2062_v25  ;;  %v1950_v57 = vrot.slane %v1949_v27, 2  ;;  %v4831_v37 = vld [vmem:[%s6479_s28 + $0x2] ss:$0 sm:$0xff]  ;;  %v1920_v29 = vrot.slane %v1919_v21, 4  ;;  %v6892_v32 = vmax.f32 %v2024_v17, %v2025_v30 }
 0x6e8   : > { %v1954_v41 = vsel %vm618_vm1, %v6873_v15, -inf  ;;  %v2055_v49 = vmax.f32 %v1897_v36, 0.0  ;;  %v1933_v1 = vsel %vm618_vm1, %v6764_v48, -inf  ;;  %v6896_v59 = vpop.eup %4919  ;;  %v1871_v19 = vrot.slane %v1870_v45, 4 }
 0x6e9   : > { %v2143_v25 = vmul.f32 1.442695, %v2094_v62  ;;  %v6900_v7 = vadd.f32 %v6639_v50, %v8307_v35  ;;  %v1902_v2 = vmax.f32 %v1900_v52, %v1901_v55  ;;  %v1955_v33 = vrot.slane %v1954_v41, 4 }
 0x6ea   : > { %v6863_v43 = vpop.permute.xlu2 %2467  ;;  %v2111_v12 = vmul.f32 1.442695, %v2078_v6  ;;  %v2022_v31 = vrot.slane %v2021_v42, 1  ;;  %v1951_v17 = vmax.f32 %v1949_v27, %v1950_v57  ;;  %vm3969_vm10 = vcmp.eq.s32.totalorder %v6880_v14, %v4831_v37 }
 0x6eb   : > { %v2117_v30 = vmul.f32 1.442695, %v2081_v40  ;;  %v1921_v36 = vmax.f32 %v1919_v21, %v1920_v29  ;;  %v1934_v8 = vrot.slane %v1933_v1, 4  ;;  %v1956_v62 = vmax.f32 %v1954_v41, %v1955_v33  ;;  %v4832_v29 = vld [vmem:[%s6479_s28] ss:$0 sm:$0xff] }
 0x6ec   : > { %v2087_v61 = vsub.f32 %v6775_v63, %v2055_v49  ;;  %4921 = vpow2.f32 %v2143_v25  ;;  %v6907_v50 = vsel %vm3969_vm10, 1.0, %v8309_v20  ;;  %v1872_v52 = vmax.f32 %v1870_v45, %v1871_v19 }
 0x6ed   : > { %v6848_v34 = vpop.permute.xlu0 %2463  ;;  %8310 = vst [vmem:[#allocation25_spill] sm:$0xff] %v6907_v50  ;;  %v1856_v6 = vsel %vm618_vm1, %v6900_v7, -inf  ;;  %v1903_v55 = vrot.slane %v1902_v2, 1  ;;  %v1957_v27 = vrot.slane %v1956_v62, 2  ;;  %v6911_v57 = vpop.f32.mrf.mxu2  ;;  %4923 = vpow2.f32 %v2111_v12 }
 0x6ee   : > { %v2023_v21 = vmax.f32 %v2021_v42, %v2022_v31  ;;  %v1952_v40 = vrot.slane %v1951_v17, 1  ;;  %v4078_v63 = vsel %vm3979_vm11, %v6907_v50, 0.0  ;;  %4925 = vpow2.f32 %v2117_v30 }
 0x6ef   : > { %v6856_v51 = vpop.permute.xlu1 %2431  ;;  %v1922_v41 = vrot.slane %v1921_v36, 2  ;;  %v1935_v49 = vmax.f32 %v1933_v1, %v1934_v8  ;;  %v1958_v25 = vmax.f32 %v1956_v62, %v1957_v27  ;;  %4079 = vadd.xlane.f32.xlu2 %v4078_v63  ;;  %v2027_v19 = vrot.slane %v6892_v32, 2 }
 0x6f0   : > { %v1857_v35 = vrot.slane %v1856_v6, 4  ;;  %v2129_v33 = vmul.f32 1.442695, %v2087_v61  ;;  %v1873_v31 = vrot.slane %v1872_v52, 2  ;;  %v1904_v42 = vmax.f32 %v1902_v2, %v1903_v55 }
 0x6f1   : > { %v6925_v50 = vadd.f32 %v6821_v3, %v8312_v0  ;;  %v1959_v30 = vrot.slane %v1958_v25, 1  ;;  %v1912_v62 = vsel %vm618_vm1, %v6718_v26, -inf  ;;  %v2073_v27 = vmax.f32 %v2023_v21, 0.0  ;;  %v8315_v0 = vld [vmem:[#allocation31_spill] sm:$0xff] }
 0x6f2   : > { %v2438_v37 = vpop.permute.xlu2 %2437  ;;  %v6929_v1 = vpop.eup %4921  ;;  %v1953_v61 = vmax.f32 %v1951_v17, %v1952_v40  ;;  %vm3967_vm12 = vcmp.eq.s32.totalorder %v6880_v14, %v4832_v29  ;;  %4927 = vpow2.f32 %v2129_v33  ;;  %v6939_v3 = vadd.f32 %v8315_v0, %v6733_v53 }
 0x6f3   : > { %8313 = vst [vmem:[#allocation22_spill] sm:$0xff] %v6929_v1  ;;  %v1960_v63 = vmax.f32 %v1958_v25, %v1959_v30  ;;  %v4730_v2 = vsel %vm3967_vm12, 1.0, %v8309_v20  ;;  %v6935_v55 = vpop.eup %4923  ;;  %v2038_v40 = vsel %vm618_vm1, %v6925_v50, -inf  ;;  %v2105_v53 = vsub.f32 %v6801_v44, %v2073_v27 }
 0x6f4   : > { %8314 = vst [vmem:[#allocation13_spill] sm:$0xff] %v6935_v55  ;;  %v4072_v21 = vsel %vm3979_vm11, %v4730_v2, 0.0  ;;  %4734 = vmatmul.msk.f32.vlgmr.msra.gmra.mxu0 %vm3979_vm11, %v4730_v2  ;;  %v6945_v17 = vpop.eup %4925  ;;  %v2063_v25 = vmax.f32 %v1953_v61, 0.0  ;;  %v6956_v33 = vmul.f32 %v6935_v55, %v6856_v51  ;;  %v2028_v44 = vmax.f32 %v6892_v32, %v2027_v19 }
 0x6f5   : > { %v6890_v60 = vpop.permute.xlu0 %2449  ;;  %8317 = vst [vmem:[#allocation28_spill] sm:$0xff] %v6945_v17  ;;  %v2064_v29 = vmax.f32 %v1960_v63, 0.0  ;;  %4073 = vadd.xlane.f32.xlu0 %v4072_v21  ;;  %v6959_v30 = vmul.f32 %v6945_v17, %v2438_v37  ;;  %v1596_v21 = vpop.f32.mrf.mxu2  ;;  %v1858_v27 = vmax.f32 %v1856_v6, %v1857_v35  ;;  %v2039_v51 = vrot.slane %v2038_v40, 4  ;;  %v4833_v6 = vld [vmem:[%s6479_s28 + $0x3] ss:$0 sm:$0xff] }
 0x6f6   : > { %8319 = vst [vmem:[#allocation36_spill] sm:$0xff] %v6956_v33  ;;  %v1874_v37 = vmax.f32 %v1872_v52, %v1873_v31  ;;  %v6979_v32 = vadd.f32 %v6795_v54, %v1596_v21  ;;  %v2029_v31 = vrot.slane %v2028_v44, 1  ;;  %vm3970_vm13 = vcmp.eq.s32.totalorder %v6880_v14, %v4833_v6 }
 0x6f7   : > { %v6902_v16 = vpop.permute.xlu1 %2479  ;;  %8320 = vst [vmem:[#allocation37_spill] sm:$0xff] %v6959_v30  ;;  %v2096_v63 = vsub.f32 %v6873_v15, %v2064_v29  ;;  %v1913_v30 = vrot.slane %v1912_v62, 4  ;;  %vm4190_vm3 = vcmask 1044484   ;;  %vm4193_vm4 = vcmask 1045509  }
 0x6f8   : > { %8308 = vst [vmem:[#allocation14_spill] sm:$0xff] %v6902_v16  ;;  %v8311_v16 = vld [vmem:[#allocation23_spill] sm:$0xff]  ;;  %v6974_v29 = vpop.eup %4927  ;;  %v1968_v17 = vsel %vm618_vm1, %v6979_v32, -inf  ;;  %v6995_v21 = vmax.f32 %v2028_v44, %v2029_v31  ;;  %vm4196_vm5 = vcmask 1046534  }
 0x6f9   : > { %v6921_v12 = vadd.f32 %v6778_v24, %v8311_v16  ;;  %v1923_v24 = vmax.f32 %v1921_v36, %v1922_v41  ;;  %v1936_v16 = vrot.slane %v1935_v49, 2  ;;  %8316 = vst [vmem:[#allocation23_spill] sm:$0xff] %v6939_v3  ;;  %v2056_v36 = vmax.f32 %v1904_v42, 0.0 }
 0x6fa   : > { %v6951_v41 = vmul.f32 %v6929_v1, %v6848_v34  ;;  %v6962_v26 = vpop.permute.xlu2 %2485  ;;  %v6965_v34 = vmul.f32 1.442695, %v6869_v4  ;;  %v2165_v4 = vmul.f32 1.442695, %v2105_v53  ;;  %v1859_v1 = vrot.slane %v1858_v27, 2 }
 0x6fb   : > { %v2010_v9 = vsel %vm618_vm1, %v6921_v12, -inf  ;;  %v1924_v42 = vrot.slane %v1923_v24, 1  ;;  %v1937_v2 = vmax.f32 %v1935_v49, %v1936_v16  ;;  %v1926_v49 = vsel %vm618_vm1, %v6939_v3, -inf }
 0x6fc   : > { %8318 = vst [vmem:[#allocation31_spill] sm:$0xff] %v6951_v41  ;;  %v2011_v0 = vrot.slane %v2010_v9, 4  ;;  %v2147_v16 = vmul.f32 1.442695, %v2096_v63  ;;  %v2088_v33 = vsub.f32 %v6807_v28, %v2056_v36  ;;  %v2095_v41 = vsub.f32 %v6833_v5, %v2063_v25 }
 0x6fd   : > { %v6916_v45 = vpop.permute.xlu0 %2429  ;;  %v1925_v19 = vmax.f32 %v1923_v24, %v1924_v42  ;;  %v1938_v52 = vrot.slane %v1937_v2, 1  ;;  %v2040_v63 = vmax.f32 %v2038_v40, %v2039_v51  ;;  %v1875_v3 = vrot.slane %v1874_v37, 1 }
 0x6fe   : > { %v2012_v35 = vmax.f32 %v2010_v9, %v2011_v0  ;;  %4929 = vpow2.f32 %v2147_v16  ;;  %v1914_v55 = vmax.f32 %v1912_v62, %v1913_v30  ;;  %v1927_v28 = vrot.slane %v1926_v49, 4 }
 0x6ff   : > { %v6927_v8 = vpop.permute.xlu1 %2465  ;;  %v1969_v36 = vrot.slane %v1968_v17, 4  ;;  %4931 = vpow2.f32 %v2165_v4  ;;  %v2145_v5 = vmul.f32 1.442695, %v2095_v41  ;;  %v6987_v54 = vmul.f32 %v6974_v29, %v6890_v60  ;;  %v8323_v41 = vld [vmem:[#allocation26_spill] sm:$0xff] }
 0x700   : > { %v2131_v9 = vmul.f32 1.442695, %v2088_v33  ;;  %v2059_v24 = vmax.f32 %v1925_v19, 0.0  ;;  %v1939_v53 = vmax.f32 %v1937_v2, %v1938_v52  ;;  %v2013_v40 = vrot.slane %v2012_v35, 2  ;;  %v4834_v33 = vld [vmem:[%s6479_s28 + $0x1] ss:$0 sm:$0xff]  ;;  %s4449_s28 = scalar_lea.hbm %s8130_s12, %s4749_s17 }
 0x701   : > { %v1860_v25 = vmax.f32 %v1858_v27, %v1859_v1  ;;  %v2041_v42 = vrot.slane %v2040_v63, 2  ;;  %v1970_v0 = vmax.f32 %v1968_v17, %v1969_v36  ;;  %v6990_v62 = vsel %vm3970_vm13, 1.0, %v8309_v20  ;;  %s4452_s16 = sshll.u32 %s4449_s28, 4  ;;  %s5155_s17 = scalar_lea.hbm %s8130_s12, 64  ;;  %s4453_s16 = int_to_ptr.hbm [resolvable:$true] %s4452_s16 }
 0x702   : > { %8321 = vst [vmem:[#allocation38_spill] sm:$0xff] %v6990_v62  ;;  %v1915_v51 = vrot.slane %v1914_v55, 2  ;;  %v4081_v60 = vsel %vm3979_vm11, %v6990_v62, 0.0  ;;  %v7000_v16 = vpop.permute.xlu2 %2471  ;;  %v1928_v1 = vmax.f32 %v1926_v49, %v1927_v28  ;;  %4933 = vpow2.f32 %v2145_v5  ;;  %v8343_v62 = vld [vmem:[#allocation13_spill] sm:$0xff] }
 0x703   : > { %v1971_v27 = vrot.slane %v1970_v0, 2  ;;  %4082 = vadd.xlane.f32.xlu0 %v4081_v60  ;;  %4935 = vpow2.f32 %v2131_v9  ;;  %v2091_v6 = vsub.f32 %v6743_v11, %v2059_v24  ;;  %v2061_v19 = vmax.f32 %v1939_v53, 0.0 }
 0x704   : > { %v6992_v30 = vpop.eup %4929  ;;  %v2014_v52 = vmax.f32 %v2012_v35, %v2013_v40  ;;  %v1876_v36 = vmax.f32 %v1874_v37, %v1875_v3  ;;  %v1861_v49 = vrot.slane %v1860_v25, 1  ;;  %v2042_v28 = vmax.f32 %v2040_v63, %v2041_v42  ;;  %v1599_v37 = vpop.f32.mrf.mxu2 }
 0x705   : > { %v6968_v61 = vpop.permute.xlu0 %2451  ;;  %v7006_v17 = vmul.f32 %v6992_v30, %v6863_v43  ;;  %v7013_v31 = vpop.eup %4931  ;;  %v1972_v5 = vmax.f32 %v1970_v0, %v1971_v27  ;;  %v2074_v43 = vmax.f32 %v6995_v21, 0.0  ;;  %v7018_v60 = vadd.f32 %v6829_v38, %v8323_v41 }
 0x706   : > { %vm3968_vm14 = vcmp.eq.s32.totalorder %v6880_v14, %v4834_v33  ;;  %v7023_v9 = vmul.f32 %v7013_v31, %v6962_v26  ;;  %v1916_v11 = vmax.f32 %v1914_v55, %v1915_v51  ;;  %v1929_v35 = vrot.slane %v1928_v1, 2 }
 0x707   : > { %v6972_v15 = vpop.permute.xlu1 %2435  ;;  %v1973_v24 = vrot.slane %v1972_v5, 1  ;;  %v7026_v3 = vsel %vm3968_vm14, 1.0, %v8309_v20  ;;  %v2137_v63 = vmul.f32 1.442695, %v2091_v6  ;;  %v2093_v53 = vsub.f32 %v6764_v48, %v2061_v19 }
 0x708   : > { %v2015_v40 = vrot.slane %v2014_v52, 1  ;;  %v4075_v38 = vsel %vm3979_vm11, %v7026_v3, 0.0  ;;  %v8325_v14 = vrot.slane %v5764_v13, 1  ;;  %v7034_v26 = vpop.eup %4933  ;;  %v2052_v55 = vmax.f32 %v1876_v36, 0.0 }
 0x709   : > { %v1862_v42 = vmax.f32 %v1860_v25, %v1861_v49  ;;  %v2043_v0 = vrot.slane %v2042_v28, 1  ;;  %v1974_v41 = vmax.f32 %v1972_v5, %v1973_v24  ;;  %4076 = vadd.xlane.f32.xlu1 %v4075_v38  ;;  %v7036_v20 = vpop.eup %4935  ;;  %v2031_v48 = vsel %vm618_vm1, %v7018_v60, -inf }
 0x70a   : > { %v7002_v2 = vpop.f32.mrf.mxu3  ;;  %2895 = vrot.lane.b32.xlu2 %v8325_v14, %s8324_s15  ;;  %v7041_v21 = vadd.f32 %v6791_v58, %v1599_v37  ;;  %v7045_v51 = vmul.f32 %v6815_v22, %v6916_v45  ;;  %v7049_v33 = vmul.f32 %v7034_v26, %v6927_v8  ;;  %v1917_v25 = vrot.slane %v1916_v11, 1  ;;  %v2458_v5 = vpop.permute.xlu2 %2457 }
 0x70b   : > { %v1930_v27 = vmax.f32 %v1928_v1, %v1929_v35  ;;  %v2066_v6 = vmax.f32 %v1974_v41, 0.0  ;;  %v7053_v19 = vmul.f32 %v7036_v20, %v6968_v61  ;;  %4937 = vpow2.f32 %v2137_v63 }
 0x70c   : > { %v2141_v36 = vmul.f32 1.442695, %v2093_v53  ;;  %v2016_v49 = vmax.f32 %v2014_v52, %v2015_v40  ;;  %v1975_v58 = vsel %vm618_vm1, %v7041_v21, -inf  ;;  %v2044_v45 = vmax.f32 %v2042_v28, %v2043_v0 }
 0x70d   : > { %v7008_v4 = vpop.permute.xlu0 %2477  ;;  %v2032_v24 = vrot.slane %v2031_v48, 4  ;;  %v2098_v8 = vsub.f32 %v6979_v32, %v2066_v6  ;;  %v1976_v37 = vrot.slane %v1975_v58, 4  ;;  %v8326_v61 = vrot.slane %v6885_v39, 4 }
 0x70e   : > { %8322 = vst [vmem:[#allocation39_spill] sm:$0xff] %v7008_v4  ;;  %4939 = vpow2.f32 %v6965_v34  ;;  %v2106_v52 = vsub.f32 %v6846_v10, %v2074_v43  ;;  %v2050_v53 = vmax.f32 %v1862_v42, 0.0  ;;  %v2084_v40 = vsub.f32 %v6860_v47, %v2052_v55 }
 0x70f   : > { %v7010_v44 = vpop.permute.xlu1 %2461  ;;  %v2238_v63 = vadd.f32 %v8326_v61, %v6885_v39  ;;  %v1918_v28 = vmax.f32 %v1916_v11, %v1917_v25  ;;  %v2151_v38 = vmul.f32 1.442695, %v2098_v8  ;;  %v1977_v14 = vmax.f32 %v1975_v58, %v1976_v37 }
 0x710   : > { %v2194_v32 = vsel %vm618_vm1, %v6875_v56, 0.0  ;;  %v1931_v0 = vrot.slane %v1930_v27, 1  ;;  %4941 = vpow2.f32 %v2141_v36  ;;  %v2072_v41 = vmax.f32 %v2016_v49, 0.0 }
 0x711   : > { %v8327_v6 = vrot.slane %v8281_v23, 2  ;;  %v2076_v39 = vmax.f32 %v2044_v45, 0.0  ;;  %v2033_v34 = vmax.f32 %v2031_v48, %v2032_v24  ;;  %4943 = vpow2.f32 %v2151_v38  ;;  %v7075_v43 = vpop.eup %4937 }
 0x712   : > { %v7057_v22 = vpop.f32.mrf.mxu3  ;;  %v1978_v10 = vrot.slane %v1977_v14, 2  ;;  %v2215_v47 = vsel %vm618_vm1, %v6896_v59, 0.0  ;;  %v2167_v11 = vmul.f32 1.442695, %v2106_v52  ;;  %v2082_v55 = vsub.f32 %v6900_v7, %v2050_v53 }
 0x713   : > { %2881 = vrot.lane.b32.xlu2 %v8327_v6, %s8324_s15  ;;  %v7082_v42 = vmul.f32 %v6875_v56, %v6972_v15  ;;  %v2239_v25 = vrot.slane %v2238_v63, 2  ;;  %v2123_v36 = vmul.f32 1.442695, %v2084_v40  ;;  %v2058_v49 = vmax.f32 %v1918_v28, 0.0  ;;  %v2444_v28 = vpop.permute.xlu2 %2443 }
 0x714   : > { %v7085_v58 = vmul.f32 %v7075_v43, %v2458_v5  ;;  %v4940_v48 = vpop.eup %4939  ;;  %v8329_v45 = vrot.slane %v6852_v18, 4  ;;  %v2104_v8 = vsub.f32 %v6921_v12, %v2072_v41  ;;  %v1979_v37 = vmax.f32 %v1977_v14, %v1978_v10  ;;  %v8333_v14 = vld [vmem:[#allocation18_spill] sm:$0xff] }
 0x715   : > { %v7060_v1 = vpop.permute.xlu0 %2453  ;;  %v1932_v7 = vmax.f32 %v1930_v27, %v1931_v0  ;;  %v2108_v61 = vsub.f32 %v6925_v50, %v2076_v39  ;;  %v2034_v56 = vrot.slane %v2033_v34, 2  ;;  %v7096_v15 = vadd.f32 %v6581_v46, %v6911_v57  ;;  %v8332_v50 = vld [vmem:[#allocation33_spill] sm:$0xff] }
 0x716   : > { %8328 = vst [vmem:[#allocation26_spill] sm:$0xff] %v7085_v58  ;;  %v7090_v24 = vadd.f32 %v8329_v45, %v6852_v18  ;;  %v7098_v52 = vpop.eup %4941  ;;  %v2195_v5 = vrot.slane %v2194_v32, 4  ;;  %v2216_v53 = vrot.slane %v2215_v47, 4  ;;  %4945 = vpow2.f32 %v2167_v11 }
 0x717   : > { %v7062_v35 = vpop.permute.xlu1 %2483  ;;  %v2119_v40 = vmul.f32 1.442695, %v2082_v55  ;;  %v7102_v38 = vpop.eup %4943  ;;  %v2257_v12 = vsel %vm618_vm1, %v4940_v48, 0.0  ;;  %4947 = vpow2.f32 %v2123_v36  ;;  %v2090_v27 = vsub.f32 %v8332_v50, %v2058_v49  ;;  %v8338_v55 = vld [vmem:[#allocation19_spill] sm:$0xff] }
 0x718   : > { %8330 = vst [vmem:[#allocation40_spill] sm:$0xff] %v7090_v24  ;;  %v8334_v46 = vrot.slane %v8333_v14, 1  ;;  %v2240_v41 = vadd.f32 %v2239_v25, %v2238_v63  ;;  %v2163_v6 = vmul.f32 1.442695, %v2104_v8  ;;  %v1980_v39 = vrot.slane %v1979_v37, 1 }
 0x719   : > { %8331 = vst [vmem:[#allocation41_spill] sm:$0xff] %v7102_v38  ;;  %v7115_v10 = vmul.f32 %v7102_v38, %v7000_v16  ;;  %v7119_v11 = vmul.f32 %v7098_v52, %v7010_v44  ;;  %v8339_v36 = vrot.slane %v8338_v55, 2  ;;  %v2060_v49 = vmax.f32 %v1932_v7, 0.0  ;;  %v8342_v16 = vld [vmem:[#allocation17_spill] sm:$0xff] }
 0x71a   : > { %2911 = vrot.lane.b32.xlu0 %v8334_v46, %s8324_s15  ;;  %v2171_v45 = vmul.f32 1.442695, %v2108_v61  ;;  %v2035_v50 = vmax.f32 %v2033_v34, %v2034_v56  ;;  %v1961_v63 = vsel %vm618_vm1, %v7096_v15, -inf  ;;  %v7126_v25 = vadd.f32 %v2195_v5, %v2194_v32 }
 0x71b   : > { %8336 = vst [vmem:[#allocation18_spill] sm:$0xff] %v7115_v10  ;;  %2929 = vrot.lane.b32.xlu2 %v8339_v36, %s8324_s15  ;;  %v7128_v8 = vadd.f32 %v2216_v53, %v2215_v47  ;;  %4949 = vpow2.f32 %v2119_v40  ;;  %v2620_v46 = vsel %vm618_vm1, %v8342_v16, 0.0  ;;  %v2258_v4 = vrot.slane %v2257_v12, 4  ;;  %v8344_v53 = vld [vmem:[#allocation23_spill] sm:$0xff] }
 0x71c   : > { %v7100_v18 = vpop.f32.mrf.mxu3  ;;  %8337 = vst [vmem:[#allocation42_spill] sm:$0xff] %v7119_v11  ;;  %v2180_v36 = vsel %vm618_vm1, %v8343_v62, 0.0  ;;  %v2241_v7 = vrot.slane %v2240_v41, 1  ;;  %v7135_v61 = vpop.eup %4945  ;;  %v2135_v34 = vmul.f32 1.442695, %v2090_v27  ;;  %4951 = vpow2.f32 %v2163_v6  ;;  %v8346_v27 = vld [vmem:[#allocation28_spill] sm:$0xff] }
 0x71d   : > { %v7109_v57 = vpop.permute.xlu0 %2439  ;;  %8340 = vst [vmem:[#allocation19_spill] sm:$0xff] %v7126_v25  ;;  %v1962_v56 = vrot.slane %v1961_v63, 4  ;;  %v1981_v32 = vmax.f32 %v1979_v37, %v1980_v39  ;;  %v4948_v5 = vpop.eup %4947  ;;  %v2621_v47 = vrot.slane %v2620_v46, 4  ;;  %v2092_v40 = vsub.f32 %v8344_v53, %v2060_v49  ;;  %v8349_v53 = vld [vmem:[#allocation32_spill] sm:$0xff] }
 0x71e   : > { %8341 = vst [vmem:[#allocation43_spill] sm:$0xff] %v7128_v8  ;;  %4953 = vpow2.f32 %v2171_v45  ;;  %v2181_v24 = vrot.slane %v2180_v36, 4  ;;  %v7140_v11 = vmul.f32 %v4948_v5, %v2444_v28  ;;  %v2376_v62 = vsel %vm618_vm1, %v7135_v61, 0.0 }
 0x71f   : > { %v7111_v0 = vpop.permute.xlu1 %2469  ;;  %v2201_v6 = vsel %vm618_vm1, %v8346_v27, 0.0  ;;  %v8347_v37 = vrot.slane %v5764_v13, 2  ;;  %v7150_v39 = vmul.f32 %v4940_v48, %v7060_v1  ;;  %v7152_v49 = vadd.f32 %v2241_v7, %v2240_v41  ;;  %v2492_v27 = vpop.permute.xlu2 %2491 }
 0x720   : > { %8335 = vst [vmem:[#allocation33_spill] sm:$0xff] %v7111_v0  ;;  %v2036_v0 = vrot.slane %v2035_v50, 1  ;;  %v2571_v28 = vsel %vm618_vm1, %v8349_v53, 0.0  ;;  %4955 = vpow2.f32 %v2135_v34  ;;  %v1963_v44 = vmax.f32 %v1961_v63, %v1962_v56 }
 0x721   : > { %8345 = vst [vmem:[#allocation17_spill] sm:$0xff] %v7140_v11  ;;  %v4950_v45 = vpop.eup %4949  ;;  %v2067_v16 = vmax.f32 %v1981_v32, 0.0  ;;  %v7160_v25 = vadd.f32 %v2258_v4, %v2257_v12  ;;  %v2139_v1 = vmul.f32 1.442695, %v2092_v40  ;;  %v7168_v34 = vadd.f32 %v2181_v24, %v2180_v36  ;;  %v8351_v32 = vld [vmem:[#allocation20_spill] sm:$0xff]  ;;  %v7184_v40 = vpop.f32.mrf.mxu2 }
 0x722   : > { %2897 = vrot.lane.b32.xlu0 %v8347_v37, %s8324_s15  ;;  %8348 = vst [vmem:[#allocation13_spill] sm:$0xff] %v7150_v39  ;;  %v2622_v37 = vadd.f32 %v2621_v47, %v2620_v46  ;;  %v2037_v48 = vmax.f32 %v2035_v50, %v2036_v0  ;;  %v7166_v39 = vpop.eup %4951  ;;  %v2377_v63 = vrot.slane %v2376_v62, 4  ;;  %v2202_v56 = vrot.slane %v2201_v6, 4 }
 0x723   : > { %2893 = vrot.lane.b32.xlu2 %v5764_v13, %s8324_s15  ;;  %8350 = vst [vmem:[#allocation23_spill] sm:$0xff] %v7160_v25  ;;  %v2187_v53 = vsel %vm618_vm1, %v8351_v32, 0.0  ;;  %v8352_v4 = vrot.slane %v8281_v23, 1  ;;  %v2222_v0 = vsel %vm618_vm1, %v4948_v5, 0.0  ;;  %v2208_v50 = vsel %vm618_vm1, %v4950_v45, 0.0  ;;  %v8354_v32 = vld [vmem:[#allocation27_spill] sm:$0xff] }
 0x724   : > { %v7158_v8 = vpop.f32.mrf.mxu3  ;;  %v7175_v12 = vpop.eup %4953  ;;  %v2572_v46 = vrot.slane %v2571_v28, 4  ;;  %v7181_v24 = vmul.f32 %v7166_v39, %v7062_v35  ;;  %v1964_v36 = vrot.slane %v1963_v44, 2  ;;  %v2099_v47 = vsub.f32 %v7041_v21, %v2067_v16 }
 0x725   : > { %v7162_v41 = vpop.permute.xlu0 %2487  ;;  %2879 = vrot.lane.b32.xlu1 %v8352_v4, %s8324_s15  ;;  %v3941_v11 = vadd.f32 %v7100_v18, %v8354_v32  ;;  %v7189_v4 = vmul.f32 %v7175_v12, %v2492_v27  ;;  %v2188_v10 = vrot.slane %v2187_v53, 4  ;;  %4957 = vpow2.f32 %v2139_v1 }
 0x726   : > { %8353 = vst [vmem:[#allocation28_spill] sm:$0xff] %v7181_v24  ;;  %v2075_v5 = vmax.f32 %v2037_v48, 0.0  ;;  %v7192_v38 = vmul.f32 %v4950_v45, %v7109_v57  ;;  %v4956_v58 = vpop.eup %4955  ;;  %v7194_v35 = vadd.f32 %v2377_v63, %v2376_v62  ;;  %v2623_v24 = vrot.slane %v2622_v37, 2  ;;  %v8357_v57 = vld [vmem:[#allocation29_spill] sm:$0xff] }
 0x727   : > { %v7164_v7 = vpop.permute.xlu1 %2455  ;;  %8355 = vst [vmem:[#allocation32_spill] sm:$0xff] %v7189_v4  ;;  %v2243_v21 = vsel %vm618_vm1, %v6974_v29, 0.0  ;;  %v3938_v16 = vadd.f32 %v7057_v22, %v8354_v32  ;;  %4019 = vmatpush.msrb.mxu0 %v3941_v11  ;;  %v7200_v18 = vadd.f32 %v2202_v56, %v2201_v6  ;;  %v2223_v27 = vrot.slane %v2222_v0, 4 }
 0x728   : > { %8356 = vst [vmem:[#allocation20_spill] sm:$0xff] %v7194_v35  ;;  %v2209_v4 = vrot.slane %v2208_v50, 4  ;;  %v2573_v1 = vadd.f32 %v2572_v46, %v2571_v28  ;;  %v2229_v62 = vsel %vm618_vm1, %v8357_v57, 0.0  ;;  %v1965_v45 = vmax.f32 %v1963_v44, %v1964_v36 }
 0x729   : > { %v2153_v48 = vmul.f32 1.442695, %v2099_v47  ;;  %v3935_v29 = vadd.f32 %v7002_v2, %v8354_v32  ;;  %4020 = vmatpush.msrb.mxu0 %v3938_v16  ;;  %v8358_v22 = vrot.slane %v8333_v14, 3  ;;  %v7211_v11 = vadd.f32 %v2188_v10, %v2187_v53 }
 0x72a   : > { %2877 = vrot.lane.b32.xlu0 %v8281_v23, %s8324_s15  ;;  %v2244_v6 = vrot.slane %v2243_v21, 4  ;;  %v2264_v28 = vsel %vm618_vm1, %v4956_v58, 0.0  ;;  %v2107_v63 = vsub.f32 %v7018_v60, %v2075_v5  ;;  %v7218_v36 = vadd.f32 %v2623_v24, %v2622_v37  ;;  %v1605_v37 = vpop.f32.mrf.mxu2 }
 0x72b   : > { %2915 = vrot.lane.b32.xlu2 %v8358_v22, %s8324_s15  ;;  %v8359_v2 = vrot.slane %v8338_v55, 1  ;;  %4021 = vmatpush.msrb.mxu0 %v3935_v29  ;;  %v7225_v53 = vpop.eup %4957  ;;  %v7227_v47 = vadd.f32 %v2223_v27, %v2222_v0  ;;  %v7229_v60 = vadd.f32 %v2209_v4, %v2208_v50  ;;  %v2230_v5 = vrot.slane %v2229_v62, 4 }
 0x72c   : > { %v7223_v10 = vpop.f32.mrf.mxu3  ;;  %v2574_v16 = vrot.slane %v2573_v1, 2  ;;  %4735 = vmatmul.msk.f32.vlgmr.msrb.gmra.mxu0 %vm3979_vm11, %v7026_v3  ;;  %v2265_v24 = vrot.slane %v2264_v28, 4  ;;  %4959 = vpow2.f32 %v2153_v48  ;;  %v7235_v46 = vadd.f32 %v2244_v6, %v2243_v21  ;;  %v8362_v3 = vld [vmem:[#allocation24_spill] sm:$0xff] }
 0x72d   : > { %2927 = vrot.lane.b32.xlu1 %v8359_v2, %s8324_s15  ;;  %8360 = vst [vmem:[#allocation27_spill] sm:$0xff] %v7227_v47  ;;  %v2474_v57 = vpop.permute.xlu0 %2473  ;;  %v1966_v2 = vrot.slane %v1965_v45, 1  ;;  %v2250_v0 = vsel %vm618_vm1, %v7036_v20, 0.0  ;;  %v2169_v50 = vmul.f32 1.442695, %v2107_v63  ;;  %v2271_v4 = vsel %vm618_vm1, %v7075_v43, 0.0 }
 0x72e   : > { %8361 = vst [vmem:[#allocation29_spill] sm:$0xff] %v7229_v60  ;;  %v2278_v27 = vsel %vm618_vm1, %v7225_v53, 0.0  ;;  %v2613_v56 = vsel %vm618_vm1, %v8362_v3, 0.0  ;;  %v7247_v48 = vmul.f32 %v7135_v61, %v7162_v41  ;;  %v7251_v20 = vadd.f32 %v2230_v5, %v2229_v62 }
 0x72f   : > { %v2442_v22 = vpop.permute.xlu1 %2441  ;;  %v7253_v63 = vadd.f32 %v2574_v16, %v2573_v1  ;;  %v8363_v43 = vrot.slane %v5764_v13, 3  ;;  %v7258_v44 = vadd.f32 %v2265_v24, %v2264_v28  ;;  %v2251_v3 = vrot.slane %v2250_v0, 4 }
 0x730   : > { %v1967_v29 = vmax.f32 %v1965_v45, %v1966_v2  ;;  %v7261_v35 = vmul.f32 %v4956_v58, %v7164_v7  ;;  %v8366_v61 = vrot.slane %v8281_v23, 4  ;;  %v2272_v41 = vrot.slane %v2271_v4, 4  ;;  %v8367_v45 = vld [vmem:[#allocation15_spill] sm:$0xff] }
 0x731   : > { %8364 = vst [vmem:[#allocation24_spill] sm:$0xff] %v7258_v44  ;;  %v2279_v62 = vrot.slane %v2278_v27, 4  ;;  %v2614_v5 = vrot.slane %v2613_v56, 4  ;;  %4961 = vpow2.f32 %v2169_v50  ;;  %v2285_v28 = vsel %vm618_vm1, %v7098_v52, 0.0  ;;  %v8369_v50 = vld [vmem:[#allocation22_spill] sm:$0xff] }
 0x732   : > { %2899 = vrot.lane.b32.xlu0 %v8363_v43, %s8324_s15  ;;  %8365 = vst [vmem:[#allocation44_spill] sm:$0xff] %v7261_v35  ;;  %v7266_v1 = vpop.eup %4959  ;;  %v7273_v24 = vadd.f32 %v8367_v45, %v7184_v40  ;;  %v8368_v58 = vrot.slane %v8333_v14, 2  ;;  %v2369_v2 = vsel %vm618_vm1, %v7013_v31, 0.0  ;;  %v2292_v43 = vsel %vm618_vm1, %v8369_v50, 0.0  ;;  %v7316_v40 = vpop.f32.mrf.mxu2  ;;  %v8384_v35 = vld [vmem:[#allocation25_spill] sm:$0xff] }
 0x733   : > { %2885 = vrot.lane.b32.xlu2 %v8366_v61, %s8324_s15  ;;  %v7284_v61 = vmul.f32 %v7266_v1, %v2474_v57  ;;  %v7287_v52 = vmul.f32 %v6896_v59, %v2442_v22  ;;  %v7291_v6 = vadd.f32 %v2251_v3, %v2250_v0  ;;  %v7293_v16 = vadd.f32 %v2272_v41, %v2271_v4  ;;  %v8375_v59 = vld [vmem:[#allocation31_spill] sm:$0xff]  ;;  %v8376_v4 = vld [vmem:[#allocation36_spill] sm:$0xff]  ;;  %v8377_v3 = vld [vmem:[#allocation34_spill] sm:$0xff] }
 0x734   : > { %v3949_v21 = vpop.f32.mrf.mxu3  ;;  %v7295_v31 = vadd.f32 %v2279_v62, %v2278_v27  ;;  %v2286_v7 = vrot.slane %v2285_v28, 4  ;;  %v2615_v50 = vadd.f32 %v2614_v5, %v2613_v56  ;;  %v2370_v47 = vrot.slane %v2369_v2, 4  ;;  %v8378_v5 = vld [vmem:[#allocation37_spill] sm:$0xff] }
 0x735   : > { %2913 = vrot.lane.b32.xlu1 %v8368_v58, %s8324_s15  ;;  %8370 = vst [vmem:[#allocation15_spill] sm:$0xff] %v7284_v61  ;;  %v2065_v58 = vmax.f32 %v1967_v29, 0.0  ;;  %v2460_v60 = vpop.permute.xlu0 %2459  ;;  %v2293_v25 = vrot.slane %v2292_v43, 4  ;;  %v2676_v22 = vsel %vm618_vm1, %v8375_v59, 0.0  ;;  %v1982_v45 = vsel %vm618_vm1, %v7273_v24, -inf }
 0x736   : > { %8371 = vst [vmem:[#allocation22_spill] sm:$0xff] %v7287_v52  ;;  %v2362_v29 = vsel %vm618_vm1, %v7166_v39, 0.0  ;;  %v2564_v27 = vsel %vm618_vm1, %v8376_v4, 0.0  ;;  %v7308_v56 = vadd.f32 %v8377_v3, %v1605_v37  ;;  %v3950_v41 = vadd.f32 %v3949_v21, %v8354_v32 }
 0x737   : > { %8372 = vst [vmem:[#allocation45_spill] sm:$0xff] %v7291_v6  ;;  %v2490_v57 = vpop.permute.xlu1 %2489  ;;  %v7301_v0 = vpop.eup %4961  ;;  %v2097_v62 = vsub.f32 %v7096_v15, %v2065_v58  ;;  %v2585_v59 = vsel %vm618_vm1, %v8378_v5, 0.0  ;;  %v8379_v39 = vrot.slane %v8338_v55, 4  ;;  %v7322_v4 = vmul.f32 %v7225_v53, %v2460_v60 }
 0x738   : > { %8373 = vst [vmem:[#allocation46_spill] sm:$0xff] %v7293_v16  ;;  %v7325_v37 = vmul.f32 %v7301_v0, %v2490_v57  ;;  %v2299_v21 = vsel %vm618_vm1, %v7034_v26, 0.0  ;;  %v2677_v3 = vrot.slane %v2676_v22, 4  ;;  %v1983_v15 = vrot.slane %v1982_v45, 4  ;;  %4042 = vmatpush.msrb.mxu3 %v3950_v41 }
 0x739   : > { %8374 = vst [vmem:[#allocation47_spill] sm:$0xff] %v7295_v31  ;;  %v3947_v58 = vadd.f32 %v7223_v10, %v8354_v32  ;;  %v7332_v44 = vadd.f32 %v2286_v7, %v2285_v28  ;;  %v2565_v52 = vrot.slane %v2564_v27, 4  ;;  %v8383_v53 = vrot.slane %v8281_v23, 3 }
 0x73a   : > { %2925 = vrot.lane.b32.xlu0 %v8338_v55, %s8324_s15  ;;  %8380 = vst [vmem:[#allocation31_spill] sm:$0xff] %v7322_v4  ;;  %v7337_v60 = vadd.f32 %v2370_v47, %v2369_v2  ;;  %v2586_v57 = vrot.slane %v2585_v59, 4  ;;  %v1989_v26 = vsel %vm618_vm1, %v7308_v56, -inf  ;;  %v3944_v10 = vadd.f32 %v7158_v8, %v8354_v32 }
 0x73b   : > { %2933 = vrot.lane.b32.xlu2 %v8379_v39, %s8324_s15  ;;  %8381 = vst [vmem:[#allocation36_spill] sm:$0xff] %v7325_v37  ;;  %v2616_v39 = vrot.slane %v2615_v50, 2  ;;  %4043 = vmatpush.msrb.mxu3 %v3947_v58  ;;  %v2363_v28 = vrot.slane %v2362_v29, 4  ;;  %v2300_v7 = vrot.slane %v2299_v21, 4  ;;  %v2149_v5 = vmul.f32 1.442695, %v2097_v62 }
 0x73c   : > { %8382 = vst [vmem:[#allocation34_spill] sm:$0xff] %v7332_v44  ;;  %v7345_v37 = vadd.f32 %v2293_v25, %v2292_v43  ;;  %v1984_v47 = vmax.f32 %v1982_v45, %v1983_v15  ;;  %v2566_v4 = vadd.f32 %v2565_v52, %v2564_v27  ;;  %v1990_v61 = vrot.slane %v1989_v26, 4  ;;  %v1611_v15 = vpop.f32.mrf.mxu2 }
 0x73d   : > { %2883 = vrot.lane.b32.xlu1 %v8383_v53, %s8324_s15  ;;  %v2678_v53 = vadd.f32 %v2677_v3, %v2676_v22  ;;  %4044 = vmatpush.msrb.mxu3 %v3944_v10  ;;  %v7347_v2 = vadd.f32 %v2616_v39, %v2615_v50  ;;  %v2790_v8 = vmax.f32 %v7152_v49, 1e-30  ;;  %v2390_v25 = vsel %vm618_vm1, %v7175_v12, 0.0 }
 0x73e   : > { %4736 = vmatmul.msk.f32.vlgmr.msrb.gmra.mxu3 %vm3979_vm11, %v8384_v35  ;;  %v2587_v43 = vadd.f32 %v2586_v57, %v2585_v59  ;;  %v8385_v45 = vrot.slane %v5764_v13, 4  ;;  %v7359_v50 = vadd.f32 %v2363_v28, %v2362_v29  ;;  %v7361_v52 = vadd.f32 %v2300_v7, %v2299_v21 }
 0x73f   : > { %4963 = vpow2.f32 %v2149_v5  ;;  %v2627_v49 = vsel %vm618_vm1, %v6987_v54, 0.0  ;;  %v8387_v35 = vrot.slane %v8333_v14, 5  ;;  %v2679_v12 = vrot.slane %v2678_v53, 2 }
 0x740   : > { %8386 = vst [vmem:[#allocation37_spill] sm:$0xff] %v7359_v50  ;;  %v1985_v27 = vrot.slane %v1984_v47, 2  ;;  %4965 = vrcp.f32 %v2790_v8  ;;  %v2391_v59 = vrot.slane %v2390_v25, 4  ;;  %v2306_v29 = vsel %vm618_vm1, %v6992_v30, 0.0 }
 0x741   : > { %v2567_v3 = vrot.slane %v2566_v4, 2  ;;  %v1991_v21 = vmax.f32 %v1989_v26, %v1990_v61  ;;  %v2690_v54 = vsel %vm618_vm1, %v7006_v17, 0.0  ;;  %v2588_v5 = vrot.slane %v2587_v43, 2 }
 0x742   : > { %2901 = vrot.lane.b32.xlu0 %v8385_v45, %s8324_s15  ;;  %v2628_v39 = vrot.slane %v2627_v49, 4  ;;  %v2753_v57 = vsel %vm618_vm1, %v7023_v9, 0.0  ;;  %v2383_v30 = vsel %vm618_vm1, %v7301_v0, 0.0  ;;  %v8388_v61 = vrot.slane %v7218_v36, 1  ;;  %v8389_v45 = vld [vmem:[#allocation16_spill] sm:$0xff] }
 0x743   : > { %2919 = vrot.lane.b32.xlu2 %v8387_v35, %s8324_s15  ;;  %v2307_v7 = vrot.slane %v2306_v29, 4  ;;  %v7384_v8 = vadd.f32 %v2679_v12, %v2678_v53  ;;  %v1986_v17 = vmax.f32 %v1984_v47, %v1985_v27  ;;  %v7387_v35 = vadd.f32 %v8389_v45, %v1611_v15  ;;  %v8392_v12 = vld [vmem:[#allocation35_spill] sm:$0xff] }
 0x744   : > { %v2626_v26 = vadd.f32 %v8388_v61, %v7218_v36  ;;  %v2691_v9 = vrot.slane %v2690_v54, 4  ;;  %v7391_v10 = vadd.f32 %v2567_v3, %v2566_v4  ;;  %v2754_v58 = vrot.slane %v2753_v57, 4 }
 0x745   : > { %2909 = vrot.lane.b32.xlu1 %v8333_v14, %s8324_s15  ;;  %v7389_v6 = vpop.eup %4963  ;;  %v1992_v41 = vrot.slane %v1991_v21, 2  ;;  %v7393_v0 = vadd.f32 %v2391_v59, %v2390_v25  ;;  %v2384_v28 = vrot.slane %v2383_v30, 4  ;;  %v7395_v22 = vadd.f32 %v2588_v5, %v2587_v43 }
 0x746   : > { %v4966_v62 = vpop.eup %4965  ;;  %v2629_v36 = vadd.f32 %v2628_v39, %v2627_v49  ;;  %v8391_v53 = vrot.slane %v8281_v23, 5  ;;  %v2557_v47 = vsel %vm618_vm1, %v7045_v51, 0.0  ;;  %v2683_v4 = vsel %vm618_vm1, %v7049_v33, 0.0 }
 0x747   : > { %8390 = vst [vmem:[#allocation25_spill] sm:$0xff] %v7393_v0  ;;  %v7406_v27 = vadd.f32 %v8392_v12, %v7316_v40  ;;  %v8393_v25 = vrot.slane %v5764_v13, 6  ;;  %v7411_v43 = vmul.f32 %v4966_v62, %v2626_v26  ;;  %v7413_v49 = vadd.f32 %v2307_v7, %v2306_v29 }
 0x748   : > { %v2313_v59 = vsel %vm618_vm1, %v7389_v6, 0.0  ;;  %v1987_v3 = vrot.slane %v1986_v17, 1  ;;  %v2003_v51 = vsel %vm618_vm1, %v7387_v35, -inf  ;;  %v2692_v33 = vadd.f32 %v2691_v9, %v2690_v54 }
 0x749   : > { %v2755_v15 = vadd.f32 %v2754_v58, %v2753_v57  ;;  %v2634_v40 = vsel %vm618_vm1, %v7053_v19, 0.0  ;;  %v1993_v5 = vmax.f32 %v1991_v21, %v1992_v41  ;;  %v8394_v39 = vrot.slane %v8338_v55, 3  ;;  %v8399_v41 = vld [vmem:[#allocation26_spill] sm:$0xff] }
 0x74a   : > { %2887 = vrot.lane.b32.xlu0 %v8391_v53, %s8324_s15  ;;  %v7425_v29 = vadd.f32 %v2384_v28, %v2383_v30  ;;  %v2558_v61 = vrot.slane %v2557_v47, 4  ;;  %v2684_v26 = vrot.slane %v2683_v4, 4  ;;  %v2314_v7 = vrot.slane %v2313_v59, 4 }
 0x74b   : > { %2905 = vrot.lane.b32.xlu2 %v8393_v25, %s8324_s15  ;;  %v1996_v45 = vsel %vm618_vm1, %v7406_v27, -inf  ;;  %v2004_v54 = vrot.slane %v2003_v51, 4  ;;  %v8396_v58 = vrot.slane %v7211_v11, 2  ;;  %v2630_v21 = vrot.slane %v2629_v36, 2 }
 0x74c   : > { %8395 = vst [vmem:[#allocation16_spill] sm:$0xff] %v7425_v29  ;;  %v2635_v57 = vrot.slane %v2634_v40, 4  ;;  %v1988_v9 = vmax.f32 %v1986_v17, %v1987_v3  ;;  %v2693_v53 = vrot.slane %v2692_v33, 2  ;;  %v2756_v12 = vrot.slane %v2755_v15, 2 }
 0x74d   : > { %2931 = vrot.lane.b32.xlu1 %v8394_v39, %s8324_s15  ;;  %v2191_v19 = vadd.f32 %v8396_v58, %v7211_v11  ;;  %v1994_v28 = vrot.slane %v1993_v5, 1  ;;  %v2559_v39 = vadd.f32 %v2558_v61, %v2557_v47  ;;  %v2685_v62 = vadd.f32 %v2684_v26, %v2683_v4  ;;  %v8407_v4 = vld [vmem:[#allocation17_spill] sm:$0xff] }
 0x74e   : > { %v7433_v30 = vpop.f32.mrf.mxu3  ;;  %v2578_v31 = vsel %vm618_vm1, %v7082_v42, 0.0  ;;  %v1997_v0 = vrot.slane %v1996_v45, 4  ;;  %v8397_v11 = vrot.slane %v8338_v55, 5  ;;  %v7440_v58 = vadd.f32 %v2314_v7, %v2313_v59 }
 0x74f   : > { %v2192_v25 = vrot.slane %v2191_v19, 1  ;;  %v2655_v17 = vsel %vm618_vm1, %v8399_v41, 0.0  ;;  %v2005_v3 = vmax.f32 %v2003_v51, %v2004_v54  ;;  %v8400_v50 = vrot.slane %v8281_v23, 7 }
 0x750   : > { %8398 = vst [vmem:[#allocation35_spill] sm:$0xff] %v7440_v58  ;;  %v7448_v61 = vadd.f32 %v2630_v21, %v2629_v36  ;;  %v2636_v42 = vadd.f32 %v2635_v57, %v2634_v40  ;;  %v2068_v26 = vmax.f32 %v1988_v9, 0.0  ;;  %v7450_v44 = vadd.f32 %v2693_v53, %v2692_v33  ;;  %v8403_v40 = vld [vmem:[#allocation41_spill] sm:$0xff]  ;;  %v8404_v9 = vld [vmem:[#allocation18_spill] sm:$0xff]  ;;  %v8414_v58 = vld [vmem:[#allocation28_spill] sm:$0xff] }
 0x751   : > { %v2193_v47 = vadd.f32 %v2192_v25, %v2191_v19  ;;  %v1995_v59 = vmax.f32 %v1993_v5, %v1994_v28  ;;  %v8401_v7 = vrot.slane %v8333_v14, 4  ;;  %v2560_v54 = vrot.slane %v2559_v39, 2 }
 0x752   : > { %2935 = vrot.lane.b32.xlu0 %v8397_v11, %s8324_s15  ;;  %v2579_v11 = vrot.slane %v2578_v31, 4  ;;  %v2686_v41 = vrot.slane %v2685_v62, 2  ;;  %v2656_v16 = vrot.slane %v2655_v17, 4  ;;  %v7456_v25 = vadd.f32 %v2756_v12, %v2755_v15 }
 0x753   : > { %2891 = vrot.lane.b32.xlu2 %v8400_v50, %s8324_s15  ;;  %v2783_v51 = vmax.f32 %v2193_v47, 1e-30  ;;  %v1998_v50 = vmax.f32 %v1996_v45, %v1997_v0  ;;  %v2006_v36 = vrot.slane %v2005_v3, 2  ;;  %v2320_v33 = vsel %vm618_vm1, %v8403_v40, 0.0  ;;  %v8405_v0 = vld [vmem:[#allocation42_spill] sm:$0xff] }
 0x754   : > { %8402 = vst [vmem:[#allocation26_spill] sm:$0xff] %v7456_v25  ;;  %v2637_v21 = vrot.slane %v2636_v42, 2  ;;  %v2100_v5 = vsub.f32 %v7273_v24, %v2068_v26  ;;  %v2576_v57 = vrot.slane %v7253_v63, 1  ;;  %v2704_v53 = vsel %vm618_vm1, %v8404_v9, 0.0 }
 0x755   : > { %2917 = vrot.lane.b32.xlu1 %v8401_v7, %s8324_s15  ;;  %4967 = vrcp.f32 %v2783_v51  ;;  %v2580_v28 = vadd.f32 %v2579_v11, %v2578_v31  ;;  %v2069_v47 = vmax.f32 %v1995_v59, 0.0  ;;  %v2669_v45 = vsel %vm618_vm1, %v8405_v0, 0.0  ;;  %v8408_v31 = vld [vmem:[#allocation13_spill] sm:$0xff] }
 0x756   : > { %v7466_v12 = vadd.f32 %v2560_v54, %v2559_v39  ;;  %v7468_v7 = vadd.f32 %v2686_v41, %v2685_v62  ;;  %v2657_v51 = vadd.f32 %v2656_v16, %v2655_v17  ;;  %v1999_v40 = vrot.slane %v1998_v50, 2 }
 0x757   : > { %v8406_v24 = vrot.slane %v8333_v14, 6  ;;  %v2321_v26 = vrot.slane %v2320_v33, 4  ;;  %v2606_v9 = vsel %vm618_vm1, %v8407_v4, 0.0  ;;  %v2641_v11 = vsel %vm618_vm1, %v8408_v31, 0.0 }
 0x758   : > { %v3955_v15 = vpop.f32.mrf.mxu3  ;;  %v2007_v59 = vmax.f32 %v2005_v3, %v2006_v36  ;;  %v8409_v39 = vrot.slane %v8338_v55, 7  ;;  %v2705_v62 = vrot.slane %v2704_v53, 4  ;;  %v2155_v54 = vmul.f32 1.442695, %v2100_v5 }
 0x759   : > { %v2670_v16 = vrot.slane %v2669_v45, 4  ;;  %v2577_v17 = vadd.f32 %v2576_v57, %v7253_v63  ;;  %v7481_v0 = vadd.f32 %v2637_v21, %v2636_v42  ;;  %v2101_v19 = vsub.f32 %v7308_v56, %v2069_v47 }
 0x75a   : > { %2921 = vrot.lane.b32.xlu0 %v8406_v24, %s8324_s15  ;;  %v2581_v24 = vrot.slane %v2580_v28, 2  ;;  %v8410_v4 = vrot.slane %v5764_v13, 5  ;;  %v8411_v3 = vrot.slane %v7168_v34, 2  ;;  %v2607_v31 = vrot.slane %v2606_v9, 4 }
 0x75b   : > { %2939 = vrot.lane.b32.xlu2 %v8409_v39, %s8324_s15  ;;  %v4968_v41 = vpop.eup %4967  ;;  %v2642_v39 = vrot.slane %v2641_v11, 4  ;;  %v2000_v5 = vmax.f32 %v1998_v50, %v1999_v40  ;;  %v7492_v63 = vadd.f32 %v2321_v26, %v2320_v33  ;;  %v2658_v42 = vrot.slane %v2657_v51, 2 }
 0x75c   : > { %v2184_v36 = vadd.f32 %v8411_v3, %v7168_v34  ;;  %v7490_v29 = vmul.f32 %v4968_v41, %v2577_v17  ;;  %v2008_v21 = vrot.slane %v2007_v59, 1  ;;  %v8413_v56 = vrot.slane %v7251_v20, 2  ;;  %v8415_v3 = vld [vmem:[#allocation32_spill] sm:$0xff] }
 0x75d   : > { %2903 = vrot.lane.b32.xlu1 %v8410_v4, %s8324_s15  ;;  %v2706_v47 = vadd.f32 %v2705_v62, %v2704_v53  ;;  %4969 = vpow2.f32 %v2155_v54  ;;  %v2671_v4 = vadd.f32 %v2670_v16, %v2669_v45  ;;  %v2746_v25 = vsel %vm618_vm1, %v8414_v58, 0.0 }
 0x75e   : > { %8412 = vst [vmem:[#allocation41_spill] sm:$0xff] %v7490_v29  ;;  %v2233_v57 = vadd.f32 %v8413_v56, %v7251_v20  ;;  %v2327_v34 = vsel %vm618_vm1, %v7266_v1, 0.0  ;;  %v2157_v50 = vmul.f32 1.442695, %v2101_v19  ;;  %v2185_v17 = vrot.slane %v2184_v36, 1 }
 0x75f   : > { %v2608_v33 = vadd.f32 %v2607_v31, %v2606_v9  ;;  %v2643_v26 = vadd.f32 %v2642_v39, %v2641_v11  ;;  %v2001_v41 = vrot.slane %v2000_v5, 1  ;;  %v2774_v29 = vsel %vm618_vm1, %v8415_v3, 0.0  ;;  %v8421_v3 = vld [vmem:[#allocation33_spill] sm:$0xff] }
 0x760   : > { %v2234_v40 = vrot.slane %v2233_v57, 1  ;;  %v8416_v20 = vrot.slane %v5764_v13, 7  ;;  %v7506_v53 = vadd.f32 %v2581_v24, %v2580_v28  ;;  %v7508_v45 = vadd.f32 %v2658_v42, %v2657_v51 }
 0x761   : > { %v2747_v58 = vrot.slane %v2746_v25, 4  ;;  %v2009_v62 = vmax.f32 %v2007_v59, %v2008_v21  ;;  %v2328_v19 = vrot.slane %v2327_v34, 4  ;;  %v2707_v54 = vrot.slane %v2706_v47, 2 }
 0x762   : > { %2907 = vrot.lane.b32.xlu0 %v8416_v20, %s8324_s15  ;;  %v3958_v1 = vpop.f32.mrf.mxu3  ;;  %v2235_v11 = vadd.f32 %v2234_v40, %v2233_v57  ;;  %4971 = vpow2.f32 %v2157_v50  ;;  %v2672_v16 = vrot.slane %v2671_v4, 2  ;;  %v2775_v31 = vrot.slane %v2774_v29, 4  ;;  %v7517_v21 = vpop.xlane.xlu2 %4079 }
 0x763   : > { %v3959_v9 = vadd.f32 %v3958_v1, %v8354_v32  ;;  %v8417_v39 = vrot.slane %v8281_v23, 6  ;;  %v2186_v13 = vadd.f32 %v2185_v17, %v2184_v36  ;;  %v7514_v28 = vpop.eup %4969  ;;  %v2609_v51 = vrot.slane %v2608_v33, 2  ;;  %8419 = vst [vmem:[#allocation42_spill] sm:$0xff] %v7517_v21  ;;  %v8423_v1 = vld [vmem:[#allocation38_spill] sm:$0xff] }
 0x764   : > { %8418 = vst [vmem:[#allocation18_spill] sm:$0xff] %v7514_v28  ;;  %v2644_v24 = vrot.slane %v2643_v26, 2  ;;  %v2002_v42 = vmax.f32 %v2000_v5, %v2001_v41  ;;  %v3956_v59 = vadd.f32 %v3955_v15, %v8354_v32  ;;  %v7520_v57 = vadd.f32 %v2747_v58, %v2746_v25 }
 0x765   : > { %2889 = vrot.lane.b32.xlu1 %v8417_v39, %s8324_s15  ;;  %4065 = vmatpush.msra.mxu0 %v3959_v9  ;;  %v2071_v50 = vmax.f32 %v2009_v62, 0.0  ;;  %v8420_v23 = vrot.slane %v7235_v46, 2  ;;  %v7525_v36 = vadd.f32 %v2328_v19, %v2327_v34  ;;  %v7527_v17 = vadd.f32 %v2707_v54, %v2706_v47 }
 0x766   : > { %v3953_v5 = vadd.f32 %v7433_v30, %v8354_v32  ;;  %v2789_v15 = vmax.f32 %v2235_v11, 1e-30  ;;  %v7531_v41 = vadd.f32 %v2775_v31, %v2774_v29  ;;  %v2592_v25 = vsel %vm618_vm1, %v7192_v38, 0.0 }
 0x767   : > { %v2247_v40 = vadd.f32 %v8420_v23, %v7235_v46  ;;  %4066 = vmatpush.msra.mxu0 %v3956_v59  ;;  %v2545_v20 = vmul.f32 %v7389_v6, %v8421_v3  ;;  %v2782_v58 = vmax.f32 %v2186_v13, 1e-30  ;;  %v7537_v62 = vadd.f32 %v2672_v16, %v2671_v4  ;;  %v8426_v13 = vld [vmem:[#allocation40_spill] sm:$0xff] }
 0x768   : > { %v7539_v46 = vadd.f32 %v2609_v51, %v2608_v33  ;;  %v7541_v47 = vadd.f32 %v2644_v24, %v2643_v26  ;;  %v2070_v34 = vmax.f32 %v2002_v42, 0.0  ;;  %v4972_v32 = vpop.eup %4971  ;;  %v7545_v29 = vsel %vm618_vm1, %v7514_v28, 0.0 }
 0x769   : > { %4067 = vmatpush.msra.mxu0 %v3953_v5  ;;  %8422 = vst [vmem:[#allocation17_spill] sm:$0xff] %v7545_v29  ;;  %v2749_v30 = vrot.slane %v7520_v57, 2  ;;  %v2103_v38 = vsub.f32 %v7387_v35, %v2071_v50  ;;  %v2248_v6 = vrot.slane %v2247_v40, 1  ;;  %v2593_v33 = vrot.slane %v2592_v25, 4 }
 0x76a   : > { %4737 = vmatmul.msk.f32.vlgmr.msra.gmra.mxu0 %vm3979_vm11, %v8423_v1  ;;  %v8424_v26 = vrot.slane %v7345_v37, 2  ;;  %4973 = vrcp.f32 %v2789_v15  ;;  %v2777_v54 = vrot.slane %v7531_v41, 2  ;;  %v2697_v9 = vsel %vm618_vm1, %v2545_v20, 0.0  ;;  %v7564_v39 = vpop.permute.xlu2 %2895 }
 0x76b   : > { %v2760_v11 = vsel %vm618_vm1, %v7247_v48, 0.0  ;;  %v8425_v35 = vrot.slane %v8338_v55, 6  ;;  %4975 = vrcp.f32 %v2782_v58  ;;  %v2341_v16 = vsel %vm618_vm1, %v4972_v32, 0.0  ;;  %v8429_v58 = vld [vmem:[#allocation44_spill] sm:$0xff] }
 0x76c   : > { %v2296_v19 = vadd.f32 %v8424_v26, %v7345_v37  ;;  %v2102_v31 = vsub.f32 %v7406_v27, %v2070_v34  ;;  %v8427_v51 = vrot.slane %v8426_v13, 2  ;;  %v2161_v42 = vmul.f32 1.442695, %v2103_v38 }
 0x76d   : > { %2937 = vrot.lane.b32.xlu1 %v8425_v35, %s8324_s15  ;;  %v2618_v59 = vrot.slane %v7347_v2, 1  ;;  %v2249_v48 = vadd.f32 %v2248_v6, %v2247_v40  ;;  %v8428_v55 = vrot.slane %v7200_v18, 2  ;;  %v2594_v23 = vadd.f32 %v2593_v33, %v2592_v25 }
 0x76e   : > { %v2297_v37 = vrot.slane %v2296_v19, 1  ;;  %v2177_v24 = vadd.f32 %v8427_v51, %v8426_v13  ;;  %v2698_v5 = vrot.slane %v2697_v9, 4  ;;  %v2569_v27 = vrot.slane %v7391_v10, 1 }
 0x76f   : > { %v2205_v50 = vadd.f32 %v8428_v55, %v7200_v18  ;;  %v2342_v3 = vrot.slane %v2341_v16, 4  ;;  %v2761_v20 = vrot.slane %v2760_v11, 4  ;;  %v2648_v34 = vsel %vm618_vm1, %v8429_v58, 0.0 }
 0x770   : > { %v2298_v15 = vadd.f32 %v2297_v37, %v2296_v19  ;;  %v2619_v1 = vadd.f32 %v2618_v59, %v7347_v2  ;;  %v4974_v38 = vpop.eup %4973  ;;  %v2159_v26 = vmul.f32 1.442695, %v2102_v31  ;;  %v2570_v40 = vadd.f32 %v2569_v27, %v7391_v10  ;;  %v8430_v37 = vld [vmem:[#allocation15_spill] sm:$0xff]  ;;  %v8431_v31 = vld [vmem:[#allocation22_spill] sm:$0xff] }
 0x771   : > { %v2178_v6 = vrot.slane %v2177_v24, 1  ;;  %v4976_v13 = vpop.eup %4975  ;;  %4977 = vpow2.f32 %v2161_v42  ;;  %v2791_v25 = vmax.f32 %v2249_v48, 1e-30  ;;  %v2206_v33 = vrot.slane %v2205_v50, 1 }
 0x772   : > { %v2798_v35 = vmax.f32 %v2298_v15, 1e-30  ;;  %v7578_v18 = vmul.f32 %v4974_v38, %v2619_v1  ;;  %v2649_v19 = vrot.slane %v2648_v34, 4  ;;  %v2711_v51 = vsel %vm618_vm1, %v8430_v37, 0.0  ;;  %v7593_v58 = vpop.permute.xlu2 %2881 }
 0x773   : > { %v7582_v55 = vmul.f32 %v4976_v13, %v2570_v40  ;;  %v2699_v2 = vadd.f32 %v2698_v5, %v2697_v9  ;;  %v2762_v59 = vadd.f32 %v2761_v20, %v2760_v11  ;;  %v2599_v15 = vsel %vm618_vm1, %v8431_v31, 0.0  ;;  %v8433_v5 = vld [vmem:[#allocation39_spill] sm:$0xff]  ;;  %v7603_v40 = vpop.xlane.xlu0 %4073 }
 0x774   : > { %4979 = vrcp.f32 %v2798_v35  ;;  %v8432_v10 = vrot.slane %v8333_v14, 7  ;;  %v2681_v42 = vrot.slane %v7384_v8, 1  ;;  %v7591_v48 = vadd.f32 %v2749_v30, %v7520_v57 }
 0x775   : > { %4981 = vpow2.f32 %v2159_v26  ;;  %v2595_v27 = vrot.slane %v2594_v23, 2  ;;  %v2179_v1 = vadd.f32 %v2178_v6, %v2177_v24  ;;  %v7595_v38 = vadd.f32 %v2342_v3, %v2341_v16  ;;  %v8434_v16 = vld [vmem:[#allocation19_spill] sm:$0xff] }
 0x776   : > { %2923 = vrot.lane.b32.xlu1 %v8432_v10, %s8324_s15  ;;  %v2712_v9 = vrot.slane %v2711_v51, 4  ;;  %4983 = vrcp.f32 %v2791_v25  ;;  %v2207_v11 = vadd.f32 %v2206_v33, %v2205_v50  ;;  %v7598_v20 = vmul.f32 %v4972_v32, %v8433_v5  ;;  %s5149_s15 = sshra.s32 %s4453_s16, 4  ;;  %s5150_s15 = int_to_ptr.hbm [resolvable:$true] %s5149_s15 }
 0x777   : > { %v7601_v14 = vadd.f32 %v2777_v54, %v7531_v41  ;;  %v2650_v35 = vadd.f32 %v2649_v19, %v2648_v34  ;;  %v2600_v26 = vrot.slane %v2599_v15, 4  ;;  %v4978_v57 = vpop.eup %4977  ;;  %v2700_v30 = vrot.slane %v2699_v2, 2  ;;  %p5156_p3 = scmp.lt.s32.totalorder %s5150_s15, %s8130_s12 }
 0x778   : > { %v2763_v13 = vrot.slane %v2762_v59, 2  ;;  %v2682_v24 = vadd.f32 %v2681_v42, %v7384_v8  ;;  %v8435_v3 = vrot.slane %v8434_v16, 2  ;;  %v7609_v25 = vadd.f32 %v2595_v27, %v2594_v23 }
 0x779   : > { %v2632_v32 = vrot.slane %v7448_v61, 1  ;;  %v8436_v41 = vrot.slane %v7413_v49, 2  ;;  %v2781_v34 = vmax.f32 %v2179_v1, 1e-30  ;;  %v2713_v19 = vadd.f32 %v2712_v9, %v2711_v51  ;;  %v8438_v1 = vld [vmem:[#allocation31_spill] sm:$0xff] }
 0x77a   : > { %v2198_v6 = vadd.f32 %v8435_v3, %v8434_v16  ;;  %v4980_v50 = vpop.eup %4979  ;;  %v2785_v8 = vmax.f32 %v2207_v11, 1e-30  ;;  %v2651_v10 = vrot.slane %v2650_v35, 2  ;;  %v2601_v42 = vadd.f32 %v2600_v26, %v2599_v15  ;;  %v7626_v9 = vpop.permute.xlu2 %2929  ;;  %v8439_v26 = vld [vmem:[#allocation36_spill] sm:$0xff] }
 0x77b   : > { %v2310_v54 = vadd.f32 %v8436_v41, %v7413_v49  ;;  %v7616_v37 = vmul.f32 %v4980_v50, %v2682_v24  ;;  %v4982_v31 = vpop.eup %4981  ;;  %v2633_v5 = vadd.f32 %v2632_v32, %v7448_v61  ;;  %v2355_v16 = vsel %vm618_vm1, %v4978_v57, 0.0  ;;  %v8440_v32 = vld [vmem:[#allocation14_spill] sm:$0xff]  ;;  %v7647_v33 = vpop.xlane.xlu0 %4082 }
 0x77c   : > { %v4984_v27 = vpop.eup %4983  ;;  %v7620_v3 = vadd.f32 %v2700_v30, %v2699_v2  ;;  %v7622_v4 = vadd.f32 %v2763_v13, %v2762_v59  ;;  %v2199_v49 = vrot.slane %v2198_v6, 1  ;;  %v2662_v51 = vsel %vm618_vm1, %v8438_v1, 0.0  ;;  %8443 = vst [vmem:[#allocation28_spill] sm:$0xff] %v7647_v33  ;;  %v8446_v33 = vld [vmem:[#allocation30_spill] sm:$0xff] }
 0x77d   : > { %v2311_v23 = vrot.slane %v2310_v54, 1  ;;  %v7628_v11 = vmul.f32 %v4984_v27, %v2633_v5  ;;  %4985 = vrcp.f32 %v2781_v34  ;;  %v7631_v61 = vsel %vm618_vm1, %v4982_v31, 0.0  ;;  %v8441_v34 = vld [vmem:[#allocation23_spill] sm:$0xff] }
 0x77e   : > { %8437 = vst [vmem:[#allocation13_spill] sm:$0xff] %v7620_v3  ;;  %v2714_v15 = vrot.slane %v2713_v19, 2  ;;  %v7635_v2 = vsel %vm618_vm1, %v8439_v26, 0.0  ;;  %4987 = vrcp.f32 %v2785_v8  ;;  %v2356_v59 = vrot.slane %v2355_v16, 4 }
 0x77f   : > { %v2312_v24 = vadd.f32 %v2311_v23, %v2310_v54  ;;  %v7637_v30 = vadd.f32 %v2651_v10, %v2650_v35  ;;  %v2602_v13 = vrot.slane %v2601_v42, 2  ;;  %v7640_v41 = vmul.f32 %v4982_v31, %v8440_v32 }
 0x780   : > { %v2663_v5 = vrot.slane %v2662_v51, 4  ;;  %v2200_v54 = vadd.f32 %v2199_v49, %v2198_v6  ;;  %v8442_v23 = vrot.slane %v8441_v34, 2  ;;  %v2349_v1 = vrot.slane %v7631_v61, 4 }
 0x781   : > { %v2800_v50 = vmax.f32 %v2312_v24, 1e-30  ;;  %v2768_v26 = vrot.slane %v7635_v2, 4  ;;  %v2562_v35 = vrot.slane %v7466_v12, 1  ;;  %v2590_v8 = vrot.slane %v7395_v22, 1 }
 0x782   : > { %v2261_v27 = vadd.f32 %v8442_v23, %v8441_v34  ;;  %v7651_v10 = vadd.f32 %v2714_v15, %v2713_v19  ;;  %v2982_v31 = vadd.f32 %v7564_v39, %v7411_v43  ;;  %v8445_v6 = vrot.slane %v7361_v52, 2  ;;  %v2894_v43 = vpop.permute.xlu2 %2893 }
 0x783   : > { %4989 = vrcp.f32 %v2800_v50  ;;  %v4986_v24 = vpop.eup %4985  ;;  %v2357_v32 = vadd.f32 %v2356_v59, %v2355_v16  ;;  %v2695_v34 = vrot.slane %v7450_v44, 1  ;;  %v2563_v23 = vadd.f32 %v2562_v35, %v7466_v12 }
 0x784   : > { %8444 = vst [vmem:[#allocation32_spill] sm:$0xff] %v7651_v10  ;;  %v2303_v49 = vadd.f32 %v8445_v6, %v7361_v52  ;;  %v2591_v56 = vadd.f32 %v2590_v8, %v7395_v22  ;;  %v4988_v21 = vpop.eup %4987  ;;  %v2551_v19 = vmul.f32 %v4978_v57, %v8446_v33  ;;  %v2784_v28 = vmax.f32 %v2200_v54, 1e-30  ;;  %v8447_v52 = vld [vmem:[#allocation45_spill] sm:$0xff]  ;;  %v7669_v6 = vpop.permute.xlu1 %2475  ;;  %v8450_v57 = vld [vmem:[#allocation43_spill] sm:$0xff] }
 0x785   : > { %v2262_v29 = vrot.slane %v2261_v27, 1  ;;  %v7662_v39 = vmul.f32 %v4986_v24, %v2563_v23  ;;  %v8448_v16 = vrot.slane %v8447_v52, 2  ;;  %8449 = vst [vmem:[#allocation33_spill] sm:$0xff] %v7669_v6  ;;  %v4201_v12 = vrot.slane %v2982_v31, 7 }
 0x786   : > { %v2304_v15 = vrot.slane %v2303_v49, 1  ;;  %v7664_v50 = vmul.f32 %v4988_v21, %v2591_v56  ;;  %v2981_v22 = vadd.f32 %v2894_v43, %v7578_v18  ;;  %v8451_v33 = vrot.slane %v8450_v57, 2 }
 0x787   : > { %v2254_v59 = vadd.f32 %v8448_v16, %v8447_v52  ;;  %v2358_v8 = vrot.slane %v2357_v32, 2  ;;  %v7675_v3 = vadd.f32 %v2602_v13, %v2601_v42  ;;  %v2696_v21 = vadd.f32 %v2695_v34, %v7450_v44 }
 0x788   : > { %v2305_v35 = vadd.f32 %v2304_v15, %v2303_v49  ;;  %v2219_v54 = vadd.f32 %v8451_v33, %v8450_v57  ;;  %v2739_v23 = vsel %vm618_vm1, %v2551_v19, 0.0  ;;  %v7680_v52 = vsel %vm4181_vm15, %v4201_v12, %v2981_v22 }
 0x789   : > { %8452 = vst [vmem:[#allocation38_spill] sm:$0xff] %v7675_v3  ;;  %v2255_v56 = vrot.slane %v2254_v59, 1  ;;  %v4990_v24 = vpop.eup %4989  ;;  %4991 = vrcp.f32 %v2784_v28  ;;  %v2688_v49 = vrot.slane %v7468_v7, 1  ;;  %v2263_v43 = vadd.f32 %v2262_v29, %v2261_v27 }
 0x78a   : > { %v2799_v31 = vmax.f32 %v2305_v35, 1e-30  ;;  %v7682_v18 = vmul.f32 %v4990_v24, %v2696_v21  ;;  %v7685_v16 = vadd.f32 %v2663_v5, %v2662_v51  ;;  %v8453_v44 = vrot.slane %v7337_v60, 2  ;;  %v8455_v51 = vld [vmem:[#allocation20_spill] sm:$0xff] }
 0x78b   : > { %v2256_v15 = vadd.f32 %v2255_v56, %v2254_v59  ;;  %v2220_v13 = vrot.slane %v2219_v54, 1  ;;  %v2359_v34 = vadd.f32 %v2358_v8, %v2357_v32  ;;  %v2740_v19 = vrot.slane %v2739_v23, 4 }
 0x78c   : > { %4993 = vrcp.f32 %v2799_v31  ;;  %v2373_v42 = vadd.f32 %v8453_v44, %v7337_v60  ;;  %v2912_v12 = vpop.permute.xlu0 %2911  ;;  %v2583_v28 = vrot.slane %v7506_v53, 1  ;;  %v2639_v59 = vrot.slane %v7481_v0, 1 }
 0x78d   : > { %v2792_v22 = vmax.f32 %v2256_v15, 1e-30  ;;  %v7692_v35 = vadd.f32 %v2912_v12, %v7616_v37  ;;  %v8456_v5 = vrot.slane %v8455_v51, 2  ;;  %v2689_v57 = vadd.f32 %v2688_v49, %v7468_v7  ;;  %v7704_v37 = vpop.xlane.xlu1 %4076  ;;  %v8457_v7 = vld [vmem:[#allocation46_spill] sm:$0xff] }
 0x78e   : > { %v2374_v29 = vrot.slane %v2373_v42, 1  ;;  %v2584_v60 = vadd.f32 %v2583_v28, %v7506_v53  ;;  %v2793_v32 = vmax.f32 %v2263_v43, 1e-30  ;;  %v2350_v8 = vadd.f32 %v2349_v1, %v7631_v61  ;;  %v8462_v28 = vld [vmem:[#allocation29_spill] sm:$0xff] }
 0x78f   : > { %8454 = vst [vmem:[#allocation40_spill] sm:$0xff] %v7692_v35  ;;  %v2380_v27 = vadd.f32 %v8456_v5, %v8455_v51  ;;  %4995 = vrcp.f32 %v2792_v22  ;;  %v4992_v33 = vpop.eup %4991  ;;  %v7702_v21 = vadd.f32 %v2768_v26, %v7635_v2  ;;  %v7706_v24 = vadd.f32 %v2220_v13, %v2219_v54  ;;  %v8460_v13 = vld [vmem:[#allocation27_spill] sm:$0xff] }
 0x790   : > { %v2375_v56 = vadd.f32 %v2374_v29, %v2373_v42  ;;  %v2360_v31 = vrot.slane %v2359_v34, 1  ;;  %v2741_v15 = vadd.f32 %v2740_v19, %v2739_v23  ;;  %v7708_v44 = vmul.f32 %v4992_v33, %v2584_v60  ;;  %v8459_v42 = vld [vmem:[#allocation26_spill] sm:$0xff] }
 0x791   : > { %v8458_v49 = vrot.slane %v8457_v7, 2  ;;  %v2640_v61 = vadd.f32 %v2639_v59, %v7481_v0  ;;  %v2381_v1 = vrot.slane %v2380_v27, 1  ;;  %v2758_v54 = vrot.slane %v8459_v42, 1 }
 0x792   : > { %v4994_v43 = vpop.eup %4993  ;;  %v2809_v2 = vmax.f32 %v2375_v56, 1e-30  ;;  %4997 = vrcp.f32 %v2793_v32  ;;  %v8461_v23 = vrot.slane %v8460_v13, 2  ;;  %v2351_v22 = vrot.slane %v2350_v8, 2 }
 0x793   : > { %v2275_v53 = vadd.f32 %v8458_v49, %v8457_v7  ;;  %v7715_v26 = vmul.f32 %v4994_v43, %v2689_v57  ;;  %v8463_v29 = vrot.slane %v8462_v28, 2  ;;  %v2361_v59 = vadd.f32 %v2360_v31, %v2359_v34  ;;  %v8465_v43 = vld [vmem:[#allocation34_spill] sm:$0xff] }
 0x794   : > { %v2226_v19 = vadd.f32 %v8461_v23, %v8460_v13  ;;  %4999 = vrcp.f32 %v2809_v2  ;;  %v2742_v60 = vrot.slane %v2741_v15, 2  ;;  %v2898_v57 = vpop.permute.xlu0 %2897  ;;  %v8464_v33 = vrot.slane %v7492_v63, 2 }
 0x795   : > { %v2212_v51 = vadd.f32 %v8463_v29, %v8462_v28  ;;  %v4996_v0 = vpop.eup %4995  ;;  %v2276_v56 = vrot.slane %v2275_v53, 1  ;;  %v2983_v7 = vadd.f32 %v2898_v57, %v7628_v11  ;;  %v8466_v2 = vrot.slane %v8465_v43, 2 }
 0x796   : > { %v2324_v32 = vadd.f32 %v8464_v33, %v7492_v63  ;;  %v7729_v49 = vmul.f32 %v4996_v0, %v2640_v61  ;;  %v7734_v23 = vadd.f32 %v2381_v1, %v2380_v27  ;;  %v2759_v34 = vadd.f32 %v2758_v54, %v8459_v42  ;;  %v8467_v0 = vld [vmem:[#allocation41_spill] sm:$0xff] }
 0x797   : > { %v2289_v13 = vadd.f32 %v8466_v2, %v8465_v43  ;;  %v2227_v28 = vrot.slane %v2226_v19, 1  ;;  %v2880_v29 = vpop.permute.xlu1 %2879  ;;  %v4203_v12 = vrot.slane %v2983_v7, 6  ;;  %v2732_v63 = vsel %vm618_vm1, %v7640_v41, 0.0 }
 0x798   : > { %v2325_v31 = vrot.slane %v2324_v32, 1  ;;  %v2213_v11 = vrot.slane %v2212_v51, 1  ;;  %v4998_v61 = vpop.eup %4997  ;;  %v2975_v57 = vadd.f32 %v7593_v58, %v8467_v0  ;;  %v2807_v5 = vmax.f32 %v2361_v59, 1e-30 }
 0x799   : > { %v2290_v33 = vrot.slane %v2289_v13, 1  ;;  %v2277_v27 = vadd.f32 %v2276_v56, %v2275_v53  ;;  %v7741_v2 = vadd.f32 %v2742_v60, %v2741_v15  ;;  %v2974_v42 = vadd.f32 %v2880_v29, %v7582_v55  ;;  %v7762_v29 = vpop.permute.xlu2 %2915 }
 0x79a   : > { %v2326_v43 = vadd.f32 %v2325_v31, %v2324_v32  ;;  %v5000_v1 = vpop.eup %4999  ;;  %v7746_v54 = vsel %vm4184_vm0, %v4203_v12, %v7680_v52  ;;  %v2733_v41 = vrot.slane %v2732_v63, 4  ;;  %v2228_v10 = vadd.f32 %v2227_v28, %v2226_v19 }
 0x79b   : > { %v2291_v7 = vadd.f32 %v2290_v33, %v2289_v13  ;;  %v7748_v6 = vmul.f32 %v5000_v1, %v2759_v34  ;;  %v2646_v58 = vrot.slane %v7541_v47, 1  ;;  %v2214_v59 = vadd.f32 %v2213_v11, %v2212_v51 }
 0x79c   : > { %v2802_v3 = vmax.f32 %v2326_v43, 1e-30  ;;  %v2810_v53 = vmax.f32 %v7734_v23, 1e-30  ;;  %v4183_v15 = vrot.slane %v2975_v57, 6  ;;  %v2352_v60 = vadd.f32 %v2351_v22, %v2350_v8  ;;  %v2878_v32 = vpop.permute.xlu0 %2877  ;;  %v8471_v43 = vld [vmem:[#allocation37_spill] sm:$0xff] }
 0x79d   : > { %v2797_v35 = vmax.f32 %v2291_v7, 1e-30  ;;  %v2674_v55 = vrot.slane %v7537_v62, 1  ;;  %v2795_v56 = vmax.f32 %v2277_v27, 1e-30  ;;  %v4180_v52 = vrot.slane %v2974_v42, 7 }
 0x79e   : > { %v2973_v12 = vadd.f32 %v2878_v32, %v7662_v39  ;;  %5001 = vrcp.f32 %v2802_v3  ;;  %v2647_v13 = vadd.f32 %v2646_v58, %v7541_v47  ;;  %v2734_v34 = vadd.f32 %v2733_v41, %v2732_v63  ;;  %v8468_v39 = vld [vmem:[#allocation24_spill] sm:$0xff] }
 0x79f   : > { %v2709_v19 = vrot.slane %v7527_v17, 1  ;;  %5003 = vrcp.f32 %v2797_v35  ;;  %v2788_v31 = vmax.f32 %v2228_v10, 1e-30  ;;  %v7756_v51 = vpop.permute.xlu1 %2927  ;;  %v2660_v22 = vrot.slane %v7508_v45, 1 }
 0x7a0   : > { %v4182_v23 = vsel %vm4181_vm15, %v4180_v52, %v2973_v12  ;;  %v7759_v8 = vmul.f32 %v4998_v61, %v2647_v13  ;;  %v2786_v28 = vmax.f32 %v2214_v59, 1e-30  ;;  %v2725_v47 = vsel %vm618_vm1, %v7598_v20, 0.0 }
 0x7a1   : > { %v7765_v3 = vsel %vm4184_vm0, %v4183_v15, %v4182_v23  ;;  %5005 = vrcp.f32 %v2795_v56  ;;  %v8469_v10 = vrot.slane %v8468_v39, 2  ;;  %v2353_v63 = vrot.slane %v2352_v60, 1 }
 0x7a2   : > { %5007 = vrcp.f32 %v2807_v5  ;;  %v8470_v33 = vrot.slane %v7595_v38, 2  ;;  %v2675_v61 = vadd.f32 %v2674_v55, %v7537_v62  ;;  %v2744_v0 = vrot.slane %v7741_v2, 1 }
 0x7a3   : > { %v2268_v35 = vadd.f32 %v8469_v10, %v8468_v39  ;;  %v2710_v57 = vadd.f32 %v2709_v19, %v7527_v17  ;;  %v8472_v20 = vrot.slane %v8471_v43, 2  ;;  %5009 = vrcp.f32 %v2788_v31 }
 0x7a4   : > { %v2345_v11 = vadd.f32 %v8470_v33, %v7595_v38  ;;  %v5002_v1 = vpop.eup %5001  ;;  %v2735_v42 = vrot.slane %v2734_v34, 2  ;;  %v2726_v7 = vrot.slane %v2725_v47, 4  ;;  %v2661_v5 = vadd.f32 %v2660_v22, %v7508_v45  ;;  %v2900_v58 = vpop.permute.xlu0 %2899 }
 0x7a5   : > { %v2366_v27 = vadd.f32 %v8472_v20, %v8471_v43  ;;  %5011 = vrcp.f32 %v2786_v28  ;;  %v5004_v41 = vpop.eup %5003  ;;  %v7782_v38 = vmul.f32 %v5002_v1, %v2710_v57  ;;  %v2269_v59 = vrot.slane %v2268_v35, 1  ;;  %v2886_v20 = vpop.permute.xlu2 %2885 }
 0x7a6   : > { %5013 = vrcp.f32 %v2810_v53  ;;  %v2354_v15 = vadd.f32 %v2353_v63, %v2352_v60  ;;  %v2984_v17 = vadd.f32 %v2900_v58, %v7729_v49  ;;  %v2346_v32 = vrot.slane %v2345_v11, 1 }
 0x7a7   : > { %v2367_v62 = vrot.slane %v2366_v27, 1  ;;  %v7785_v55 = vmul.f32 %v5004_v41, %v2675_v61  ;;  %v5006_v56 = vpop.eup %5005  ;;  %v2597_v12 = vrot.slane %v7609_v25, 1  ;;  %v2611_v45 = vrot.slane %v7539_v46, 1  ;;  %v2914_v31 = vpop.permute.xlu1 %2913 }
 0x7a8   : > { %v5008_v13 = vpop.eup %5007  ;;  %v2736_v19 = vadd.f32 %v2735_v42, %v2734_v34  ;;  %v4205_v23 = vrot.slane %v2984_v17, 5  ;;  %v2727_v22 = vadd.f32 %v2726_v7, %v2725_v47  ;;  %v7789_v53 = vmul.f32 %v5006_v56, %v2661_v5  ;;  %v8474_v7 = vld [vmem:[#allocation25_spill] sm:$0xff] }
 0x7a9   : > { %v2368_v52 = vadd.f32 %v2367_v62, %v2366_v27  ;;  %v5010_v60 = vpop.eup %5009  ;;  %v2598_v49 = vadd.f32 %v2597_v12, %v7609_v25  ;;  %v2612_v39 = vadd.f32 %v2611_v45, %v7539_v46  ;;  %v2270_v10 = vadd.f32 %v2269_v59, %v2268_v35 }
 0x7aa   : > { %v2806_v33 = vmax.f32 %v2354_v15, 1e-30  ;;  %v7795_v61 = vsel %vm4187_vm2, %v4205_v23, %v7746_v54  ;;  %v2347_v57 = vadd.f32 %v2346_v32, %v2345_v11  ;;  %v2751_v34 = vrot.slane %v7591_v48, 1 }
 0x7ab   : > { %v2808_v28 = vmax.f32 %v2368_v52, 1e-30  ;;  %v5012_v63 = vpop.eup %5011  ;;  %v7799_v47 = vmax.f32 %v7603_v40, 1.0  ;;  %v7803_v25 = vmul.f32 %v5010_v60, %v2612_v39  ;;  %v2770_v46 = vrot.slane %v7702_v21, 2 }
 0x7ac   : > { %v5014_v43 = vpop.eup %5013  ;;  %v7801_v27 = vmul.f32 %v5012_v63, %v2598_v49  ;;  %v7807_v35 = vmax.f32 %v7704_v37, 1.0  ;;  %v2728_v54 = vrot.slane %v2727_v22, 2  ;;  %v8473_v11 = vmax.f32 %v7706_v24, 1e-30  ;;  %v7811_v42 = vpop.permute.xlu0 %2925 }
 0x7ad   : > { %5015 = vrcp.f32 %v2808_v28  ;;  %v2737_v1 = vrot.slane %v2736_v19, 1  ;;  %v2765_v40 = vrot.slane %v7622_v4, 1  ;;  %v8475_v5 = vrot.slane %v8474_v7, 2 }
 0x7ae   : > { %5017 = vrcp.f32 %v8473_v11  ;;  %v2794_v58 = vmax.f32 %v2270_v10, 1e-30  ;;  %v2745_v62 = vadd.f32 %v2744_v0, %v7741_v2  ;;  %v2805_v59 = vmax.f32 %v2347_v57, 1e-30  ;;  %v8477_v0 = vld [vmem:[#allocation35_spill] sm:$0xff] }
 0x7af   : > { %v2394_v41 = vadd.f32 %v8475_v5, %v8474_v7  ;;  %5019 = vrcp.f32 %v2806_v33  ;;  %v2752_v37 = vadd.f32 %v2751_v34, %v7591_v48  ;;  %v2977_v24 = vadd.f32 %v2886_v20, %v7664_v50  ;;  %v2884_v52 = vpop.permute.xlu1 %2883  ;;  %v8479_v33 = vld [vmem:[#allocation47_spill] sm:$0xff] }
 0x7b0   : > { %5021 = vrcp.f32 %v7799_v47  ;;  %v2766_v15 = vadd.f32 %v2765_v40, %v7622_v4  ;;  %v8476_v32 = vrot.slane %v7685_v16, 2  ;;  %v2729_v2 = vadd.f32 %v2728_v54, %v2727_v22 }
 0x7b1   : > { %v2395_v17 = vrot.slane %v2394_v41, 1  ;;  %5023 = vrcp.f32 %v7807_v35  ;;  %v8478_v12 = vrot.slane %v8477_v0, 2  ;;  %v2871_v23 = vmul.f32 %v5008_v13, %v2745_v62 }
 0x7b2   : > { %v7825_v56 = vadd.f32 %v8476_v32, %v7685_v16  ;;  %v2738_v60 = vadd.f32 %v2737_v1, %v2736_v19  ;;  %v2976_v50 = vadd.f32 %v2884_v52, %v7708_v44  ;;  %5025 = vrcp.f32 %v2794_v58 }
 0x7b3   : > { %v2317_v48 = vadd.f32 %v8478_v12, %v8477_v0  ;;  %v5016_v45 = vpop.eup %5015  ;;  %v2992_v16 = vadd.f32 %v7762_v29, %v7682_v18  ;;  %5027 = vrcp.f32 %v2805_v59  ;;  %v7838_v49 = vmul.f32 %v5014_v43, %v2766_v15  ;;  %v2934_v29 = vpop.permute.xlu2 %2933 }
 0x7b4   : > { %v7832_v4 = vpop.eup %5017  ;;  %v7836_v28 = vmul.f32 %v5016_v45, %v2752_v37  ;;  %v4189_v22 = vrot.slane %v2977_v24, 4  ;;  %v4186_v39 = vrot.slane %v2976_v50, 5  ;;  %v2396_v10 = vadd.f32 %v2395_v17, %v2394_v41  ;;  %v2902_v54 = vpop.permute.xlu0 %2901  ;;  %v8482_v24 = vld [vmem:[#allocation40_spill] sm:$0xff] }
 0x7b5   : > { %v5020_v63 = vpop.eup %5019  ;;  %v2730_v13 = vrot.slane %v2729_v2, 1  ;;  %v2318_v19 = vrot.slane %v2317_v48, 1  ;;  %v2653_v44 = vrot.slane %v7637_v30, 1  ;;  %v8480_v57 = vrot.slane %v8479_v33, 2 }
 0x7b6   : > { %v7844_v20 = vpop.eup %5021  ;;  %v2991_v18 = vadd.f32 %v2914_v31, %v7715_v26  ;;  %v4188_v43 = vsel %vm4187_vm2, %v4186_v39, %v7765_v3  ;;  %v2812_v11 = vmax.f32 %v2396_v10, 1e-30  ;;  %v8481_v1 = vrot.slane %v7525_v36, 2  ;;  %v8483_v10 = vld [vmem:[#allocation32_spill] sm:$0xff] }
 0x7b7   : > { %v2282_v34 = vadd.f32 %v8480_v57, %v8479_v33  ;;  %v7852_v7 = vpop.eup %5023  ;;  %v2985_v5 = vadd.f32 %v2902_v54, %v7759_v8  ;;  %v4191_v41 = vsel %vm4190_vm3, %v4189_v22, %v4188_v43  ;;  %v2779_v58 = vrot.slane %v7601_v14, 1  ;;  %v2910_v15 = vpop.permute.xlu1 %2909 }
 0x7b8   : > { %v2331_v40 = vadd.f32 %v8481_v1, %v7525_v36  ;;  %v2654_v26 = vadd.f32 %v2653_v44, %v7637_v30  ;;  %v5026_v31 = vpop.eup %5025  ;;  %v7859_v62 = vadd.f32 %v7626_v9, %v2871_v23  ;;  %v2870_v3 = vmul.f32 %v5020_v63, %v2738_v60  ;;  %v8484_v63 = vld [vmem:[#allocation38_spill] sm:$0xff]  ;;  %v8485_v1 = vld [vmem:[#allocation13_spill] sm:$0xff] }
 0x7b9   : > { %5029 = vrcp.f32 %v2812_v11  ;;  %v5028_v37 = vpop.eup %5027  ;;  %v4215_v36 = vrot.slane %v8482_v24, 7  ;;  %v4207_v17 = vrot.slane %v2985_v5, 4  ;;  %v2319_v32 = vadd.f32 %v2318_v19, %v2317_v48 }
 0x7ba   : > { %v2332_v59 = vrot.slane %v2331_v40, 1  ;;  %v7862_v8 = vmul.f32 %v5026_v31, %v2654_v26  ;;  %v4219_v52 = vrot.slane %v2992_v16, 5  ;;  %v2731_v0 = vadd.f32 %v2730_v13, %v2729_v2 }
 0x7bb   : > { %v2989_v12 = vadd.f32 %v2910_v15, %v7785_v55  ;;  %v4217_v45 = vrot.slane %v2991_v18, 6  ;;  %v7867_v9 = vsel %vm4190_vm3, %v4207_v17, %v7795_v61  ;;  %v2780_v23 = vadd.f32 %v2779_v58, %v7601_v14  ;;  %v2920_v11 = vpop.permute.xlu2 %2919 }
 0x7bc   : > { %v2333_v30 = vadd.f32 %v2332_v59, %v2331_v40  ;;  %v2283_v60 = vrot.slane %v2282_v34, 1  ;;  %v2998_v50 = vadd.f32 %v7756_v51, %v2870_v3  ;;  %v2869_v22 = vmul.f32 %v5028_v37, %v2731_v0  ;;  %v2888_v14 = vpop.permute.xlu0 %2887 }
 0x7bd   : > { %v4216_v48 = vsel %vm4181_vm15, %v4215_v36, %v2989_v12  ;;  %v2801_v2 = vmax.f32 %v2319_v32, 1e-30  ;;  %v2716_v55 = vrot.slane %v8483_v10, 1  ;;  %v2604_v13 = vrot.slane %v8484_v63, 1 }
 0x7be   : > { %v2803_v39 = vmax.f32 %v2333_v30, 1e-30  ;;  %v4218_v16 = vsel %vm4184_vm0, %v4217_v45, %v4216_v48  ;;  %v3001_v61 = vadd.f32 %v2934_v29, %v7748_v6  ;;  %v2997_v44 = vadd.f32 %v7811_v42, %v2869_v22  ;;  %v8486_v6 = vld [vmem:[#allocation16_spill] sm:$0xff]  ;;  %v8489_v48 = vld [vmem:[#allocation33_spill] sm:$0xff] }
 0x7bf   : > { %v5030_v19 = vpop.eup %5029  ;;  %v7878_v33 = vsel %vm4187_vm2, %v4219_v52, %v4218_v16  ;;  %v2978_v51 = vadd.f32 %v2888_v14, %v7801_v27  ;;  %v2605_v18 = vadd.f32 %v2604_v13, %v8484_v63  ;;  %v2284_v43 = vadd.f32 %v2283_v60, %v2282_v34  ;;  %v2932_v5 = vpop.permute.xlu1 %2931 }
 0x7c0   : > { %5031 = vrcp.f32 %v2803_v39  ;;  %v7881_v57 = vmul.f32 %v5030_v19, %v2780_v23  ;;  %v4229_v54 = vrot.slane %v2998_v50, 7  ;;  %v2702_v40 = vrot.slane %v8485_v1, 1  ;;  %v8490_v39 = vld [vmem:[#allocation18_spill] sm:$0xff] }
 0x7c1   : > { %v8487_v42 = vrot.slane %v8486_v6, 2  ;;  %v4192_v58 = vrot.slane %v2978_v51, 3  ;;  %5033 = vrcp.f32 %v2801_v2  ;;  %v2717_v26 = vadd.f32 %v2716_v55, %v8483_v10 }
 0x7c2   : > { %v7890_v27 = vmul.f32 %v7832_v4, %v2605_v18  ;;  %v4230_v31 = vsel %vm4181_vm15, %v4229_v54, %v2997_v44  ;;  %v3000_v34 = vadd.f32 %v2932_v5, %v7836_v28  ;;  %v2796_v3 = vmax.f32 %v2284_v43, 1e-30  ;;  %v8488_v28 = vld [vmem:[#allocation17_spill] sm:$0xff] }
 0x7c3   : > { %v2387_v29 = vadd.f32 %v8487_v42, %v8486_v6  ;;  %v2771_v37 = vadd.f32 %v2770_v46, %v7702_v21  ;;  %v4231_v24 = vrot.slane %v7859_v62, 6  ;;  %v7899_v36 = vsel %vm4193_vm4, %v4192_v58, %v4191_v41  ;;  %v8492_v6 = vld [vmem:[#allocation42_spill] sm:$0xff] }
 0x7c4   : > { %v2667_v15 = vrot.slane %v7825_v56, 1  ;;  %v4233_v4 = vrot.slane %v3000_v34, 5  ;;  %v2703_v32 = vadd.f32 %v2702_v40, %v8485_v1  ;;  %5035 = vrcp.f32 %v2796_v3  ;;  %v2936_v46 = vpop.permute.xlu0 %2935 }
 0x7c5   : > { %v2388_v59 = vrot.slane %v2387_v29, 1  ;;  %v2335_v0 = vrot.slane %v8488_v28, 4  ;;  %v4235_v12 = vrot.slane %v3001_v61, 4  ;;  %v4232_v30 = vsel %vm4184_vm0, %v4231_v24, %v4230_v31  ;;  %v8491_v61 = vld [vmem:[#allocation28_spill] sm:$0xff] }
 0x7c6   : > { %v5032_v17 = vpop.eup %5031  ;;  %v4234_v21 = vsel %vm4187_vm2, %v4233_v4, %v4232_v30  ;;  %v3002_v23 = vadd.f32 %v2936_v46, %v7838_v49  ;;  %v2668_v50 = vadd.f32 %v2667_v15, %v7825_v56  ;;  %v2772_v22 = vrot.slane %v2771_v37, 1  ;;  %v2906_v56 = vpop.permute.xlu2 %2905 }
 0x7c7   : > { %v2389_v52 = vadd.f32 %v2388_v59, %v2387_v29  ;;  %v2867_v45 = vmul.f32 %v5032_v17, %v2717_v26  ;;  %v5034_v41 = vpop.eup %5033  ;;  %v4236_v60 = vsel %vm4190_vm3, %v4235_v12, %v4234_v21  ;;  %v2548_v16 = vmul.f32 %v8490_v39, %v8489_v48  ;;  %v2918_v13 = vpop.permute.xlu1 %2917 }
 0x7c8   : > { %v4104_v2 = vmul.f32 %v7852_v7, %v7807_v35  ;;  %v2865_v10 = vmul.f32 %v5034_v41, %v2703_v32  ;;  %v2336_v55 = vadd.f32 %v2335_v0, %v8488_v28  ;;  %v2994_v63 = vadd.f32 %v2920_v11, %v7782_v38  ;;  %v7936_v17 = vpop.f32.mrf.mxu0 }
 0x7c9   : > { %v2811_v62 = vmax.f32 %v2389_v52, 1e-30  ;;  %v4237_v19 = vrot.slane %v3002_v23, 3  ;;  %v7916_v44 = vmax.f32 %v8491_v61, 1.0  ;;  %v4089_v14 = vmul.f32 %v7844_v20, %v7799_v47 }
 0x7ca   : > { %v5036_v49 = vpop.eup %5035  ;;  %v2993_v51 = vadd.f32 %v2918_v13, %v2865_v10  ;;  %v2773_v54 = vadd.f32 %v2772_v22, %v2771_v37  ;;  %v2718_v1 = vsel %vm618_vm1, %v2548_v16, 0.0  ;;  %v4105_v40 = vsub.f32 1.0, %v4104_v2 }
 0x7cb   : > { %5037 = vrcp.f32 %v2811_v62  ;;  %v7921_v18 = vsel %vm4193_vm4, %v4237_v19, %v4236_v60  ;;  %v2860_v43 = vmul.f32 %v5036_v49, %v2668_v50  ;;  %v2337_v11 = vrot.slane %v2336_v55, 2 }
 0x7cc   : > { %v4221_v38 = vrot.slane %v2993_v51, 4  ;;  %v7925_v42 = vmax.f32 %v8492_v6, 1.0  ;;  %v4223_v29 = vrot.slane %v2994_v63, 3  ;;  %5039 = vrcp.f32 %v7916_v44  ;;  %v2922_v31 = vpop.permute.xlu0 %2921  ;;  %v5070_v6 = vld [vmem:[%s5468_s18 + $0x8] sm:$0xff] }
 0x7cd   : > { %v4090_v58 = vsub.f32 1.0, %v4089_v14  ;;  %v2719_v34 = vrot.slane %v2718_v1, 4  ;;  %v2995_v3 = vadd.f32 %v2922_v31, %v2867_v45  ;;  %v4106_v24 = vmul.f32 %v7852_v7, %v4105_v40 }
 0x7ce   : > { %v4222_v26 = vsel %vm4190_vm3, %v4221_v38, %v7878_v33  ;;  %5041 = vrcp.f32 %v7925_v42  ;;  %v2987_v15 = vadd.f32 %v2906_v56, %v7789_v53  ;;  %v2338_v52 = vadd.f32 %v2337_v11, %v2336_v55  ;;  %v2892_v45 = vpop.permute.xlu2 %2891 }
 0x7cf   : > { %v4224_v59 = vsel %vm4193_vm4, %v4223_v29, %v4222_v26  ;;  %v2904_v4 = vpop.permute.xlu1 %2903  ;;  %v4225_v32 = vrot.slane %v2995_v3, 2  ;;  %v4091_v33 = vmul.f32 %v7844_v20, %v4090_v58  ;;  %vm4108_vm6 = vweird.f32 %v7807_v35 }
 0x7d0   : > { %vm4109_vm7 = vweird.f32 %v7852_v7  ;;  %v2986_v28 = vadd.f32 %v2904_v4, %v7862_v8  ;;  %v2720_v0 = vadd.f32 %v2719_v34, %v2718_v1  ;;  %vm4093_vm8 = vweird.f32 %v7799_v47  ;;  %v4023_v49 = vpop.f32.mrf.mxu0  ;;  %v5071_v4 = vld [vmem:[%s5468_s18] sm:$0xff] }
 0x7d1   : > { %v5038_v5 = vpop.eup %5037  ;;  %v4114_v12 = vand.u32 2147483648, %v7807_v35  ;;  %v7945_v53 = vsel %vm4196_vm5, %v4225_v32, %v4224_v59  ;;  %vm4094_vm9 = vweird.f32 %v7844_v20  ;;  %v4107_v21 = vadd.f32 %v7852_v7, %v4106_v24  ;;  %vm7955_vm10 = vmor %vm4108_vm6, %vm4109_vm7 }
 0x7d2   : > { %v7931_v37 = vmul.f32 %v5038_v5, %v2773_v54  ;;  %v7947_v30 = vpop.eup %5039  ;;  %v4112_v46 = vand.u32 2147483647, %v7807_v35  ;;  %v4209_v62 = vrot.slane %v2986_v28, 3  ;;  %v4211_v41 = vrot.slane %v2987_v15, 2  ;;  %vm7967_vm11 = vmor %vm4093_vm8, %vm4094_vm9 }
 0x7d3   : > { %v4099_v8 = vand.u32 2147483648, %v7799_v47  ;;  %v2339_v60 = vrot.slane %v2338_v52, 1  ;;  %v4092_v50 = vadd.f32 %v7844_v20, %v4091_v33  ;;  %v4097_v22 = vand.u32 2147483647, %v7799_v47 }
 0x7d4   : > { %v4210_v48 = vsel %vm4193_vm4, %v4209_v62, %v7867_v9  ;;  %v2908_v39 = vpop.permute.xlu0 %2907  ;;  %v7963_v16 = vpop.eup %5041  ;;  %v4115_v35 = vor.u32 1.1754944e-38, %v4114_v12  ;;  %v4134_v63 = vmul.f32 %v7947_v30, %v7916_v44  ;;  %v2721_v13 = vrot.slane %v2720_v0, 2 }
 0x7d5   : > { %v2988_v10 = vadd.f32 %v2908_v39, %v2860_v43  ;;  %v4212_v55 = vsel %vm4196_vm5, %v4211_v41, %v4210_v48  ;;  %v4111_v9 = vsel %vm7955_vm10, %v7852_v7, %v4107_v21  ;;  %vm4113_vm12 = vcmp.eq.f32.partialorder %v4112_v46, 8.507059e+37 }
 0x7d6   : > { %vm4199_vm13 = vcmask 1047559   ;;  %v4100_v19 = vor.u32 1.1754944e-38, %v4099_v8  ;;  %v2980_v47 = vadd.f32 %v2892_v45, %v7803_v25  ;;  %v2340_v14 = vadd.f32 %v2339_v60, %v2338_v52 }
 0x7d7   : > { %v2890_v61 = vpop.permute.xlu1 %2889  ;;  %v4213_v56 = vrot.slane %v2988_v10, 1  ;;  %v4096_v51 = vsel %vm7967_vm11, %v7844_v20, %v4092_v50  ;;  %vm4098_vm14 = vcmp.eq.f32.partialorder %v4097_v22, 8.507059e+37  ;;  %v4116_v54 = vsel %vm4113_vm12, %v4115_v35, %v4111_v9  ;;  %v2940_v20 = vpop.permute.xlu2 %2939  ;;  %v5072_v9 = vld [vmem:[%s5468_s18 + $0x18] sm:$0xff] }
 0x7d8   : > { %v2979_v43 = vadd.f32 %v2890_v61, %v7890_v27  ;;  %v4119_v7 = vmul.f32 %v7963_v16, %v7925_v42  ;;  %v4135_v40 = vsub.f32 1.0, %v4134_v63  ;;  %v2722_v38 = vadd.f32 %v2721_v13, %v2720_v0 }
 0x7d9   : > { %v4214_v1 = vsel %vm4199_vm13, %v4213_v56, %v4212_v55  ;;  %v4117_v25 = vmul.f32 %v4116_v54, %v4023_v49  ;;  %v4101_v5 = vsel %vm4098_vm14, %v4100_v19, %v4096_v51  ;;  %v4198_v58 = vrot.slane %v2980_v47, 1  ;;  %v4046_v47 = vpop.f32.mrf.mxu3 }
 0x7da   : > { %v4195_v11 = vrot.slane %v2979_v43, 2  ;;  %v4248_v29 = vadd.f32 %v5070_v6, %v4214_v1  ;;  %v2804_v26 = vmax.f32 %v2340_v14, 1e-30  ;;  %v4120_v34 = vsub.f32 1.0, %v4119_v7  ;;  %v5073_v43 = vld [vmem:[%s5468_s18 + $0x10] sm:$0xff]  ;;  %s5151_s18 = scalar_lea.hbm %s5150_s15, 32 }
 0x7db   : > { %v4136_v59 = vmul.f32 %v7947_v30, %v4135_v40  ;;  %v4102_v24 = vmul.f32 %v4101_v5, %v7936_v17  ;;  %v2723_v52 = vrot.slane %v2722_v38, 1  ;;  %v3004_v33 = vadd.f32 %v2940_v20, %v7881_v57  ;;  %p5152_p0 = scmp.ne.s32.totalorder %s5150_s15, %s5151_s18  ;;  %p5157_p4 = scmp.lt.s32.totalorder %s5155_s17, %s5151_s18 }
 0x7dc   : > { %v4197_v27 = vsel %vm4196_vm5, %v4195_v11, %v7899_v36  ;;  %v7988_v31 = vadd.f32 %v4248_v29, %v4117_v25  ;;  %5043 = vrcp.f32 %v2804_v26  ;;  %vm4138_vm15 = vweird.f32 %v7916_v44 }
 0x7dd   : > { %v4200_v3 = vsel %vm4199_vm13, %v4198_v58, %v4197_v27  ;;  %vm4139_vm0 = vweird.f32 %v7947_v30  ;;  %v4144_v17 = vand.u32 2147483648, %v7916_v44  ;;  %v4121_v12 = vmul.f32 %v7963_v16, %v4120_v34  ;;  %p5153_p1 = pnand %p5152_p0, %p5322_p5  ;;  %p5158_p7 = por %p5157_p4, %p5156_p3 }
 0x7de   : > { %v4258_v15 = vsel %vm618_vm1, %v7988_v31, 0.0  ;;  %v4247_v32 = vadd.f32 %v5071_v4, %v4200_v3  ;;  %v4137_v45 = vadd.f32 %v7947_v30, %v4136_v59  ;;  %v4142_v21 = vand.u32 2147483647, %v7916_v44  ;;  %vm8005_vm2 = vmor %vm4138_vm15, %vm4139_vm0 }
 0x7df   : > { %v2938_v28 = vpop.permute.xlu1 %2937  ;;  %4259 = vadd.xlane.f32.xlu1 %v4258_v15  ;;  %v2724_v62 = vadd.f32 %v2723_v52, %v2722_v38  ;;  %v4241_v8 = vrot.slane %v3004_v33, 1  ;;  %vm4123_vm3 = vweird.f32 %v7925_v42  ;;  %vm4124_vm4 = vweird.f32 %v7963_v16  ;;  %v8501_v38 = vld [vmem:[#allocation21_spill] sm:$0xff]  ;;  %p5154_p2 = pneg %p5153_p1 }
 0x7e0   : > { %v3003_v36 = vadd.f32 %v2938_v28, %v7931_v37  ;;  %v4251_v0 = vadd.f32 %v4247_v32, %v4102_v24  ;;  %v4127_v37 = vand.u32 2147483647, %v7925_v42  ;;  %v4129_v23 = vand.u32 2147483648, %v7925_v42  ;;  %vm8020_vm7 = vmor %vm4123_vm3, %vm4124_vm4 }
 0x7e1   : > { %v4145_v60 = vor.u32 1.1754944e-38, %v4144_v17  ;;  %v4122_v22 = vadd.f32 %v7963_v16, %v4121_v12  ;;  %v4141_v48 = vsel %vm8005_vm2, %v7947_v30, %v4137_v45  ;;  %vm4143_vm6 = vcmp.eq.f32.partialorder %v4142_v21, 8.507059e+37  ;;  %p5159_p8 = pnand %p5158_p7, %p5154_p2 }
 0x7e2   : > { %v4239_v46 = vrot.slane %v3003_v36, 2  ;;  %v4255_v57 = vsel %vm618_vm1, %v4251_v0, 0.0  ;;  %v5044_v50 = vpop.eup %5043 }
 0x7e3   : > { %4256 = vadd.xlane.f32.xlu0 %v4255_v57  ;;  %v2868_v42 = vmul.f32 %v5044_v50, %v2724_v62  ;;  %v4146_v63 = vsel %vm4143_vm6, %v4145_v60, %v4141_v48  ;;  %v4126_v13 = vsel %vm8020_vm7, %v7963_v16, %v4122_v22  ;;  %v5074_v57 = vld [vmem:[%s8129_s11] sm:$0xff] }
 0x7e4   : > { %v4240_v44 = vsel %vm4196_vm5, %v4239_v46, %v7921_v18  ;;  %v4130_v18 = vor.u32 1.1754944e-38, %v4129_v23  ;;  %vm4128_vm5 = vcmp.eq.f32.partialorder %v4127_v37, 8.507059e+37  ;;  %v8054_v62 = vperm.slane %v5074_v57, 4 }
 0x7e5   : > { %v4242_v39 = vsel %vm4199_vm13, %v4241_v8, %v4240_v44  ;;  %v8056_v8 = vperm.slane %v5074_v57, 5 }
 0x7e6   : > { %v4250_v19 = vadd.f32 %v5072_v9, %v4242_v39  ;;  %v4131_v56 = vsel %vm4128_vm5, %v4130_v18, %v4126_v13 }
 0x7e7   : > { %v4069_v55 = vpop.f32.mrf.mxu0  ;;  %v4132_v51 = vmul.f32 %v4131_v56, %v4046_v47 }
 0x7e8   : > { %v2924_v35 = vpop.permute.xlu1 %2923  ;;  %v4147_v30 = vmul.f32 %v4146_v63, %v4069_v55 }
 0x7e9   : > { %v2996_v10 = vadd.f32 %v2924_v35, %v2868_v42 }
 0x7ea   : > { %v4254_v61 = vadd.f32 %v4250_v19, %v4147_v30 }
 0x7eb   : > { %v4227_v49 = vrot.slane %v2996_v10, 1 }
 0x7ec   : > { %v4264_v7 = vsel %vm618_vm1, %v4254_v61, 0.0 }
 0x7ed   : > { %v4228_v14 = vsel %vm4199_vm13, %v4227_v49, %v7945_v53  ;;  %4265 = vadd.xlane.f32.xlu0 %v4264_v7 }
 0x7ee   : > { %v4249_v54 = vadd.f32 %v5073_v43, %v4228_v14 }
 0x7f0   : > { %v4253_v1 = vadd.f32 %v4249_v54, %v4132_v51 }
 0x7f2   : > { %v4261_v16 = vsel %vm618_vm1, %v4253_v1, 0.0 }
 0x7f3   : > { %4262 = vadd.xlane.f32.xlu2 %v4261_v16 }
 0x852   : > { %v4260_v40 = vpop.xlane.xlu1 %4259 }
 0x853   : > { %v4268_v25 = vmul.f32 %v4260_v40, %v8501_v38 }
 0x855   : > { %v4272_v11 = vsub.f32 %v7988_v31, %v4268_v25 }
 0x856   : > { %v4257_v6 = vpop.xlane.xlu0 %4256 }
 0x857   : > { %v4267_v29 = vmul.f32 %v4257_v6, %v8501_v38  ;;  %v4276_v5 = vmul.f32 %v4272_v11, %v4272_v11 }
 0x859   : > { %v4271_v53 = vsub.f32 %v4251_v0, %v4267_v29  ;;  %v4282_v58 = vsel %vm618_vm1, %v4276_v5, 0.0 }
 0x85a   : > { %4283 = vadd.xlane.f32.xlu2 %v4282_v58 }
 0x85b   : > { %v4275_v26 = vmul.f32 %v4271_v53, %v4271_v53 }
 0x85d   : > { %v4279_v20 = vsel %vm618_vm1, %v4275_v26, 0.0 }
 0x85e   : > { %4280 = vadd.xlane.f32.xlu1 %v4279_v20 }
 0x860   : > { %v4266_v27 = vpop.xlane.xlu0 %4265 }
 0x861   : > { %v4270_v34 = vmul.f32 %v4266_v27, %v8501_v38 }
 0x863   : > { %v8039_v3 = vsub.f32 %v4254_v61, %v4270_v34 }
 0x865   : > { %v4278_v24 = vmul.f32 %v8039_v3, %v8039_v3 }
 0x866   : > { %v4263_v59 = vpop.xlane.xlu2 %4262 }
 0x867   : > { %v4269_v31 = vmul.f32 %v4263_v59, %v8501_v38  ;;  %v4288_v4 = vsel %vm618_vm1, %v4278_v24, 0.0 }
 0x868   : > { %4289 = vadd.xlane.f32.xlu1 %v4288_v4 }
 0x869   : > { %v8044_v15 = vsub.f32 %v4253_v1, %v4269_v31 }
 0x86b   : > { %v4277_v32 = vmul.f32 %v8044_v15, %v8044_v15 }
 0x86d   : > { %v4285_v52 = vsel %vm618_vm1, %v4277_v32, 0.0 }
 0x86e   : > { %4286 = vadd.xlane.f32.xlu0 %v4285_v52 }
 0x8cd   : > { %v4284_v33 = vpop.xlane.xlu2 %4283 }
 0x8ce   : > { %v4292_v28 = vmul.f32 %v4284_v33, %v8501_v38 }
 0x8d0   : > { %v4296_v36 = vadd.f32 1e-05, %v4292_v28 }
 0x8d1   : > { %v4281_v60 = vpop.xlane.xlu1 %4280 }
 0x8d2   : > { %5045 = vrsqrt.f32 %v4296_v36  ;;  %vm4315_vm9 = vweird.f32 %v4296_v36  ;;  %v4291_v50 = vmul.f32 %v4281_v60, %v8501_v38 }
 0x8d4   : > { %v4295_v48 = vadd.f32 1e-05, %v4291_v50 }
 0x8d6   : > { %vm4305_vm12 = vweird.f32 %v4295_v48 }
 0x8d8   : > { %v5046_v0 = vpop.eup %5045 }
 0x8d9   : > { %v4310_v17 = vmul.f32 %v5046_v0, %v4296_v36  ;;  %vm4316_vm8 = vweird.f32 %v5046_v0 }
 0x8da   : > { %vm4317_vm10 = vmor %vm4315_vm9, %vm4316_vm8 }
 0x8db   : > { %v4311_v12 = vmul.f32 %v5046_v0, %v4310_v17 }
 0x8dd   : > { %v4312_v45 = vmul.f32 0.5, %v4311_v12 }
 0x8df   : > { %v4313_v21 = vsub.f32 1.5, %v4312_v45  ;;  %v4290_v45 = vpop.xlane.xlu1 %4289 }
 0x8e1   : > { %v4314_v46 = vmul.f32 %v5046_v0, %v4313_v21  ;;  %v4287_v7 = vpop.xlane.xlu0 %4286 }
 0x8e2   : > { %v4293_v16 = vmul.f32 %v4287_v7, %v8501_v38 }
 0x8e3   : > { %v4318_v41 = vsel %vm4317_vm10, %v5046_v0, %v4314_v46  ;;  %v4294_v46 = vmul.f32 %v4290_v45, %v8501_v38 }
 0x8e4   : > { %v4340_v37 = vmul.f32 %v4318_v41, %v4272_v11  ;;  %v4297_v6 = vadd.f32 1e-05, %v4293_v16 }
 0x8e6   : > { %v4345_v23 = vmul.f32 %v8054_v62, %v4340_v37  ;;  %vm4325_vm4 = vweird.f32 %v4297_v6  ;;  %v4298_v37 = vadd.f32 1e-05, %v4294_v46 }
 0x8e8   : > { %v4350_v44 = vadd.f32 %v8056_v8, %v4345_v23 }
 0x8ea   : > { %v4739_v22 = vmul.f32 -1.442695, %v4350_v44 }
 0x8ec   : > { %5047 = vpow2.f32 %v4739_v22 }
 0x8ed   : > { %5049 = vrsqrt.f32 %v4295_v48 }
 0x8f2   : > { %v5048_v39 = vpop.eup %5047 }
 0x8f3   : > { %v5050_v2 = vpop.eup %5049  ;;  %v4366_v42 = vadd.f32 1.0, %v5048_v39 }
 0x8f4   : > { %v4300_v35 = vmul.f32 %v5050_v2, %v4295_v48  ;;  %vm4306_vm11 = vweird.f32 %v5050_v2 }
 0x8f5   : > { %5051 = vrcp.f32 %v4366_v42  ;;  %vm4307_vm13 = vmor %vm4305_vm12, %vm4306_vm11  ;;  %v4395_v47 = vand.u32 2147483648, %v4366_v42  ;;  %v4393_v56 = vand.u32 2147483647, %v4366_v42  ;;  %vm4389_vm15 = vweird.f32 %v4366_v42 }
 0x8f6   : > { %v4301_v18 = vmul.f32 %v5050_v2, %v4300_v35  ;;  %vm4335_vm11 = vweird.f32 %v4298_v37 }
 0x8f7   : > { %v4396_v43 = vor.u32 1.1754944e-38, %v4395_v47  ;;  %vm4394_vm2 = vcmp.eq.f32.partialorder %v4393_v56, 8.507059e+37 }
 0x8f8   : > { %v4302_v10 = vmul.f32 0.5, %v4301_v18 }
 0x8fa   : > { %v4303_v55 = vsub.f32 1.5, %v4302_v10 }
 0x8fb   : > { %v5052_v63 = vpop.eup %5051 }
 0x8fc   : > { %v4385_v13 = vmul.f32 %v5052_v63, %v4366_v42  ;;  %v4304_v30 = vmul.f32 %v5050_v2, %v4303_v55  ;;  %vm4390_vm14 = vweird.f32 %v5052_v63 }
 0x8fd   : > { %vm4391_vm0 = vmor %vm4389_vm15, %vm4390_vm14 }
 0x8fe   : > { %v4386_v9 = vsub.f32 1.0, %v4385_v13  ;;  %v4308_v19 = vsel %vm4307_vm13, %v5050_v2, %v4304_v30 }
 0x8ff   : > { %v4339_v49 = vmul.f32 %v4308_v19, %v4271_v53 }
 0x900   : > { %v4387_v61 = vmul.f32 %v5052_v63, %v4386_v9 }
 0x901   : > { %v4344_v14 = vmul.f32 %v8054_v62, %v4339_v49 }
 0x902   : > { %v4388_v51 = vadd.f32 %v5052_v63, %v4387_v61 }
 0x903   : > { %v4349_v54 = vadd.f32 %v8056_v8, %v4344_v14 }
 0x904   : > { %v4392_v1 = vsel %vm4391_vm0, %v5052_v63, %v4388_v51 }
 0x905   : > { %v4397_v40 = vsel %vm4394_vm2, %v4396_v43, %v4392_v1  ;;  %v4738_v25 = vmul.f32 -1.442695, %v4349_v54 }
 0x906   : > { %v4430_v11 = vmul.f32 %v4397_v40, %v4350_v44 }
 0x907   : > { %5053 = vpow2.f32 %v4738_v25 }
 0x908   : > { %4434 = vst.msk [vmem:[%s8067_s29 + $0x8] sm:$0xff] %vm618_vm1, %v4430_v11  ;;  %5055 = vrsqrt.f32 %v4297_v6 }
 0x90d   : > { %v5054_v29 = vpop.eup %5053 }
 0x90e   : > { %v5056_v5 = vpop.eup %5055  ;;  %v4365_v53 = vadd.f32 1.0, %v5054_v29 }
 0x90f   : > { %v4320_v58 = vmul.f32 %v5056_v5, %v4297_v6  ;;  %vm4326_vm3 = vweird.f32 %v5056_v5 }
 0x910   : > { %5057 = vrcp.f32 %v4365_v53  ;;  %vm4327_vm6 = vmor %vm4325_vm4, %vm4326_vm3  ;;  %v4380_v32 = vand.u32 2147483648, %v4365_v53  ;;  %v4378_v28 = vand.u32 2147483647, %v4365_v53  ;;  %vm4374_vm5 = vweird.f32 %v4365_v53 }
 0x911   : > { %v4321_v26 = vmul.f32 %v5056_v5, %v4320_v58 }
 0x912   : > { %v4381_v17 = vor.u32 1.1754944e-38, %v4380_v32  ;;  %vm4379_vm9 = vcmp.eq.f32.partialorder %v4378_v28, 8.507059e+37 }
 0x913   : > { %v4322_v20 = vmul.f32 0.5, %v4321_v26 }
 0x915   : > { %v4323_v27 = vsub.f32 1.5, %v4322_v20 }
 0x916   : > { %v5058_v34 = vpop.eup %5057 }
 0x917   : > { %v4370_v59 = vmul.f32 %v5058_v34, %v4365_v53  ;;  %v4324_v31 = vmul.f32 %v5056_v5, %v4323_v27  ;;  %vm4375_vm7 = vweird.f32 %v5058_v34 }
 0x918   : > { %vm4376_vm8 = vmor %vm4374_vm5, %vm4375_vm7 }
 0x919   : > { %v4371_v24 = vsub.f32 1.0, %v4370_v59  ;;  %v4328_v4 = vsel %vm4327_vm6, %v5056_v5, %v4324_v31 }
 0x91a   : > { %v4341_v52 = vmul.f32 %v4328_v4, %v8044_v15 }
 0x91b   : > { %v4372_v33 = vmul.f32 %v5058_v34, %v4371_v24 }
 0x91c   : > { %v4346_v36 = vmul.f32 %v8054_v62, %v4341_v52 }
 0x91d   : > { %v4373_v0 = vadd.f32 %v5058_v34, %v4372_v33 }
 0x91e   : > { %v4351_v12 = vadd.f32 %v8056_v8, %v4346_v36 }
 0x91f   : > { %v4377_v21 = vsel %vm4376_vm8, %v5058_v34, %v4373_v0 }
 0x920   : > { %v4382_v57 = vsel %vm4379_vm9, %v4381_v17, %v4377_v21  ;;  %v4740_v41 = vmul.f32 -1.442695, %v4351_v12 }
 0x921   : > { %v4429_v15 = vmul.f32 %v4382_v57, %v4349_v54 }
 0x922   : > { %5059 = vpow2.f32 %v4740_v41 }
 0x923   : > { %4433 = vst.msk [vmem:[%s8067_s29] sm:$0xff] %vm618_vm1, %v4429_v15  ;;  %5061 = vrsqrt.f32 %v4298_v37 }
 0x928   : > { %v5060_v23 = vpop.eup %5059 }
 0x929   : > { %v5062_v44 = vpop.eup %5061  ;;  %v4367_v60 = vadd.f32 1.0, %v5060_v23 }
 0x92a   : > { %v4330_v50 = vmul.f32 %v5062_v44, %v4298_v37  ;;  %vm4336_vm10 = vweird.f32 %v5062_v44 }
 0x92b   : > { %5063 = vrcp.f32 %v4367_v60  ;;  %vm4337_vm12 = vmor %vm4335_vm11, %vm4336_vm10  ;;  %v4410_v10 = vand.u32 2147483648, %v4367_v60  ;;  %v4408_v13 = vand.u32 2147483647, %v4367_v60  ;;  %vm4404_vm14 = vweird.f32 %v4367_v60 }
 0x92c   : > { %v4331_v22 = vmul.f32 %v5062_v44, %v4330_v50 }
 0x92d   : > { %v4411_v19 = vor.u32 1.1754944e-38, %v4410_v10  ;;  %vm4409_vm0 = vcmp.eq.f32.partialorder %v4408_v13, 8.507059e+37 }
 0x92e   : > { %v4332_v48 = vmul.f32 0.5, %v4331_v22 }
 0x930   : > { %v4333_v39 = vsub.f32 1.5, %v4332_v48 }
 0x931   : > { %v5064_v2 = vpop.eup %5063 }
 0x932   : > { %v4400_v42 = vmul.f32 %v5064_v2, %v4367_v60  ;;  %v4334_v38 = vmul.f32 %v5062_v44, %v4333_v39  ;;  %vm4405_vm13 = vweird.f32 %v5064_v2 }
 0x933   : > { %vm4406_vm15 = vmor %vm4404_vm14, %vm4405_vm13 }
 0x934   : > { %v4401_v35 = vsub.f32 1.0, %v4400_v42  ;;  %v4338_v18 = vsel %vm4337_vm12, %v5062_v44, %v4334_v38 }
 0x935   : > { %v4342_v55 = vmul.f32 %v4338_v18, %v8039_v3 }
 0x936   : > { %v4402_v63 = vmul.f32 %v5064_v2, %v4401_v35 }
 0x937   : > { %v4347_v30 = vmul.f32 %v8054_v62, %v4342_v55 }
 0x938   : > { %v4403_v9 = vadd.f32 %v5064_v2, %v4402_v63 }
 0x939   : > { %v4352_v47 = vadd.f32 %v8056_v8, %v4347_v30 }
 0x93a   : > { %v4407_v49 = vsel %vm4406_vm15, %v5064_v2, %v4403_v9 }
 0x93b   : > { %v4412_v61 = vsel %vm4409_vm0, %v4411_v19, %v4407_v49  ;;  %v4741_v56 = vmul.f32 -1.442695, %v4352_v47 }
 0x93c   : > { %v4431_v14 = vmul.f32 %v4412_v61, %v4351_v12 }
 0x93d   : > { %5065 = vpow2.f32 %v4741_v56 }
 0x93e   : > { %4435 = vst.msk [vmem:[%s8067_s29 + $0x10] sm:$0xff] %vm618_vm1, %v4431_v14 }
 0x943   : > { %v5066_v3 = vpop.eup %5065 }
 0x944   : > { %v4368_v51 = vadd.f32 1.0, %v5066_v3 }
 0x946   : > { %5067 = vrcp.f32 %v4368_v51  ;;  %v4425_v7 = vand.u32 2147483648, %v4368_v51  ;;  %v4423_v1 = vand.u32 2147483647, %v4368_v51  ;;  %vm4419_vm3 = vweird.f32 %v4368_v51 }
 0x948   : > { %v4426_v40 = vor.u32 1.1754944e-38, %v4425_v7  ;;  %vm4424_vm6 = vcmp.eq.f32.partialorder %v4423_v1, 8.507059e+37 }
 0x94c   : > { %v5068_v62 = vpop.eup %5067 }
 0x94d   : > { %v4415_v43 = vmul.f32 %v5068_v62, %v4368_v51  ;;  %vm4420_vm2 = vweird.f32 %v5068_v62 }
 0x94e   : > { %vm4421_vm4 = vmor %vm4419_vm3, %vm4420_vm2 }
 0x94f   : > { %v4416_v54 = vsub.f32 1.0, %v4415_v43 }
 0x951   : > { %v4417_v8 = vmul.f32 %v5068_v62, %v4416_v54 }
 0x953   : > { %v4418_v16 = vadd.f32 %v5068_v62, %v4417_v8 }
 0x955   : > { %v4422_v25 = vsel %vm4421_vm4, %v5068_v62, %v4418_v16 }
 0x956   : > { %v4427_v11 = vsel %vm4424_vm6, %v4426_v40, %v4422_v25 }
 0x957   : > { %v4432_v6 = vmul.f32 %v4427_v11, %v4352_v47 }
 0x959   : > { %4436 = vst.msk [vmem:[%s8067_s29 + $0x18] sm:$0xff] %vm618_vm1, %v4432_v6 }
 0x95a   : > { %5162 = shalt.err (!%p5159_p8)
}
 0x95b   : > { %s5217_s23 = smov 128   ;;  %s5218_s29 = smov 8  }
 0x95c   : > { %4765 = dma.vmem_to_hbm [thread:$0]  (%p5322_p5), %s4451_s30, 512, %s4453_s16, %s4438_s25, %s5217_s23, %s5217_s23, %s5218_s29  }
 0x95d PF: > { %p4782_p9 = scmp.ge.s32.totalorder %s5205_s24, 2  ;;  %s4467_s28 = sand.u32 1, %s5193_s21  }
 0x95e   : > { %s4468_s0 = scalar_lea.sflag [#allocation4], %s4467_s28 }
 0x95f   : > { %p4775_p10 = pnand %p4782_p9, %p5326_p6 }
 0x961   : > { %p4776_p11 = pneg %p4775_p10 }
 0x963   : > { %5188 = dma.done.wait (%p4776_p11), %s4468_s0, 512  }
 0x964   : > { %5190 = vsyncadd (%p4776_p11), %s4468_s0, 4294966784  ;;  %s8502_s15 = sld [smem:[#allocation11_spill]]  ;;  %p24_p12 = scmp.ge.s32.totalorder %s5309_s27, 4  }
 0x965   : > { %s8503_s23 = sld [smem:[#allocation12_spill]]  ;;  %s8504_s21 = smov %s5197_s22 }
 0x966   : > { %s8506_s24 = smov %s5309_s27  ;;  %26 = sbr.rel (!%p24_p12) target bundleno = 7 (0x7), region = 124 }
 0x96a   : > { %s8505_s22 = smov %s8502_s15 }
 0x96b   :  { %4474 = vsyncpa [#allocation3], 1 }
 0x96c   :  { %4476 = vsyncpa [#allocation3 + $0x1], 1 }
 0x96d   :  { %4477 = vsyncpa [#allocation6], 1 }
 0x96e   :  { %4478 = vsyncpa [#allocation4], 1 }
 0x96f   :  { %4480 = vsyncpa [#allocation4 + $0x1], 1 }

</bundles_post_ra>
